<compile_context>
chip_gen: v5e
topology: v5e:2x2
jax: 0.10.0
libtpu: 0.0.40
codegen_flags: <defaults>
</compile_context>

<pallas_src>
import math
from functools import partial

import jax
import jax.numpy as jnp
from jax.experimental import pallas as pl
from jax.experimental.pallas import tpu as pltpu


def _round_up(x, m):
    return ((x + m - 1) // m) * m


# ----------------------------------------------------------------------------
# Kernel 1: weight-stationary matmul + bias (+ residual) (+ ReLU)  (1x1 convs)
# ----------------------------------------------------------------------------
def _make_mm_kernel(apply_relu: bool, has_residual: bool):
    def kernel(*refs):
        if has_residual:
            a_ref, w_ref, b_ref, r_ref, o_ref = refs
        else:
            a_ref, w_ref, b_ref, o_ref = refs
        y = jnp.dot(a_ref[...], w_ref[...], preferred_element_type=jnp.float32)
        y = y + b_ref[...]                                 # folded-BN bias
        if has_residual:
            y = y + r_ref[...].astype(jnp.float32)         # residual add
        if apply_relu:
            y = jnp.maximum(y, 0.0)                        # ReLU
        o_ref[...] = y.astype(o_ref.dtype)
    return kernel


def matmul_bias_act(a, w, bias, residual=None, relu=False, out_dtype=jnp.bfloat16):
    """out = act(a @ w + bias [+ residual]); weight/bias stay VMEM-resident."""
    M, K = a.shape
    K2, N = w.shape
    assert K == K2
    tm = min(512, _round_up(M, 16))        # bf16 sublane tile = 16
    Mp = _round_up(M, tm)
    if Mp != M:
        a = jnp.pad(a, ((0, Mp - M), (0, 0)))
        if residual is not None:
            residual = jnp.pad(residual, ((0, Mp - M), (0, 0)))

    inputs = [a.astype(jnp.bfloat16),
              w.astype(jnp.bfloat16),
              bias.reshape(1, N).astype(jnp.float32)]
    in_specs = [
        pl.BlockSpec((tm, K), lambda i: (i, 0)),
        pl.BlockSpec((K, N), lambda i: (0, 0)),    # weight-stationary
        pl.BlockSpec((1, N), lambda i: (0, 0)),    # bias-stationary
    ]
    has_res = residual is not None
    if has_res:
        inputs.append(residual.astype(jnp.bfloat16))
        in_specs.append(pl.BlockSpec((tm, N), lambda i: (i, 0)))

    out = pl.pallas_call(
        _make_mm_kernel(relu, has_res),
        out_shape=jax.ShapeDtypeStruct((Mp, N), out_dtype),
        grid=(Mp // tm,),
        in_specs=in_specs,
        out_specs=pl.BlockSpec((tm, N), lambda i: (i, 0)),
        compiler_params=pltpu.CompilerParams(dimension_semantics=("parallel",)),
    )(*inputs)
    return out if Mp == M else out[:M]


def conv1x1_bn_act(x, w, scale, bias, *, stride=1, relu=False, residual=None,
                   out_dtype=jnp.bfloat16):
    """x: (N, D, H, W, Cin) channels-last bf16; w: (Cout, Cin, 1, 1, 1).
    `residual`, if given, is a 2D (rows, Cout) bf16 tensor fused in the epilogue."""
    if stride != 1:
        x = x[:, ::stride, ::stride, ::stride, :]
    N, D, H, W, Cin = x.shape
    Cout = w.shape[0]
    wmat = w.reshape(Cout, Cin).T * scale.reshape(1, Cout)   # fold BN scale (f32)
    a = x.reshape(N * D * H * W, Cin)
    if residual is not None:
        assert residual.shape == (a.shape[0], Cout)
    y = matmul_bias_act(a, wmat, bias, residual=residual, relu=relu,
                        out_dtype=out_dtype)
    return y.reshape(N, D, H, W, Cout)


# ----------------------------------------------------------------------------
# Kernel 2: 3x3x3 conv as implicit GEMM (no HBM im2col), BN folded, fused ReLU
# ----------------------------------------------------------------------------
def _make_conv3_kernel(stride, dilation, Ho, Wo, Cin, apply_relu):
    s = stride

    def kernel(x_ref, w_ref, b_ref, o_ref, acc_ref):
        kd = pl.program_id(2)

        @pl.when(kd == 0)
        def _init():
            acc_ref[...] = jnp.zeros_like(acc_ref)

        part = None
        for kh in range(3):
            oh = (kh * dilation) // s
            ph = (kh * dilation) % s
            for kw in range(3):
                ow = (kw * dilation) // s
                pw = (kw * dilation) % s
                # contiguous static window of the padded plane already in VMEM
                win = x_ref[ph * s + pw, oh:oh + Ho, ow:ow + Wo, :]   # (Ho,Wo,Cin)
                a = win.reshape(Ho * Wo, Cin)
                wk = w_ref[0, (kh * 3 + kw) * Cin:(kh * 3 + kw + 1) * Cin, :]
                d = jnp.dot(a, wk, preferred_element_type=jnp.float32)
                part = d if part is None else part + d
        acc_ref[...] += part

        @pl.when(kd == pl.num_programs(2) - 1)
        def _finalize():
            y = acc_ref[...] + b_ref[...]
            if apply_relu:
                y = jnp.maximum(y, 0.0)
            o_ref[0] = y.astype(o_ref.dtype)

    return kernel


def conv3x3_bn_act(x, w, scale, bias, *, stride, dilation, relu=False,
                   out_dtype=jnp.bfloat16):
    """x: (N, D, H, W, Cin) channels-last bf16; w: (Cout, Cin, 3, 3, 3).
    padding == dilation (as in the PyTorch module)."""
    N, D, H, W, Cin = x.shape
    Cout = w.shape[0]
    s, dil, pad = stride, dilation, dilation
    Do = (D - 1) // s + 1
    Ho = (H - 1) // s + 1
    Wo = (W - 1) // s + 1

    xp = jnp.pad(x.astype(jnp.bfloat16),
                 ((0, 0), (pad, pad), (pad, pad), (pad, pad), (0, 0)))
    Dp, Hp, Wp = D + 2 * pad, H + 2 * pad, W + 2 * pad
    if s > 1:
        # parity (phase) decomposition so strided taps become contiguous slices
        Hq, Wq = _round_up(Hp, s), _round_up(Wp, s)
        xp = jnp.pad(xp, ((0, 0), (0, 0), (0, Hq - Hp), (0, Wq - Wp), (0, 0)))
        xq = xp.reshape(N, Dp, Hq // s, s, Wq // s, s, Cin)
        xq = xq.transpose(0, 1, 3, 5, 2, 4, 6)
        Hs, Ws = Hq // s, Wq // s
        xq = xq.reshape(N * Dp * s * s, Hs, Ws, Cin)
    else:
        Hs, Ws = Hp, Wp
        xq = xp.reshape(N * Dp, Hs, Ws, Cin)

    # Fold BN scale into the weight; rows ordered (kd, kh, kw, Cin).
    wq = w.transpose(2, 3, 4, 1, 0) * scale.reshape(1, 1, 1, 1, Cout)
    wq = wq.reshape(3, 9 * Cin, Cout).astype(jnp.bfloat16)
    bq = bias.reshape(1, Cout).astype(jnp.float32)

    out = pl.pallas_call(
        _make_conv3_kernel(s, dil, Ho, Wo, Cin, relu),
        out_shape=jax.ShapeDtypeStruct((N * Do, Ho * Wo, Cout), out_dtype),
        grid=(N, Do, 3),
        in_specs=[
            # one padded (parity-split) input plane per (n, do, kd)
            pl.BlockSpec((s * s, Hs, Ws, Cin),
                         lambda n, do, kd: (n * Dp + do * s + kd * dil, 0, 0, 0)),
            pl.BlockSpec((1, 9 * Cin, Cout), lambda n, do, kd: (kd, 0, 0)),
            pl.BlockSpec((1, Cout), lambda n, do, kd: (0, 0)),
        ],
        out_specs=pl.BlockSpec((1, Ho * Wo, Cout),
                               lambda n, do, kd: (n * Do + do, 0, 0)),
        scratch_shapes=[pltpu.VMEM((Ho * Wo, Cout), jnp.float32)],
        compiler_params=pltpu.CompilerParams(
            dimension_semantics=("parallel", "parallel", "arbitrary")),
    )(xq, wq, bq)
    return out.reshape(N, Do, Ho, Wo, Cout)


# ----------------------------------------------------------------------------
# Bottleneck forward (stride / dilation / downsample-presence are static)
# ----------------------------------------------------------------------------
def bottleneck_forward(x_ncdhw, params, *, stride=1, dilation=1):
    # single NCDHW -> NDHWC conversion + one bf16 cast on entry
    x = jnp.transpose(x_ncdhw.astype(jnp.bfloat16), (0, 2, 3, 4, 1))
    N, D, H, W, Cin = x.shape
    c_out = params["w3"].shape[0]

    out = conv1x1_bn_act(x, params["w1"], *params["bn1"], relu=True)
    out = conv3x3_bn_act(out, params["w2"], *params["bn2"],
                         stride=stride, dilation=dilation, relu=True)
    No, Do, Ho, Wo, Cmid = out.shape

    if "down_w" in params:
        identity = conv1x1_bn_act(x, params["down_w"], *params["down_bn"],
                                  stride=stride, relu=False)
        identity2d = identity.reshape(N * Do * Ho * Wo, c_out)
    else:
        identity2d = x.reshape(N * D * H * W, Cin)          # Cin == c_out here

    # conv3 + bn3 + residual add + final ReLU fused into one kernel epilogue
    y = conv1x1_bn_act(out, params["w3"], *params["bn3"], relu=True,
                       residual=identity2d, out_dtype=jnp.float32)
    return jnp.transpose(y, (0, 4, 1, 2, 3))                # NDHWC -> NCDHW once


# ----------------------------------------------------------------------------
# Parameter init (matches PyTorch shapes & init rules, BN in eval mode)
# ----------------------------------------------------------------------------
def _kaiming(key, shape):
    # kaiming_normal_(mode='fan_out', nonlinearity='relu'): std = sqrt(2/fan_out)
    fan_out = shape[0] * shape[2] * shape[3] * shape[4]
    std = math.sqrt(2.0 / fan_out)
    return jax.random.normal(key, shape, jnp.float32) * std


def _bn_fold(c, eps=1e-5):
    gamma = jnp.ones((c,), jnp.float32)
    beta = jnp.zeros((c,), jnp.float32)
    mean = jnp.zeros((c,), jnp.float32)
    var = jnp.ones((c,), jnp.float32)
    scale = gamma / jnp.sqrt(var + eps)
    bias = beta - mean * scale
    return scale, bias


def init_bottleneck_params(key, inplanes, planes, *, stride=1, with_downsample=None):
    expansion = 4
    if with_downsample is None:
        with_downsample = (stride != 1 or inplanes != planes * expansion)
    k1, k2, k3, k4 = jax.random.split(key, 4)
    params = {
        "w1": _kaiming(k1, (planes, inplanes, 1, 1, 1)),
        "bn1": _bn_fold(planes),
        "w2": _kaiming(k2, (planes, planes, 3, 3, 3)),
        "bn2": _bn_fold(planes),
        "w3": _kaiming(k3, (planes * expansion, planes, 1, 1, 1)),
        "bn3": _bn_fold(planes * expansion),
    }
    if with_downsample:
        params["down_w"] = _kaiming(k4, (planes * expansion, inplanes, 1, 1, 1))
        params["down_bn"] = _bn_fold(planes * expansion)
    return params


# ----------------------------------------------------------------------------
# Pure-JAX reference (f32) for correctness check
# ----------------------------------------------------------------------------
def _ref_conv3d(x, w, stride, padding, dilation):
    return jax.lax.conv_general_dilated(
        x, w, window_strides=(stride,) * 3,
        padding=[(padding, padding)] * 3,
        rhs_dilation=(dilation,) * 3,
        dimension_numbers=("NCDHW", "OIDHW", "NCDHW"))


def _ref_bn(x, scale, bias):
    return x * scale.reshape(1, -1, 1, 1, 1) + bias.reshape(1, -1, 1, 1, 1)


def ref_bottleneck(x, params, stride, dilation):
    if "down_w" in params:
        identity = _ref_bn(_ref_conv3d(x, params["down_w"], stride, 0, 1),
                           *params["down_bn"])
    else:
        identity = x
    out = jax.nn.relu(_ref_bn(_ref_conv3d(x, params["w1"], 1, 0, 1), *params["bn1"]))
    out = jax.nn.relu(_ref_bn(_ref_conv3d(out, params["w2"], stride, dilation, dilation),
                              *params["bn2"]))
    out = _ref_bn(_ref_conv3d(out, params["w3"], 1, 0, 1), *params["bn3"])
    return jax.nn.relu(out + identity)


# ----------------------------------------------------------------------------
if __name__ == "__main__":
    key = jax.random.PRNGKey(0)
    kp1, kp2, kx1, kx2 = jax.random.split(key, 4)

    # Config A: stride-2 bottleneck with a strided 1x1x1 downsample branch.
    inpl_a, planes_a, stride_a, dil_a = 32, 16, 2, 1
    params_a = init_bottleneck_params(kp1, inpl_a, planes_a, stride=stride_a)
    x_a = jax.random.normal(kx1, (2, inpl_a, 8, 16, 16), jnp.float32)
    fwd_a = jax.jit(partial(bottleneck_forward, stride=stride_a, dilation=dil_a))
    out_a = jax.block_until_ready(fwd_a(x_a, params_a))
    assert out_a.shape == (2, planes_a * 4, 4, 8, 8), out_a.shape
    assert bool(jnp.all(jnp.isfinite(out_a)))
    ref_a = ref_bottleneck(x_a, params_a, stride_a, dil_a)
    err_a = float(jnp.max(jnp.abs(out_a - ref_a)))
    assert bool(jnp.allclose(out_a, ref_a, atol=1e-1, rtol=1e-1)), err_a

    # Config B: identity shortcut (inplanes == planes*4), stride 1, dilation 2.
    inpl_b, planes_b, stride_b, dil_b = 64, 16, 1, 2
    params_b = init_bottleneck_params(kp2, inpl_b, planes_b, stride=stride_b)
    x_b = jax.random.normal(kx2, (2, inpl_b, 8, 16, 16), jnp.float32)
    fwd_b = jax.jit(partial(bottleneck_forward, stride=stride_b, dilation=dil_b))
    out_b = jax.block_until_ready(fwd_b(x_b, params_b))
    assert out_b.shape == (2, planes_b * 4, 8, 16, 16), out_b.shape
    assert bool(jnp.all(jnp.isfinite(out_b)))
    ref_b = ref_bottleneck(x_b, params_b, stride_b, dil_b)
    err_b = float(jnp.max(jnp.abs(out_b - ref_b)))
    assert bool(jnp.allclose(out_b, ref_b, atol=1e-1, rtol=1e-1)), err_b

    print("KERNEL_OK")
</pallas_src>

<mosaic_0001>
module attributes {stable_mosaic.version = 11 : i64} {
  func.func @kernel(%arg0: i32, %arg1: memref<512x32xbf16, #tpu.memory_space<vmem>>, %arg2: memref<32x16xbf16, #tpu.memory_space<vmem>>, %arg3: memref<1x16xf32, #tpu.memory_space<vmem>>, %arg4: memref<512x16xbf16, #tpu.memory_space<vmem>>) attributes {dimension_semantics = [#tpu.dimension_semantics<parallel>], iteration_bounds = array<i64: 8>, scalar_prefetch = 0 : i64, scratch_operands = 0 : i64, tpu.core_type = #tpu.core_type<tc>, window_params = [{transform_indices = @transform_0, window_bounds = array<i64: 512, 32>}, {pipeline_mode = #tpu.pipeline_mode<synchronous>, transform_indices = @transform_1, window_bounds = array<i64: 32, 16>}, {pipeline_mode = #tpu.pipeline_mode<synchronous>, transform_indices = @transform_2, window_bounds = array<i64: 1, 16>}, {transform_indices = @transform_3, window_bounds = array<i64: 512, 16>}]} {
    %c0 = arith.constant 0 : index
    %c0_0 = arith.constant 0 : index
    %0 = vector.load %arg1[%c0, %c0_0] : memref<512x32xbf16, #tpu.memory_space<vmem>>, vector<512x32xbf16>
    %c0_1 = arith.constant 0 : index
    %c0_2 = arith.constant 0 : index
    %1 = vector.load %arg2[%c0_1, %c0_2] : memref<32x16xbf16, #tpu.memory_space<vmem>>, vector<32x16xbf16>
    %cst = arith.constant dense<0.000000e+00> : vector<512x16xf32>
    %2 = tpu.matmul %0, %1, %cst {dimension_numbers = #tpu.dot_dimension_numbers<[1], [0], [0], [1], [0, 0, 1, 1], [], []>} : vector<512x32xbf16>, vector<32x16xbf16>, vector<512x16xf32> -> vector<512x16xf32>
    %c0_3 = arith.constant 0 : index
    %c0_4 = arith.constant 0 : index
    %3 = vector.load %arg3[%c0_3, %c0_4] : memref<1x16xf32, #tpu.memory_space<vmem>>, vector<1x16xf32>
    %4 = vector.broadcast %3 : vector<1x16xf32> to vector<512x16xf32>
    %5 = arith.addf %2, %4 : vector<512x16xf32>
    %cst_5 = arith.constant 0.000000e+00 : f32
    %6 = vector.broadcast %cst_5 : f32 to vector<512x16xf32>
    %7 = arith.maximumf %5, %6 : vector<512x16xf32>
    %8 = arith.truncf %7 : vector<512x16xf32> to vector<512x16xbf16>
    %c0_6 = arith.constant 0 : index
    %c0_7 = arith.constant 0 : index
    %9 = vector.load %arg4[%c0_6, %c0_7] : memref<512x16xbf16, #tpu.memory_space<vmem>>, vector<512x16xbf16>
    tpu.vector_store %arg4[%c0_6, %c0_7], %8 {strides = array<i32>} : memref<512x16xbf16, #tpu.memory_space<vmem>>, vector<512x16xbf16>,
    return
  }
  func.func @transform_0(%arg0: i32) -> (i32, i32) {
    %c0_i32 = arith.constant 0 : i32
    %c0_i32_0 = arith.constant 0 : i32
    return %arg0, %c0_i32 : i32, i32
  }
  func.func @transform_1(%arg0: i32) -> (i32, i32) {
    %c0_i32 = arith.constant 0 : i32
    %c0_i32_0 = arith.constant 0 : i32
    %c0_i32_1 = arith.constant 0 : i32
    return %c0_i32, %c0_i32_0 : i32, i32
  }
  func.func @transform_2(%arg0: i32) -> (i32, i32) {
    %c0_i32 = arith.constant 0 : i32
    %c0_i32_0 = arith.constant 0 : i32
    %c0_i32_1 = arith.constant 0 : i32
    return %c0_i32, %c0_i32_0 : i32, i32
  }
  func.func @transform_3(%arg0: i32) -> (i32, i32) {
    %c0_i32 = arith.constant 0 : i32
    %c0_i32_0 = arith.constant 0 : i32
    return %arg0, %c0_i32 : i32, i32
  }
}

module attributes {stable_mosaic.version = 11 : i64} {
  func.func @kernel(%arg0: i32, %arg1: i32, %arg2: i32, %arg3: memref<4x9x9x16xbf16, #tpu.memory_space<vmem>>, %arg4: memref<1x144x16xbf16, #tpu.memory_space<vmem>>, %arg5: memref<1x16xf32, #tpu.memory_space<vmem>>, %arg6: memref<1x64x16xbf16, #tpu.memory_space<vmem>>, %arg7: memref<64x16xf32, #tpu.memory_space<vmem>>) attributes {dimension_semantics = [#tpu.dimension_semantics<parallel>, #tpu.dimension_semantics<parallel>, #tpu.dimension_semantics<arbitrary>], iteration_bounds = array<i64: 2, 4, 3>, scalar_prefetch = 0 : i64, scratch_operands = 1 : i64, tpu.core_type = #tpu.core_type<tc>, window_params = [{transform_indices = @transform_0, window_bounds = array<i64: 4, 9, 9, 16>}, {transform_indices = @transform_1, window_bounds = array<i64: 1, 144, 16>}, {pipeline_mode = #tpu.pipeline_mode<synchronous>, transform_indices = @transform_2, window_bounds = array<i64: 1, 16>}, {transform_indices = @transform_3, window_bounds = array<i64: 1, 64, 16>}]} {
    %c0_i32 = arith.constant 0 : i32
    %0 = arith.cmpi eq, %arg2, %c0_i32 : i32
    %1 = arith.extui %0 : i1 to i32
    %c0_i32_0 = arith.constant 0 : i32
    %2 = arith.cmpi ne, %1, %c0_i32_0 : i32
    scf.if %2 {
      %cst_65 = arith.constant 0.000000e+00 : f32
      %71 = vector.broadcast %cst_65 : f32 to vector<64x16xf32>
      %c0_66 = arith.constant 0 : index
      %c0_67 = arith.constant 0 : index
      %72 = vector.load %arg7[%c0_66, %c0_67] : memref<64x16xf32, #tpu.memory_space<vmem>>, vector<64x16xf32>
      tpu.vector_store %arg7[%c0_66, %c0_67], %71 {strides = array<i32>} : memref<64x16xf32, #tpu.memory_space<vmem>>, vector<64x16xf32>,
    } else {
    }
    %c0 = arith.constant 0 : index
    %c0_1 = arith.constant 0 : index
    %c0_2 = arith.constant 0 : index
    %c0_3 = arith.constant 0 : index
    %3 = vector.load %arg3[%c0, %c0_1, %c0_2, %c0_3] : memref<4x9x9x16xbf16, #tpu.memory_space<vmem>>, vector<1x8x8x16xbf16>
    %4 = vector.shape_cast %3 : vector<1x8x8x16xbf16> to vector<8x8x16xbf16>
    %5 = vector.shape_cast %4 : vector<8x8x16xbf16> to vector<64x16xbf16>
    %c0_4 = arith.constant 0 : index
    %c0_5 = arith.constant 0 : index
    %c0_6 = arith.constant 0 : index
    %6 = vector.load %arg4[%c0_4, %c0_5, %c0_6] : memref<1x144x16xbf16, #tpu.memory_space<vmem>>, vector<1x16x16xbf16>
    %7 = vector.shape_cast %6 : vector<1x16x16xbf16> to vector<16x16xbf16>
    %cst = arith.constant dense<0.000000e+00> : vector<64x16xf32>
    %8 = tpu.matmul %5, %7, %cst {dimension_numbers = #tpu.dot_dimension_numbers<[1], [0], [0], [1], [0, 0, 1, 1], [], []>} : vector<64x16xbf16>, vector<16x16xbf16>, vector<64x16xf32> -> vector<64x16xf32>
    %c1 = arith.constant 1 : index
    %c0_7 = arith.constant 0 : index
    %c0_8 = arith.constant 0 : index
    %c0_9 = arith.constant 0 : index
    %9 = vector.load %arg3[%c1, %c0_7, %c0_8, %c0_9] : memref<4x9x9x16xbf16, #tpu.memory_space<vmem>>, vector<1x8x8x16xbf16>
    %10 = vector.shape_cast %9 : vector<1x8x8x16xbf16> to vector<8x8x16xbf16>
    %11 = vector.shape_cast %10 : vector<8x8x16xbf16> to vector<64x16xbf16>
    %c0_10 = arith.constant 0 : index
    %c16 = arith.constant 16 : index
    %c0_11 = arith.constant 0 : index
    %12 = vector.load %arg4[%c0_10, %c16, %c0_11] : memref<1x144x16xbf16, #tpu.memory_space<vmem>>, vector<1x16x16xbf16>
    %13 = vector.shape_cast %12 : vector<1x16x16xbf16> to vector<16x16xbf16>
    %cst_12 = arith.constant dense<0.000000e+00> : vector<64x16xf32>
    %14 = tpu.matmul %11, %13, %cst_12 {dimension_numbers = #tpu.dot_dimension_numbers<[1], [0], [0], [1], [0, 0, 1, 1], [], []>} : vector<64x16xbf16>, vector<16x16xbf16>, vector<64x16xf32> -> vector<64x16xf32>
    %15 = arith.addf %8, %14 : vector<64x16xf32>
    %c0_13 = arith.constant 0 : index
    %c0_14 = arith.constant 0 : index
    %c1_15 = arith.constant 1 : index
    %c0_16 = arith.constant 0 : index
    %16 = vector.load %arg3[%c0_13, %c0_14, %c1_15, %c0_16] : memref<4x9x9x16xbf16, #tpu.memory_space<vmem>>, vector<1x8x8x16xbf16>
    %17 = vector.shape_cast %16 : vector<1x8x8x16xbf16> to vector<8x8x16xbf16>
    %18 = vector.shape_cast %17 : vector<8x8x16xbf16> to vector<64x16xbf16>
    %c0_17 = arith.constant 0 : index
    %c32 = arith.constant 32 : index
    %c0_18 = arith.constant 0 : index
    %19 = vector.load %arg4[%c0_17, %c32, %c0_18] : memref<1x144x16xbf16, #tpu.memory_space<vmem>>, vector<1x16x16xbf16>
    %20 = vector.shape_cast %19 : vector<1x16x16xbf16> to vector<16x16xbf16>
    %cst_19 = arith.constant dense<0.000000e+00> : vector<64x16xf32>
    %21 = tpu.matmul %18, %20, %cst_19 {dimension_numbers = #tpu.dot_dimension_numbers<[1], [0], [0], [1], [0, 0, 1, 1], [], []>} : vector<64x16xbf16>, vector<16x16xbf16>, vector<64x16xf32> -> vector<64x16xf32>
    %22 = arith.addf %15, %21 : vector<64x16xf32>
    %c2 = arith.constant 2 : index
    %c0_20 = arith.constant 0 : index
    %c0_21 = arith.constant 0 : index
    %c0_22 = arith.constant 0 : index
    %23 = vector.load %arg3[%c2, %c0_20, %c0_21, %c0_22] : memref<4x9x9x16xbf16, #tpu.memory_space<vmem>>, vector<1x8x8x16xbf16>
    %24 = vector.shape_cast %23 : vector<1x8x8x16xbf16> to vector<8x8x16xbf16>
    %25 = vector.shape_cast %24 : vector<8x8x16xbf16> to vector<64x16xbf16>
    %c0_23 = arith.constant 0 : index
    %c48 = arith.constant 48 : index
    %c0_24 = arith.constant 0 : index
    %26 = vector.load %arg4[%c0_23, %c48, %c0_24] : memref<1x144x16xbf16, #tpu.memory_space<vmem>>, vector<1x16x16xbf16>
    %27 = vector.shape_cast %26 : vector<1x16x16xbf16> to vector<16x16xbf16>
    %cst_25 = arith.constant dense<0.000000e+00> : vector<64x16xf32>
    %28 = tpu.matmul %25, %27, %cst_25 {dimension_numbers = #tpu.dot_dimension_numbers<[1], [0], [0], [1], [0, 0, 1, 1], [], []>} : vector<64x16xbf16>, vector<16x16xbf16>, vector<64x16xf32> -> vector<64x16xf32>
    %29 = arith.addf %22, %28 : vector<64x16xf32>
    %c3 = arith.constant 3 : index
    %c0_26 = arith.constant 0 : index
    %c0_27 = arith.constant 0 : index
    %c0_28 = arith.constant 0 : index
    %30 = vector.load %arg3[%c3, %c0_26, %c0_27, %c0_28] : memref<4x9x9x16xbf16, #tpu.memory_space<vmem>>, vector<1x8x8x16xbf16>
    %31 = vector.shape_cast %30 : vector<1x8x8x16xbf16> to vector<8x8x16xbf16>
    %32 = vector.shape_cast %31 : vector<8x8x16xbf16> to vector<64x16xbf16>
    %c0_29 = arith.constant 0 : index
    %c64 = arith.constant 64 : index
    %c0_30 = arith.constant 0 : index
    %33 = vector.load %arg4[%c0_29, %c64, %c0_30] : memref<1x144x16xbf16, #tpu.memory_space<vmem>>, vector<1x16x16xbf16>
    %34 = vector.shape_cast %33 : vector<1x16x16xbf16> to vector<16x16xbf16>
    %cst_31 = arith.constant dense<0.000000e+00> : vector<64x16xf32>
    %35 = tpu.matmul %32, %34, %cst_31 {dimension_numbers = #tpu.dot_dimension_numbers<[1], [0], [0], [1], [0, 0, 1, 1], [], []>} : vector<64x16xbf16>, vector<16x16xbf16>, vector<64x16xf32> -> vector<64x16xf32>
    %36 = arith.addf %29, %35 : vector<64x16xf32>
    %c2_32 = arith.constant 2 : index
    %c0_33 = arith.constant 0 : index
    %c1_34 = arith.constant 1 : index
    %c0_35 = arith.constant 0 : index
    %37 = vector.load %arg3[%c2_32, %c0_33, %c1_34, %c0_35] : memref<4x9x9x16xbf16, #tpu.memory_space<vmem>>, vector<1x8x8x16xbf16>
    %38 = vector.shape_cast %37 : vector<1x8x8x16xbf16> to vector<8x8x16xbf16>
    %39 = vector.shape_cast %38 : vector<8x8x16xbf16> to vector<64x16xbf16>
    %c0_36 = arith.constant 0 : index
    %c80 = arith.constant 80 : index
    %c0_37 = arith.constant 0 : index
    %40 = vector.load %arg4[%c0_36, %c80, %c0_37] : memref<1x144x16xbf16, #tpu.memory_space<vmem>>, vector<1x16x16xbf16>
    %41 = vector.shape_cast %40 : vector<1x16x16xbf16> to vector<16x16xbf16>
    %cst_38 = arith.constant dense<0.000000e+00> : vector<64x16xf32>
    %42 = tpu.matmul %39, %41, %cst_38 {dimension_numbers = #tpu.dot_dimension_numbers<[1], [0], [0], [1], [0, 0, 1, 1], [], []>} : vector<64x16xbf16>, vector<16x16xbf16>, vector<64x16xf32> -> vector<64x16xf32>
    %43 = arith.addf %36, %42 : vector<64x16xf32>
    %c0_39 = arith.constant 0 : index
    %c1_40 = arith.constant 1 : index
    %c0_41 = arith.constant 0 : index
    %c0_42 = arith.constant 0 : index
    %44 = vector.load %arg3[%c0_39, %c1_40, %c0_41, %c0_42] : memref<4x9x9x16xbf16, #tpu.memory_space<vmem>>, vector<1x8x8x16xbf16>
    %45 = vector.shape_cast %44 : vector<1x8x8x16xbf16> to vector<8x8x16xbf16>
    %46 = vector.shape_cast %45 : vector<8x8x16xbf16> to vector<64x16xbf16>
    %c0_43 = arith.constant 0 : index
    %c96 = arith.constant 96 : index
    %c0_44 = arith.constant 0 : index
    %47 = vector.load %arg4[%c0_43, %c96, %c0_44] : memref<1x144x16xbf16, #tpu.memory_space<vmem>>, vector<1x16x16xbf16>
    %48 = vector.shape_cast %47 : vector<1x16x16xbf16> to vector<16x16xbf16>
    %cst_45 = arith.constant dense<0.000000e+00> : vector<64x16xf32>
    %49 = tpu.matmul %46, %48, %cst_45 {dimension_numbers = #tpu.dot_dimension_numbers<[1], [0], [0], [1], [0, 0, 1, 1], [], []>} : vector<64x16xbf16>, vector<16x16xbf16>, vector<64x16xf32> -> vector<64x16xf32>
    %50 = arith.addf %43, %49 : vector<64x16xf32>
    %c1_46 = arith.constant 1 : index
    %c1_47 = arith.constant 1 : index
    %c0_48 = arith.constant 0 : index
    %c0_49 = arith.constant 0 : index
    %51 = vector.load %arg3[%c1_46, %c1_47, %c0_48, %c0_49] : memref<4x9x9x16xbf16, #tpu.memory_space<vmem>>, vector<1x8x8x16xbf16>
    %52 = vector.shape_cast %51 : vector<1x8x8x16xbf16> to vector<8x8x16xbf16>
    %53 = vector.shape_cast %52 : vector<8x8x16xbf16> to vector<64x16xbf16>
    %c0_50 = arith.constant 0 : index
    %c112 = arith.constant 112 : index
    %c0_51 = arith.constant 0 : index
    %54 = vector.load %arg4[%c0_50, %c112, %c0_51] : memref<1x144x16xbf16, #tpu.memory_space<vmem>>, vector<1x16x16xbf16>
    %55 = vector.shape_cast %54 : vector<1x16x16xbf16> to vector<16x16xbf16>
    %cst_52 = arith.constant dense<0.000000e+00> : vector<64x16xf32>
    %56 = tpu.matmul %53, %55, %cst_52 {dimension_numbers = #tpu.dot_dimension_numbers<[1], [0], [0], [1], [0, 0, 1, 1], [], []>} : vector<64x16xbf16>, vector<16x16xbf16>, vector<64x16xf32> -> vector<64x16xf32>
    %57 = arith.addf %50, %56 : vector<64x16xf32>
    %c0_53 = arith.constant 0 : index
    %c1_54 = arith.constant 1 : index
    %c1_55 = arith.constant 1 : index
    %c0_56 = arith.constant 0 : index
    %58 = vector.load %arg3[%c0_53, %c1_54, %c1_55, %c0_56] : memref<4x9x9x16xbf16, #tpu.memory_space<vmem>>, vector<1x8x8x16xbf16>
    %59 = vector.shape_cast %58 : vector<1x8x8x16xbf16> to vector<8x8x16xbf16>
    %60 = vector.shape_cast %59 : vector<8x8x16xbf16> to vector<64x16xbf16>
    %c0_57 = arith.constant 0 : index
    %c128 = arith.constant 128 : index
    %c0_58 = arith.constant 0 : index
    %61 = vector.load %arg4[%c0_57, %c128, %c0_58] : memref<1x144x16xbf16, #tpu.memory_space<vmem>>, vector<1x16x16xbf16>
    %62 = vector.shape_cast %61 : vector<1x16x16xbf16> to vector<16x16xbf16>
    %cst_59 = arith.constant dense<0.000000e+00> : vector<64x16xf32>
    %63 = tpu.matmul %60, %62, %cst_59 {dimension_numbers = #tpu.dot_dimension_numbers<[1], [0], [0], [1], [0, 0, 1, 1], [], []>} : vector<64x16xbf16>, vector<16x16xbf16>, vector<64x16xf32> -> vector<64x16xf32>
    %64 = arith.addf %57, %63 : vector<64x16xf32>
    %c0_60 = arith.constant 0 : index
    %c0_61 = arith.constant 0 : index
    %65 = vector.load %arg7[%c0_60, %c0_61] : memref<64x16xf32, #tpu.memory_space<vmem>>, vector<64x16xf32>
    %66 = arith.addf %65, %64 : vector<64x16xf32>
    %c0_62 = arith.constant 0 : index
    %c0_63 = arith.constant 0 : index
    %67 = vector.load %arg7[%c0_62, %c0_63] : memref<64x16xf32, #tpu.memory_space<vmem>>, vector<64x16xf32>
    tpu.vector_store %arg7[%c0_62, %c0_63], %66 {strides = array<i32>} : memref<64x16xf32, #tpu.memory_space<vmem>>, vector<64x16xf32>,
    %c2_i32 = arith.constant 2 : i32
    %68 = arith.cmpi eq, %arg2, %c2_i32 : i32
    %69 = arith.extui %68 : i1 to i32
    %c0_i32_64 = arith.constant 0 : i32
    %70 = arith.cmpi ne, %69, %c0_i32_64 : i32
    scf.if %70 {
      %c0_65 = arith.constant 0 : index
      %c0_66 = arith.constant 0 : index
      %71 = vector.load %arg7[%c0_65, %c0_66] : memref<64x16xf32, #tpu.memory_space<vmem>>, vector<64x16xf32>
      %c0_67 = arith.constant 0 : index
      %c0_68 = arith.constant 0 : index
      %72 = vector.load %arg5[%c0_67, %c0_68] : memref<1x16xf32, #tpu.memory_space<vmem>>, vector<1x16xf32>
      %73 = vector.broadcast %72 : vector<1x16xf32> to vector<64x16xf32>
      %74 = arith.addf %71, %73 : vector<64x16xf32>
      %cst_69 = arith.constant 0.000000e+00 : f32
      %75 = vector.broadcast %cst_69 : f32 to vector<64x16xf32>
      %76 = arith.maximumf %74, %75 : vector<64x16xf32>
      %77 = arith.truncf %76 : vector<64x16xf32> to vector<64x16xbf16>
      %c0_70 = arith.constant 0 : index
      %c0_71 = arith.constant 0 : index
      %c0_72 = arith.constant 0 : index
      %78 = vector.load %arg6[%c0_70, %c0_71, %c0_72] : memref<1x64x16xbf16, #tpu.memory_space<vmem>>, vector<1x64x16xbf16>
      %79 = vector.shape_cast %78 : vector<1x64x16xbf16> to vector<64x16xbf16>
      %80 = vector.shape_cast %77 : vector<64x16xbf16> to vector<1x64x16xbf16>
      tpu.vector_store %arg6[%c0_70, %c0_71, %c0_72], %80 {strides = array<i32>} : memref<1x64x16xbf16, #tpu.memory_space<vmem>>, vector<1x64x16xbf16>,
    } else {
    }
    return
  }
  func.func @transform_0(%arg0: i32, %arg1: i32, %arg2: i32) -> (i32, i32, i32, i32) {
    %c10_i32 = arith.constant 10 : i32
    %0 = arith.muli %arg0, %c10_i32 : i32
    %c2_i32 = arith.constant 2 : i32
    %1 = arith.muli %arg1, %c2_i32 : i32
    %2 = arith.addi %0, %1 : i32
    %c1_i32 = arith.constant 1 : i32
    %3 = arith.muli %arg2, %c1_i32 : i32
    %4 = arith.addi %2, %3 : i32
    %c0_i32 = arith.constant 0 : i32
    %c0_i32_0 = arith.constant 0 : i32
    %c0_i32_1 = arith.constant 0 : i32
    %c0_i32_2 = arith.constant 0 : i32
    return %4, %c0_i32, %c0_i32_0, %c0_i32_1 : i32, i32, i32, i32
  }
  func.func @transform_1(%arg0: i32, %arg1: i32, %arg2: i32) -> (i32, i32, i32) {
    %c0_i32 = arith.constant 0 : i32
    %c0_i32_0 = arith.constant 0 : i32
    %c0_i32_1 = arith.constant 0 : i32
    return %arg2, %c0_i32, %c0_i32_0 : i32, i32, i32
  }
  func.func @transform_2(%arg0: i32, %arg1: i32, %arg2: i32) -> (i32, i32) {
    %c0_i32 = arith.constant 0 : i32
    %c0_i32_0 = arith.constant 0 : i32
    %c0_i32_1 = arith.constant 0 : i32
    return %c0_i32, %c0_i32_0 : i32, i32
  }
  func.func @transform_3(%arg0: i32, %arg1: i32, %arg2: i32) -> (i32, i32, i32) {
    %c4_i32 = arith.constant 4 : i32
    %0 = arith.muli %arg0, %c4_i32 : i32
    %1 = arith.addi %0, %arg1 : i32
    %c0_i32 = arith.constant 0 : i32
    %c0_i32_0 = arith.constant 0 : i32
    %c0_i32_1 = arith.constant 0 : i32
    return %1, %c0_i32, %c0_i32_0 : i32, i32, i32
  }
}

module attributes {stable_mosaic.version = 11 : i64} {
  func.func @kernel(%arg0: i32, %arg1: memref<512x32xbf16, #tpu.memory_space<vmem>>, %arg2: memref<32x64xbf16, #tpu.memory_space<vmem>>, %arg3: memref<1x64xf32, #tpu.memory_space<vmem>>, %arg4: memref<512x64xbf16, #tpu.memory_space<vmem>>) attributes {dimension_semantics = [#tpu.dimension_semantics<parallel>], iteration_bounds = array<i64: 1>, scalar_prefetch = 0 : i64, scratch_operands = 0 : i64, tpu.core_type = #tpu.core_type<tc>, window_params = [{transform_indices = @transform_0, window_bounds = array<i64: 512, 32>}, {pipeline_mode = #tpu.pipeline_mode<synchronous>, transform_indices = @transform_1, window_bounds = array<i64: 32, 64>}, {pipeline_mode = #tpu.pipeline_mode<synchronous>, transform_indices = @transform_2, window_bounds = array<i64: 1, 64>}, {transform_indices = @transform_3, window_bounds = array<i64: 512, 64>}]} {
    %c0 = arith.constant 0 : index
    %c0_0 = arith.constant 0 : index
    %0 = vector.load %arg1[%c0, %c0_0] : memref<512x32xbf16, #tpu.memory_space<vmem>>, vector<512x32xbf16>
    %c0_1 = arith.constant 0 : index
    %c0_2 = arith.constant 0 : index
    %1 = vector.load %arg2[%c0_1, %c0_2] : memref<32x64xbf16, #tpu.memory_space<vmem>>, vector<32x64xbf16>
    %cst = arith.constant dense<0.000000e+00> : vector<512x64xf32>
    %2 = tpu.matmul %0, %1, %cst {dimension_numbers = #tpu.dot_dimension_numbers<[1], [0], [0], [1], [0, 0, 1, 1], [], []>} : vector<512x32xbf16>, vector<32x64xbf16>, vector<512x64xf32> -> vector<512x64xf32>
    %c0_3 = arith.constant 0 : index
    %c0_4 = arith.constant 0 : index
    %3 = vector.load %arg3[%c0_3, %c0_4] : memref<1x64xf32, #tpu.memory_space<vmem>>, vector<1x64xf32>
    %4 = vector.broadcast %3 : vector<1x64xf32> to vector<512x64xf32>
    %5 = arith.addf %2, %4 : vector<512x64xf32>
    %6 = arith.truncf %5 : vector<512x64xf32> to vector<512x64xbf16>
    %c0_5 = arith.constant 0 : index
    %c0_6 = arith.constant 0 : index
    %7 = vector.load %arg4[%c0_5, %c0_6] : memref<512x64xbf16, #tpu.memory_space<vmem>>, vector<512x64xbf16>
    tpu.vector_store %arg4[%c0_5, %c0_6], %6 {strides = array<i32>} : memref<512x64xbf16, #tpu.memory_space<vmem>>, vector<512x64xbf16>,
    return
  }
  func.func @transform_0(%arg0: i32) -> (i32, i32) {
    %c0_i32 = arith.constant 0 : i32
    %c0_i32_0 = arith.constant 0 : i32
    return %arg0, %c0_i32 : i32, i32
  }
  func.func @transform_1(%arg0: i32) -> (i32, i32) {
    %c0_i32 = arith.constant 0 : i32
    %c0_i32_0 = arith.constant 0 : i32
    %c0_i32_1 = arith.constant 0 : i32
    return %c0_i32, %c0_i32_0 : i32, i32
  }
  func.func @transform_2(%arg0: i32) -> (i32, i32) {
    %c0_i32 = arith.constant 0 : i32
    %c0_i32_0 = arith.constant 0 : i32
    %c0_i32_1 = arith.constant 0 : i32
    return %c0_i32, %c0_i32_0 : i32, i32
  }
  func.func @transform_3(%arg0: i32) -> (i32, i32) {
    %c0_i32 = arith.constant 0 : i32
    %c0_i32_0 = arith.constant 0 : i32
    return %arg0, %c0_i32 : i32, i32
  }
}

module attributes {stable_mosaic.version = 11 : i64} {
  func.func @kernel(%arg0: i32, %arg1: memref<512x16xbf16, #tpu.memory_space<vmem>>, %arg2: memref<16x64xbf16, #tpu.memory_space<vmem>>, %arg3: memref<1x64xf32, #tpu.memory_space<vmem>>, %arg4: memref<512x64xbf16, #tpu.memory_space<vmem>>, %arg5: memref<512x64xf32, #tpu.memory_space<vmem>>) attributes {dimension_semantics = [#tpu.dimension_semantics<parallel>], iteration_bounds = array<i64: 1>, scalar_prefetch = 0 : i64, scratch_operands = 0 : i64, tpu.core_type = #tpu.core_type<tc>, window_params = [{transform_indices = @transform_0, window_bounds = array<i64: 512, 16>}, {pipeline_mode = #tpu.pipeline_mode<synchronous>, transform_indices = @transform_1, window_bounds = array<i64: 16, 64>}, {pipeline_mode = #tpu.pipeline_mode<synchronous>, transform_indices = @transform_2, window_bounds = array<i64: 1, 64>}, {transform_indices = @transform_3, window_bounds = array<i64: 512, 64>}, {transform_indices = @transform_4, window_bounds = array<i64: 512, 64>}]} {
    %c0 = arith.constant 0 : index
    %c0_0 = arith.constant 0 : index
    %0 = vector.load %arg1[%c0, %c0_0] : memref<512x16xbf16, #tpu.memory_space<vmem>>, vector<512x16xbf16>
    %c0_1 = arith.constant 0 : index
    %c0_2 = arith.constant 0 : index
    %1 = vector.load %arg2[%c0_1, %c0_2] : memref<16x64xbf16, #tpu.memory_space<vmem>>, vector<16x64xbf16>
    %cst = arith.constant dense<0.000000e+00> : vector<512x64xf32>
    %2 = tpu.matmul %0, %1, %cst {dimension_numbers = #tpu.dot_dimension_numbers<[1], [0], [0], [1], [0, 0, 1, 1], [], []>} : vector<512x16xbf16>, vector<16x64xbf16>, vector<512x64xf32> -> vector<512x64xf32>
    %c0_3 = arith.constant 0 : index
    %c0_4 = arith.constant 0 : index
    %3 = vector.load %arg3[%c0_3, %c0_4] : memref<1x64xf32, #tpu.memory_space<vmem>>, vector<1x64xf32>
    %4 = vector.broadcast %3 : vector<1x64xf32> to vector<512x64xf32>
    %5 = arith.addf %2, %4 : vector<512x64xf32>
    %c0_5 = arith.constant 0 : index
    %c0_6 = arith.constant 0 : index
    %6 = vector.load %arg4[%c0_5, %c0_6] : memref<512x64xbf16, #tpu.memory_space<vmem>>, vector<512x64xbf16>
    %7 = arith.extf %6 : vector<512x64xbf16> to vector<512x64xf32>
    %8 = arith.addf %5, %7 : vector<512x64xf32>
    %cst_7 = arith.constant 0.000000e+00 : f32
    %9 = vector.broadcast %cst_7 : f32 to vector<512x64xf32>
    %10 = arith.maximumf %8, %9 : vector<512x64xf32>
    %c0_8 = arith.constant 0 : index
    %c0_9 = arith.constant 0 : index
    %11 = vector.load %arg5[%c0_8, %c0_9] : memref<512x64xf32, #tpu.memory_space<vmem>>, vector<512x64xf32>
    tpu.vector_store %arg5[%c0_8, %c0_9], %10 {strides = array<i32>} : memref<512x64xf32, #tpu.memory_space<vmem>>, vector<512x64xf32>,
    return
  }
  func.func @transform_0(%arg0: i32) -> (i32, i32) {
    %c0_i32 = arith.constant 0 : i32
    %c0_i32_0 = arith.constant 0 : i32
    return %arg0, %c0_i32 : i32, i32
  }
  func.func @transform_1(%arg0: i32) -> (i32, i32) {
    %c0_i32 = arith.constant 0 : i32
    %c0_i32_0 = arith.constant 0 : i32
    %c0_i32_1 = arith.constant 0 : i32
    return %c0_i32, %c0_i32_0 : i32, i32
  }
  func.func @transform_2(%arg0: i32) -> (i32, i32) {
    %c0_i32 = arith.constant 0 : i32
    %c0_i32_0 = arith.constant 0 : i32
    %c0_i32_1 = arith.constant 0 : i32
    return %c0_i32, %c0_i32_0 : i32, i32
  }
  func.func @transform_3(%arg0: i32) -> (i32, i32) {
    %c0_i32 = arith.constant 0 : i32
    %c0_i32_0 = arith.constant 0 : i32
    return %arg0, %c0_i32 : i32, i32
  }
  func.func @transform_4(%arg0: i32) -> (i32, i32) {
    %c0_i32 = arith.constant 0 : i32
    %c0_i32_0 = arith.constant 0 : i32
    return %arg0, %c0_i32 : i32, i32
  }
}

</mosaic_0001>

<bundles_post_ra>
// kernel: bottleneck_forward.4
= control target key start
LH: loop header
LB: loop body
LE: loop exit
PB: predicated region body
PF: predicated region fallthrough
CT: control target
= control target key end

     0   :  { %s1190_s12 = smov 0   ;;  %s1485_s0 = inlined_call_operand.vmem [shape: bf16[4096,32], index: 0, kind: input, shape index: {}]   ;;  %s1486_s1 = inlined_call_operand.vmem [shape: bf16[32,16], index: 1, kind: input, shape index: {}]   ;;  %s1487_s2 = inlined_call_operand.vmem [shape: f32[1,16], index: 2, kind: input, shape index: {}]   ;;  %s1488_s3 = inlined_call_operand.vmem [shape: bf16[4096,16], index: 3, kind: output, shape index: {}]  }
   0x1 LB: > { %s934_s13 = sadd.s32 4294967295, %s1168_s12   ;;  %p938_p0 = scmp.ge.s32.totalorder %s1168_s12, 1  ;;  %s1168_s12 = sphi %s1190_s12, %s13_s12  }
   0x2   : > { %p138_p1 = scmp.lt.s32.totalorder %s1168_s12, 9 }
   0x4   : > { %p139_p2 = pnand %p938_p0, %p138_p1 }
   0x5   : > { %s939_s16 = sshll.u32 (!%p139_p2), %s934_s13, 6 }
   0x6   : > { %142 = sbr.rel (%p139_p2) target bundleno = 280 (0x118), region = 32  ;;  %p163_p3 = scmp.lt.s32.totalorder (!%p139_p2), %s939_s16, 511 }
   0xb   : > { %v1146_v0 = vld [vmem:[%s1486_s1 + $0x8] sm:$0xff]  ;;  %v1145_v1 = vld [vmem:[%s1486_s1] sm:$0xff]  ;;  %s1490_s16 = smov (!%p163_p3, %s939_s16), 511  ;;  %vm419_vm0 = vcmask 261120   ;;  %vm813_vm1 = vcmask 125952  }
   0xc   : > { %522 = vmatpush.bf16.msra.mxu0 %v1146_v0  ;;  %1147 = vmatpush.bf16.msra.mxu1 %v1146_v0  ;;  %s940_s19 = sshll.u32 %s1490_s16, 2  ;;  %v1281_v34 = vld [vmem:[%s1487_s2] ss:$0 sm:$0xff] }
   0xd   : > { %1148 = vmatpush.bf16.msra.mxu2 %v1146_v0  ;;  %1149 = vmatpush.bf16.msra.mxu3 %v1146_v0  ;;  %s1212_s22 = scalar_lea.vmem %s1485_s0, %s940_s19  ;;  %s1290_s27 = scalar_lea.vmem %s1488_s3, %s940_s19 }
   0xe   : > { %v1113_v2 = vld [vmem:[%s1212_s22] sm:$0xff]  ;;  %v1114_v6 = vld [vmem:[%s1212_s22 + $0x8] sm:$0xff]  ;;  %v1115_v10 = vld [vmem:[%s1212_s22 + $0x10] sm:$0xff] }
   0xf   : > { %v1121_v3 = vld [vmem:[%s1212_s22 + $0x40] sm:$0xff]  ;;  %v1122_v7 = vld [vmem:[%s1212_s22 + $0x48] sm:$0xff]  ;;  %v1123_v11 = vld [vmem:[%s1212_s22 + $0x50] sm:$0xff] }
  0x10   : > { %523 = vmatpush.bf16.msra.mxu0 %v1145_v1  ;;  %1150 = vmatpush.bf16.msra.mxu1 %v1145_v1  ;;  %v1129_v4 = vld [vmem:[%s1212_s22 + $0x80] sm:$0xff]  ;;  %v1130_v8 = vld [vmem:[%s1212_s22 + $0x88] sm:$0xff]  ;;  %v1131_v12 = vld [vmem:[%s1212_s22 + $0x90] sm:$0xff] }
  0x11   : > { %1151 = vmatpush.bf16.msra.mxu2 %v1145_v1  ;;  %1152 = vmatpush.bf16.msra.mxu3 %v1145_v1  ;;  %v1137_v5 = vld [vmem:[%s1212_s22 + $0xc0] sm:$0xff]  ;;  %v1138_v9 = vld [vmem:[%s1212_s22 + $0xc8] sm:$0xff]  ;;  %v1139_v13 = vld [vmem:[%s1212_s22 + $0xd0] sm:$0xff] }
  0x12   : > { %v1116_v14 = vld [vmem:[%s1212_s22 + $0x18] sm:$0xff]  ;;  %v1117_v18 = vld [vmem:[%s1212_s22 + $0x20] sm:$0xff]  ;;  %v1118_v22 = vld [vmem:[%s1212_s22 + $0x28] sm:$0xff] }
  0x13   : > { %1079 = vmatmul.msk.bf16.vlgmr.msra.gmra.mxu0 %vm419_vm0, %v1113_v2  ;;  %1087 = vmatmul.msk.bf16.vlgmr.msra.gmra.mxu1 %vm419_vm0, %v1121_v3  ;;  %v1124_v15 = vld [vmem:[%s1212_s22 + $0x58] sm:$0xff]  ;;  %v1125_v19 = vld [vmem:[%s1212_s22 + $0x60] sm:$0xff]  ;;  %v1126_v23 = vld [vmem:[%s1212_s22 + $0x68] sm:$0xff] }
  0x14   : > { %1095 = vmatmul.msk.bf16.vlgmr.msra.gmra.mxu2 %vm419_vm0, %v1129_v4  ;;  %1103 = vmatmul.msk.bf16.vlgmr.msra.gmra.mxu3 %vm419_vm0, %v1137_v5  ;;  %v1132_v16 = vld [vmem:[%s1212_s22 + $0x98] sm:$0xff]  ;;  %v1133_v20 = vld [vmem:[%s1212_s22 + $0xa0] sm:$0xff]  ;;  %v1134_v24 = vld [vmem:[%s1212_s22 + $0xa8] sm:$0xff] }
  0x15   : > { %v1140_v17 = vld [vmem:[%s1212_s22 + $0xd8] sm:$0xff]  ;;  %v1141_v21 = vld [vmem:[%s1212_s22 + $0xe0] sm:$0xff]  ;;  %v1142_v25 = vld [vmem:[%s1212_s22 + $0xe8] sm:$0xff] }
  0x16   : > { %v1119_v26 = vld [vmem:[%s1212_s22 + $0x30] sm:$0xff]  ;;  %v1120_v30 = vld [vmem:[%s1212_s22 + $0x38] sm:$0xff] }
  0x17   : > { %v1127_v27 = vld [vmem:[%s1212_s22 + $0x70] sm:$0xff]  ;;  %v1128_v31 = vld [vmem:[%s1212_s22 + $0x78] sm:$0xff] }
  0x18   : > { %v1135_v28 = vld [vmem:[%s1212_s22 + $0xb0] sm:$0xff]  ;;  %v1136_v32 = vld [vmem:[%s1212_s22 + $0xb8] sm:$0xff] }
  0x19   : > { %v1143_v29 = vld [vmem:[%s1212_s22 + $0xf0] sm:$0xff]  ;;  %v1144_v33 = vld [vmem:[%s1212_s22 + $0xf8] sm:$0xff] }
  0x23   : > { %1080 = vmatmul.msk.bf16.gmra.mxu0 %vm419_vm0, %v1114_v6  ;;  %1088 = vmatmul.msk.bf16.gmra.mxu1 %vm419_vm0, %v1122_v7 }
  0x24   : > { %1096 = vmatmul.msk.bf16.gmra.mxu2 %vm419_vm0, %v1130_v8  ;;  %1104 = vmatmul.msk.bf16.gmra.mxu3 %vm419_vm0, %v1138_v9 }
  0x33   : > { %1081 = vmatmul.msk.bf16.gmra.mxu0 %vm419_vm0, %v1115_v10  ;;  %1089 = vmatmul.msk.bf16.gmra.mxu1 %vm419_vm0, %v1123_v11 }
  0x34   : > { %1097 = vmatmul.msk.bf16.gmra.mxu2 %vm419_vm0, %v1131_v12  ;;  %1105 = vmatmul.msk.bf16.gmra.mxu3 %vm419_vm0, %v1139_v13 }
  0x43   : > { %1082 = vmatmul.msk.bf16.gmra.mxu0 %vm419_vm0, %v1116_v14  ;;  %1090 = vmatmul.msk.bf16.gmra.mxu1 %vm419_vm0, %v1124_v15 }
  0x44   : > { %1098 = vmatmul.msk.bf16.gmra.mxu2 %vm419_vm0, %v1132_v16  ;;  %1106 = vmatmul.msk.bf16.gmra.mxu3 %vm419_vm0, %v1140_v17 }
  0x53   : > { %1083 = vmatmul.msk.bf16.gmra.mxu0 %vm419_vm0, %v1117_v18  ;;  %1091 = vmatmul.msk.bf16.gmra.mxu1 %vm419_vm0, %v1125_v19 }
  0x54   : > { %1099 = vmatmul.msk.bf16.gmra.mxu2 %vm419_vm0, %v1133_v20  ;;  %1107 = vmatmul.msk.bf16.gmra.mxu3 %vm419_vm0, %v1141_v21 }
  0x63   : > { %1084 = vmatmul.msk.bf16.gmra.mxu0 %vm419_vm0, %v1118_v22  ;;  %1092 = vmatmul.msk.bf16.gmra.mxu1 %vm419_vm0, %v1126_v23 }
  0x64   : > { %1100 = vmatmul.msk.bf16.gmra.mxu2 %vm419_vm0, %v1134_v24  ;;  %1108 = vmatmul.msk.bf16.gmra.mxu3 %vm419_vm0, %v1142_v25 }
  0x73   : > { %1085 = vmatmul.msk.bf16.gmra.mxu0 %vm419_vm0, %v1119_v26  ;;  %1093 = vmatmul.msk.bf16.gmra.mxu1 %vm419_vm0, %v1127_v27 }
  0x74   : > { %1101 = vmatmul.msk.bf16.gmra.mxu2 %vm419_vm0, %v1135_v28  ;;  %1109 = vmatmul.msk.bf16.gmra.mxu3 %vm419_vm0, %v1143_v29 }
  0x83   : > { %1086 = vmatmul.msk.bf16.gmra.mxu0 %vm419_vm0, %v1120_v30  ;;  %1094 = vmatmul.msk.bf16.gmra.mxu1 %vm419_vm0, %v1128_v31 }
  0x84   : > { %1102 = vmatmul.msk.bf16.gmra.mxu2 %vm419_vm0, %v1136_v32  ;;  %1110 = vmatmul.msk.bf16.gmra.mxu3 %vm419_vm0, %v1144_v33 }
  0x90   : > { %v525_v35 = vpop.f32.mrf.mxu0  ;;  %v565_v36 = vpop.f32.mrf.mxu1 }
  0x91   : > { %v526_v37 = vadd.f32 %v1281_v34, %v525_v35  ;;  %v566_v38 = vadd.f32 %v1281_v34, %v565_v36 }
  0x93   : > { %v685_v39 = vmax.f32 %v526_v37, 0.0  ;;  %v701_v40 = vmax.f32 %v566_v38, 0.0 }
  0x95   : > { %v749_v41 = vpack.c.bf16 %v685_v39, %v685_v39  ;;  %v765_v42 = vpack.c.bf16 %v701_v40, %v701_v40 }
  0x97   : > { %814 = vst.msk [vmem:[%s1290_s27] sm:$0xf] %vm813_vm1, %v749_v41  ;;  %v605_v43 = vpop.f32.mrf.mxu2  ;;  %v645_v44 = vpop.f32.mrf.mxu3 }
  0x98   : > { %830 = vst.msk [vmem:[%s1290_s27 + $0x40] sm:$0xf] %vm813_vm1, %v765_v42  ;;  %v606_v45 = vadd.f32 %v1281_v34, %v605_v43  ;;  %v646_v46 = vadd.f32 %v1281_v34, %v645_v44  ;;  %v527_v47 = vpop.f32.mrf.mxu0  ;;  %v567_v48 = vpop.f32.mrf.mxu1 }
  0x99   : > { %v528_v49 = vadd.f32 %v1281_v34, %v527_v47  ;;  %v568_v50 = vadd.f32 %v1281_v34, %v567_v48 }
  0x9a   : > { %v717_v51 = vmax.f32 %v606_v45, 0.0  ;;  %v733_v52 = vmax.f32 %v646_v46, 0.0 }
  0x9b   : > { %v686_v53 = vmax.f32 %v528_v49, 0.0  ;;  %v702_v54 = vmax.f32 %v568_v50, 0.0 }
  0x9c   : > { %v781_v55 = vpack.c.bf16 %v717_v51, %v717_v51  ;;  %v797_v56 = vpack.c.bf16 %v733_v52, %v733_v52 }
  0x9d   : > { %v750_v57 = vpack.c.bf16 %v686_v53, %v686_v53  ;;  %v766_v58 = vpack.c.bf16 %v702_v54, %v702_v54 }
  0x9e   : > { %846 = vst.msk [vmem:[%s1290_s27 + $0x80] sm:$0xf] %vm813_vm1, %v781_v55 }
  0x9f   : > { %862 = vst.msk [vmem:[%s1290_s27 + $0xc0] sm:$0xf] %vm813_vm1, %v797_v56  ;;  %v607_v59 = vpop.f32.mrf.mxu2  ;;  %v647_v60 = vpop.f32.mrf.mxu3 }
  0xa0   : > { %815 = vst.msk [vmem:[%s1290_s27 + $0x4] sm:$0xf] %vm813_vm1, %v750_v57  ;;  %v608_v61 = vadd.f32 %v1281_v34, %v607_v59  ;;  %v648_v62 = vadd.f32 %v1281_v34, %v647_v60  ;;  %v530_v63 = vpop.f32.mrf.mxu0  ;;  %v570_v0 = vpop.f32.mrf.mxu1 }
  0xa1   : > { %831 = vst.msk [vmem:[%s1290_s27 + $0x44] sm:$0xf] %vm813_vm1, %v766_v58  ;;  %v531_v1 = vadd.f32 %v1281_v34, %v530_v63  ;;  %v571_v2 = vadd.f32 %v1281_v34, %v570_v0 }
  0xa2   : > { %v718_v3 = vmax.f32 %v608_v61, 0.0  ;;  %v734_v4 = vmax.f32 %v648_v62, 0.0 }
  0xa3   : > { %v687_v5 = vmax.f32 %v531_v1, 0.0  ;;  %v703_v6 = vmax.f32 %v571_v2, 0.0 }
  0xa4   : > { %v782_v7 = vpack.c.bf16 %v718_v3, %v718_v3  ;;  %v798_v8 = vpack.c.bf16 %v734_v4, %v734_v4 }
  0xa5   : > { %v751_v9 = vpack.c.bf16 %v687_v5, %v687_v5  ;;  %v767_v10 = vpack.c.bf16 %v703_v6, %v703_v6 }
  0xa6   : > { %847 = vst.msk [vmem:[%s1290_s27 + $0x84] sm:$0xf] %vm813_vm1, %v782_v7 }
  0xa7   : > { %863 = vst.msk [vmem:[%s1290_s27 + $0xc4] sm:$0xf] %vm813_vm1, %v798_v8  ;;  %v610_v11 = vpop.f32.mrf.mxu2  ;;  %v650_v12 = vpop.f32.mrf.mxu3 }
  0xa8   : > { %816 = vst.msk [vmem:[%s1290_s27 + $0x8] sm:$0xf] %vm813_vm1, %v751_v9  ;;  %v611_v13 = vadd.f32 %v1281_v34, %v610_v11  ;;  %v651_v14 = vadd.f32 %v1281_v34, %v650_v12  ;;  %v532_v15 = vpop.f32.mrf.mxu0  ;;  %v572_v16 = vpop.f32.mrf.mxu1 }
  0xa9   : > { %832 = vst.msk [vmem:[%s1290_s27 + $0x48] sm:$0xf] %vm813_vm1, %v767_v10  ;;  %v533_v17 = vadd.f32 %v1281_v34, %v532_v15  ;;  %v573_v18 = vadd.f32 %v1281_v34, %v572_v16 }
  0xaa   : > { %v719_v19 = vmax.f32 %v611_v13, 0.0  ;;  %v735_v20 = vmax.f32 %v651_v14, 0.0 }
  0xab   : > { %v688_v21 = vmax.f32 %v533_v17, 0.0  ;;  %v704_v22 = vmax.f32 %v573_v18, 0.0 }
  0xac   : > { %v783_v23 = vpack.c.bf16 %v719_v19, %v719_v19  ;;  %v799_v24 = vpack.c.bf16 %v735_v20, %v735_v20 }
  0xad   : > { %v752_v25 = vpack.c.bf16 %v688_v21, %v688_v21  ;;  %v768_v26 = vpack.c.bf16 %v704_v22, %v704_v22 }
  0xae   : > { %848 = vst.msk [vmem:[%s1290_s27 + $0x88] sm:$0xf] %vm813_vm1, %v783_v23 }
  0xaf   : > { %864 = vst.msk [vmem:[%s1290_s27 + $0xc8] sm:$0xf] %vm813_vm1, %v799_v24  ;;  %v612_v27 = vpop.f32.mrf.mxu2  ;;  %v652_v28 = vpop.f32.mrf.mxu3 }
  0xb0   : > { %817 = vst.msk [vmem:[%s1290_s27 + $0xc] sm:$0xf] %vm813_vm1, %v752_v25  ;;  %v613_v29 = vadd.f32 %v1281_v34, %v612_v27  ;;  %v653_v30 = vadd.f32 %v1281_v34, %v652_v28  ;;  %v535_v31 = vpop.f32.mrf.mxu0  ;;  %v575_v32 = vpop.f32.mrf.mxu1 }
  0xb1   : > { %833 = vst.msk [vmem:[%s1290_s27 + $0x4c] sm:$0xf] %vm813_vm1, %v768_v26  ;;  %v536_v33 = vadd.f32 %v1281_v34, %v535_v31  ;;  %v576_v35 = vadd.f32 %v1281_v34, %v575_v32 }
  0xb2   : > { %v720_v36 = vmax.f32 %v613_v29, 0.0  ;;  %v736_v37 = vmax.f32 %v653_v30, 0.0 }
  0xb3   : > { %v689_v38 = vmax.f32 %v536_v33, 0.0  ;;  %v705_v39 = vmax.f32 %v576_v35, 0.0 }
  0xb4   : > { %v784_v40 = vpack.c.bf16 %v720_v36, %v720_v36  ;;  %v800_v41 = vpack.c.bf16 %v736_v37, %v736_v37 }
  0xb5   : > { %v753_v42 = vpack.c.bf16 %v689_v38, %v689_v38  ;;  %v769_v43 = vpack.c.bf16 %v705_v39, %v705_v39 }
  0xb6   : > { %849 = vst.msk [vmem:[%s1290_s27 + $0x8c] sm:$0xf] %vm813_vm1, %v784_v40 }
  0xb7   : > { %865 = vst.msk [vmem:[%s1290_s27 + $0xcc] sm:$0xf] %vm813_vm1, %v800_v41  ;;  %v615_v44 = vpop.f32.mrf.mxu2  ;;  %v655_v45 = vpop.f32.mrf.mxu3 }
  0xb8   : > { %818 = vst.msk [vmem:[%s1290_s27 + $0x10] sm:$0xf] %vm813_vm1, %v753_v42  ;;  %v616_v46 = vadd.f32 %v1281_v34, %v615_v44  ;;  %v656_v47 = vadd.f32 %v1281_v34, %v655_v45  ;;  %v537_v48 = vpop.f32.mrf.mxu0  ;;  %v577_v49 = vpop.f32.mrf.mxu1 }
  0xb9   : > { %834 = vst.msk [vmem:[%s1290_s27 + $0x50] sm:$0xf] %vm813_vm1, %v769_v43  ;;  %v538_v50 = vadd.f32 %v1281_v34, %v537_v48  ;;  %v578_v51 = vadd.f32 %v1281_v34, %v577_v49 }
  0xba   : > { %v721_v52 = vmax.f32 %v616_v46, 0.0  ;;  %v737_v53 = vmax.f32 %v656_v47, 0.0 }
  0xbb   : > { %v690_v54 = vmax.f32 %v538_v50, 0.0  ;;  %v706_v55 = vmax.f32 %v578_v51, 0.0 }
  0xbc   : > { %v785_v56 = vpack.c.bf16 %v721_v52, %v721_v52  ;;  %v801_v57 = vpack.c.bf16 %v737_v53, %v737_v53 }
  0xbd   : > { %v754_v58 = vpack.c.bf16 %v690_v54, %v690_v54  ;;  %v770_v59 = vpack.c.bf16 %v706_v55, %v706_v55 }
  0xbe   : > { %850 = vst.msk [vmem:[%s1290_s27 + $0x90] sm:$0xf] %vm813_vm1, %v785_v56 }
  0xbf   : > { %866 = vst.msk [vmem:[%s1290_s27 + $0xd0] sm:$0xf] %vm813_vm1, %v801_v57  ;;  %v617_v60 = vpop.f32.mrf.mxu2  ;;  %v657_v61 = vpop.f32.mrf.mxu3 }
  0xc0   : > { %819 = vst.msk [vmem:[%s1290_s27 + $0x14] sm:$0xf] %vm813_vm1, %v754_v58  ;;  %v618_v62 = vadd.f32 %v1281_v34, %v617_v60  ;;  %v658_v63 = vadd.f32 %v1281_v34, %v657_v61  ;;  %v540_v0 = vpop.f32.mrf.mxu0  ;;  %v580_v1 = vpop.f32.mrf.mxu1 }
  0xc1   : > { %835 = vst.msk [vmem:[%s1290_s27 + $0x54] sm:$0xf] %vm813_vm1, %v770_v59  ;;  %v541_v2 = vadd.f32 %v1281_v34, %v540_v0  ;;  %v581_v3 = vadd.f32 %v1281_v34, %v580_v1 }
  0xc2   : > { %v722_v4 = vmax.f32 %v618_v62, 0.0  ;;  %v738_v5 = vmax.f32 %v658_v63, 0.0 }
  0xc3   : > { %v691_v6 = vmax.f32 %v541_v2, 0.0  ;;  %v707_v7 = vmax.f32 %v581_v3, 0.0 }
  0xc4   : > { %v786_v8 = vpack.c.bf16 %v722_v4, %v722_v4  ;;  %v802_v9 = vpack.c.bf16 %v738_v5, %v738_v5 }
  0xc5   : > { %v755_v10 = vpack.c.bf16 %v691_v6, %v691_v6  ;;  %v771_v11 = vpack.c.bf16 %v707_v7, %v707_v7 }
  0xc6   : > { %851 = vst.msk [vmem:[%s1290_s27 + $0x94] sm:$0xf] %vm813_vm1, %v786_v8 }
  0xc7   : > { %867 = vst.msk [vmem:[%s1290_s27 + $0xd4] sm:$0xf] %vm813_vm1, %v802_v9  ;;  %v620_v12 = vpop.f32.mrf.mxu2  ;;  %v660_v13 = vpop.f32.mrf.mxu3 }
  0xc8   : > { %820 = vst.msk [vmem:[%s1290_s27 + $0x18] sm:$0xf] %vm813_vm1, %v755_v10  ;;  %v621_v14 = vadd.f32 %v1281_v34, %v620_v12  ;;  %v661_v15 = vadd.f32 %v1281_v34, %v660_v13  ;;  %v542_v16 = vpop.f32.mrf.mxu0  ;;  %v582_v17 = vpop.f32.mrf.mxu1 }
  0xc9   : > { %836 = vst.msk [vmem:[%s1290_s27 + $0x58] sm:$0xf] %vm813_vm1, %v771_v11  ;;  %v543_v18 = vadd.f32 %v1281_v34, %v542_v16  ;;  %v583_v19 = vadd.f32 %v1281_v34, %v582_v17 }
  0xca   : > { %v723_v20 = vmax.f32 %v621_v14, 0.0  ;;  %v739_v21 = vmax.f32 %v661_v15, 0.0 }
  0xcb   : > { %v692_v22 = vmax.f32 %v543_v18, 0.0  ;;  %v708_v23 = vmax.f32 %v583_v19, 0.0 }
  0xcc   : > { %v787_v24 = vpack.c.bf16 %v723_v20, %v723_v20  ;;  %v803_v25 = vpack.c.bf16 %v739_v21, %v739_v21 }
  0xcd   : > { %v756_v26 = vpack.c.bf16 %v692_v22, %v692_v22  ;;  %v772_v27 = vpack.c.bf16 %v708_v23, %v708_v23 }
  0xce   : > { %852 = vst.msk [vmem:[%s1290_s27 + $0x98] sm:$0xf] %vm813_vm1, %v787_v24 }
  0xcf   : > { %868 = vst.msk [vmem:[%s1290_s27 + $0xd8] sm:$0xf] %vm813_vm1, %v803_v25  ;;  %v622_v28 = vpop.f32.mrf.mxu2  ;;  %v662_v29 = vpop.f32.mrf.mxu3 }
  0xd0   : > { %821 = vst.msk [vmem:[%s1290_s27 + $0x1c] sm:$0xf] %vm813_vm1, %v756_v26  ;;  %v623_v30 = vadd.f32 %v1281_v34, %v622_v28  ;;  %v663_v31 = vadd.f32 %v1281_v34, %v662_v29  ;;  %v545_v32 = vpop.f32.mrf.mxu0  ;;  %v585_v33 = vpop.f32.mrf.mxu1 }
  0xd1   : > { %837 = vst.msk [vmem:[%s1290_s27 + $0x5c] sm:$0xf] %vm813_vm1, %v772_v27  ;;  %v546_v35 = vadd.f32 %v1281_v34, %v545_v32  ;;  %v586_v36 = vadd.f32 %v1281_v34, %v585_v33 }
  0xd2   : > { %v724_v37 = vmax.f32 %v623_v30, 0.0  ;;  %v740_v38 = vmax.f32 %v663_v31, 0.0 }
  0xd3   : > { %v693_v39 = vmax.f32 %v546_v35, 0.0  ;;  %v709_v40 = vmax.f32 %v586_v36, 0.0 }
  0xd4   : > { %v788_v41 = vpack.c.bf16 %v724_v37, %v724_v37  ;;  %v804_v42 = vpack.c.bf16 %v740_v38, %v740_v38 }
  0xd5   : > { %v757_v43 = vpack.c.bf16 %v693_v39, %v693_v39  ;;  %v773_v44 = vpack.c.bf16 %v709_v40, %v709_v40 }
  0xd6   : > { %853 = vst.msk [vmem:[%s1290_s27 + $0x9c] sm:$0xf] %vm813_vm1, %v788_v41 }
  0xd7   : > { %869 = vst.msk [vmem:[%s1290_s27 + $0xdc] sm:$0xf] %vm813_vm1, %v804_v42  ;;  %v625_v45 = vpop.f32.mrf.mxu2  ;;  %v665_v46 = vpop.f32.mrf.mxu3 }
  0xd8   : > { %822 = vst.msk [vmem:[%s1290_s27 + $0x20] sm:$0xf] %vm813_vm1, %v757_v43  ;;  %v626_v47 = vadd.f32 %v1281_v34, %v625_v45  ;;  %v666_v48 = vadd.f32 %v1281_v34, %v665_v46  ;;  %v547_v49 = vpop.f32.mrf.mxu0  ;;  %v587_v50 = vpop.f32.mrf.mxu1 }
  0xd9   : > { %838 = vst.msk [vmem:[%s1290_s27 + $0x60] sm:$0xf] %vm813_vm1, %v773_v44  ;;  %v548_v51 = vadd.f32 %v1281_v34, %v547_v49  ;;  %v588_v52 = vadd.f32 %v1281_v34, %v587_v50 }
  0xda   : > { %v725_v53 = vmax.f32 %v626_v47, 0.0  ;;  %v741_v54 = vmax.f32 %v666_v48, 0.0 }
  0xdb   : > { %v694_v55 = vmax.f32 %v548_v51, 0.0  ;;  %v710_v56 = vmax.f32 %v588_v52, 0.0 }
  0xdc   : > { %v789_v57 = vpack.c.bf16 %v725_v53, %v725_v53  ;;  %v805_v58 = vpack.c.bf16 %v741_v54, %v741_v54 }
  0xdd   : > { %v758_v59 = vpack.c.bf16 %v694_v55, %v694_v55  ;;  %v774_v60 = vpack.c.bf16 %v710_v56, %v710_v56 }
  0xde   : > { %854 = vst.msk [vmem:[%s1290_s27 + $0xa0] sm:$0xf] %vm813_vm1, %v789_v57 }
  0xdf   : > { %870 = vst.msk [vmem:[%s1290_s27 + $0xe0] sm:$0xf] %vm813_vm1, %v805_v58  ;;  %v627_v61 = vpop.f32.mrf.mxu2  ;;  %v667_v62 = vpop.f32.mrf.mxu3 }
  0xe0   : > { %823 = vst.msk [vmem:[%s1290_s27 + $0x24] sm:$0xf] %vm813_vm1, %v758_v59  ;;  %v628_v63 = vadd.f32 %v1281_v34, %v627_v61  ;;  %v668_v0 = vadd.f32 %v1281_v34, %v667_v62  ;;  %v550_v1 = vpop.f32.mrf.mxu0  ;;  %v590_v2 = vpop.f32.mrf.mxu1 }
  0xe1   : > { %839 = vst.msk [vmem:[%s1290_s27 + $0x64] sm:$0xf] %vm813_vm1, %v774_v60  ;;  %v551_v3 = vadd.f32 %v1281_v34, %v550_v1  ;;  %v591_v4 = vadd.f32 %v1281_v34, %v590_v2 }
  0xe2   : > { %v726_v5 = vmax.f32 %v628_v63, 0.0  ;;  %v742_v6 = vmax.f32 %v668_v0, 0.0 }
  0xe3   : > { %v695_v7 = vmax.f32 %v551_v3, 0.0  ;;  %v711_v8 = vmax.f32 %v591_v4, 0.0 }
  0xe4   : > { %v790_v9 = vpack.c.bf16 %v726_v5, %v726_v5  ;;  %v806_v10 = vpack.c.bf16 %v742_v6, %v742_v6 }
  0xe5   : > { %v759_v11 = vpack.c.bf16 %v695_v7, %v695_v7  ;;  %v775_v12 = vpack.c.bf16 %v711_v8, %v711_v8 }
  0xe6   : > { %855 = vst.msk [vmem:[%s1290_s27 + $0xa4] sm:$0xf] %vm813_vm1, %v790_v9 }
  0xe7   : > { %871 = vst.msk [vmem:[%s1290_s27 + $0xe4] sm:$0xf] %vm813_vm1, %v806_v10  ;;  %v630_v13 = vpop.f32.mrf.mxu2  ;;  %v670_v14 = vpop.f32.mrf.mxu3 }
  0xe8   : > { %824 = vst.msk [vmem:[%s1290_s27 + $0x28] sm:$0xf] %vm813_vm1, %v759_v11  ;;  %v631_v15 = vadd.f32 %v1281_v34, %v630_v13  ;;  %v671_v16 = vadd.f32 %v1281_v34, %v670_v14  ;;  %v552_v17 = vpop.f32.mrf.mxu0  ;;  %v592_v18 = vpop.f32.mrf.mxu1 }
  0xe9   : > { %840 = vst.msk [vmem:[%s1290_s27 + $0x68] sm:$0xf] %vm813_vm1, %v775_v12  ;;  %v553_v19 = vadd.f32 %v1281_v34, %v552_v17  ;;  %v593_v20 = vadd.f32 %v1281_v34, %v592_v18 }
  0xea   : > { %v727_v21 = vmax.f32 %v631_v15, 0.0  ;;  %v743_v22 = vmax.f32 %v671_v16, 0.0 }
  0xeb   : > { %v696_v23 = vmax.f32 %v553_v19, 0.0  ;;  %v712_v24 = vmax.f32 %v593_v20, 0.0 }
  0xec   : > { %v791_v25 = vpack.c.bf16 %v727_v21, %v727_v21  ;;  %v807_v26 = vpack.c.bf16 %v743_v22, %v743_v22 }
  0xed   : > { %v760_v27 = vpack.c.bf16 %v696_v23, %v696_v23  ;;  %v776_v28 = vpack.c.bf16 %v712_v24, %v712_v24 }
  0xee   : > { %856 = vst.msk [vmem:[%s1290_s27 + $0xa8] sm:$0xf] %vm813_vm1, %v791_v25 }
  0xef   : > { %872 = vst.msk [vmem:[%s1290_s27 + $0xe8] sm:$0xf] %vm813_vm1, %v807_v26  ;;  %v632_v29 = vpop.f32.mrf.mxu2  ;;  %v672_v30 = vpop.f32.mrf.mxu3 }
  0xf0   : > { %825 = vst.msk [vmem:[%s1290_s27 + $0x2c] sm:$0xf] %vm813_vm1, %v760_v27  ;;  %v633_v31 = vadd.f32 %v1281_v34, %v632_v29  ;;  %v673_v32 = vadd.f32 %v1281_v34, %v672_v30  ;;  %v555_v33 = vpop.f32.mrf.mxu0  ;;  %v595_v35 = vpop.f32.mrf.mxu1 }
  0xf1   : > { %841 = vst.msk [vmem:[%s1290_s27 + $0x6c] sm:$0xf] %vm813_vm1, %v776_v28  ;;  %v556_v36 = vadd.f32 %v1281_v34, %v555_v33  ;;  %v596_v37 = vadd.f32 %v1281_v34, %v595_v35 }
  0xf2   : > { %v728_v38 = vmax.f32 %v633_v31, 0.0  ;;  %v744_v39 = vmax.f32 %v673_v32, 0.0 }
  0xf3   : > { %v697_v40 = vmax.f32 %v556_v36, 0.0  ;;  %v713_v41 = vmax.f32 %v596_v37, 0.0 }
  0xf4   : > { %v792_v42 = vpack.c.bf16 %v728_v38, %v728_v38  ;;  %v808_v43 = vpack.c.bf16 %v744_v39, %v744_v39 }
  0xf5   : > { %v761_v44 = vpack.c.bf16 %v697_v40, %v697_v40  ;;  %v777_v45 = vpack.c.bf16 %v713_v41, %v713_v41 }
  0xf6   : > { %857 = vst.msk [vmem:[%s1290_s27 + $0xac] sm:$0xf] %vm813_vm1, %v792_v42 }
  0xf7   : > { %873 = vst.msk [vmem:[%s1290_s27 + $0xec] sm:$0xf] %vm813_vm1, %v808_v43  ;;  %v635_v46 = vpop.f32.mrf.mxu2  ;;  %v675_v47 = vpop.f32.mrf.mxu3 }
  0xf8   : > { %826 = vst.msk [vmem:[%s1290_s27 + $0x30] sm:$0xf] %vm813_vm1, %v761_v44  ;;  %v636_v48 = vadd.f32 %v1281_v34, %v635_v46  ;;  %v676_v49 = vadd.f32 %v1281_v34, %v675_v47  ;;  %v557_v50 = vpop.f32.mrf.mxu0  ;;  %v597_v51 = vpop.f32.mrf.mxu1 }
  0xf9   : > { %842 = vst.msk [vmem:[%s1290_s27 + $0x70] sm:$0xf] %vm813_vm1, %v777_v45  ;;  %v558_v52 = vadd.f32 %v1281_v34, %v557_v50  ;;  %v598_v53 = vadd.f32 %v1281_v34, %v597_v51 }
  0xfa   : > { %v729_v54 = vmax.f32 %v636_v48, 0.0  ;;  %v745_v55 = vmax.f32 %v676_v49, 0.0 }
  0xfb   : > { %v698_v56 = vmax.f32 %v558_v52, 0.0  ;;  %v714_v57 = vmax.f32 %v598_v53, 0.0 }
  0xfc   : > { %v793_v58 = vpack.c.bf16 %v729_v54, %v729_v54  ;;  %v809_v59 = vpack.c.bf16 %v745_v55, %v745_v55 }
  0xfd   : > { %v762_v60 = vpack.c.bf16 %v698_v56, %v698_v56  ;;  %v778_v61 = vpack.c.bf16 %v714_v57, %v714_v57 }
  0xfe   : > { %858 = vst.msk [vmem:[%s1290_s27 + $0xb0] sm:$0xf] %vm813_vm1, %v793_v58 }
  0xff   : > { %874 = vst.msk [vmem:[%s1290_s27 + $0xf0] sm:$0xf] %vm813_vm1, %v809_v59  ;;  %v637_v62 = vpop.f32.mrf.mxu2  ;;  %v677_v63 = vpop.f32.mrf.mxu3 }
 0x100   : > { %827 = vst.msk [vmem:[%s1290_s27 + $0x34] sm:$0xf] %vm813_vm1, %v762_v60  ;;  %v638_v0 = vadd.f32 %v1281_v34, %v637_v62  ;;  %v678_v1 = vadd.f32 %v1281_v34, %v677_v63  ;;  %v560_v2 = vpop.f32.mrf.mxu0  ;;  %v600_v3 = vpop.f32.mrf.mxu1 }
 0x101   : > { %843 = vst.msk [vmem:[%s1290_s27 + $0x74] sm:$0xf] %vm813_vm1, %v778_v61  ;;  %v561_v4 = vadd.f32 %v1281_v34, %v560_v2  ;;  %v601_v5 = vadd.f32 %v1281_v34, %v600_v3 }
 0x102   : > { %v730_v6 = vmax.f32 %v638_v0, 0.0  ;;  %v746_v7 = vmax.f32 %v678_v1, 0.0 }
 0x103   : > { %v699_v8 = vmax.f32 %v561_v4, 0.0  ;;  %v715_v9 = vmax.f32 %v601_v5, 0.0 }
 0x104   : > { %v794_v10 = vpack.c.bf16 %v730_v6, %v730_v6  ;;  %v810_v11 = vpack.c.bf16 %v746_v7, %v746_v7 }
 0x105   : > { %v763_v12 = vpack.c.bf16 %v699_v8, %v699_v8  ;;  %v779_v13 = vpack.c.bf16 %v715_v9, %v715_v9 }
 0x106   : > { %859 = vst.msk [vmem:[%s1290_s27 + $0xb4] sm:$0xf] %vm813_vm1, %v794_v10 }
 0x107   : > { %875 = vst.msk [vmem:[%s1290_s27 + $0xf4] sm:$0xf] %vm813_vm1, %v810_v11  ;;  %v640_v14 = vpop.f32.mrf.mxu2  ;;  %v680_v15 = vpop.f32.mrf.mxu3 }
 0x108   : > { %828 = vst.msk [vmem:[%s1290_s27 + $0x38] sm:$0xf] %vm813_vm1, %v763_v12  ;;  %v641_v16 = vadd.f32 %v1281_v34, %v640_v14  ;;  %v681_v17 = vadd.f32 %v1281_v34, %v680_v15  ;;  %v562_v18 = vpop.f32.mrf.mxu0  ;;  %v602_v19 = vpop.f32.mrf.mxu1 }
 0x109   : > { %844 = vst.msk [vmem:[%s1290_s27 + $0x78] sm:$0xf] %vm813_vm1, %v779_v13  ;;  %v563_v20 = vadd.f32 %v1281_v34, %v562_v18  ;;  %v603_v21 = vadd.f32 %v1281_v34, %v602_v19 }
 0x10a   : > { %v731_v22 = vmax.f32 %v641_v16, 0.0  ;;  %v747_v23 = vmax.f32 %v681_v17, 0.0 }
 0x10b   : > { %v700_v24 = vmax.f32 %v563_v20, 0.0  ;;  %v716_v25 = vmax.f32 %v603_v21, 0.0 }
 0x10c   : > { %v795_v26 = vpack.c.bf16 %v731_v22, %v731_v22  ;;  %v811_v27 = vpack.c.bf16 %v747_v23, %v747_v23 }
 0x10d   : > { %v764_v28 = vpack.c.bf16 %v700_v24, %v700_v24  ;;  %v780_v29 = vpack.c.bf16 %v716_v25, %v716_v25 }
 0x10e   : > { %860 = vst.msk [vmem:[%s1290_s27 + $0xb8] sm:$0xf] %vm813_vm1, %v795_v26 }
 0x10f   : > { %876 = vst.msk [vmem:[%s1290_s27 + $0xf8] sm:$0xf] %vm813_vm1, %v811_v27  ;;  %v642_v30 = vpop.f32.mrf.mxu2  ;;  %v682_v31 = vpop.f32.mrf.mxu3 }
 0x110   : > { %829 = vst.msk [vmem:[%s1290_s27 + $0x3c] sm:$0xf] %vm813_vm1, %v764_v28  ;;  %v643_v32 = vadd.f32 %v1281_v34, %v642_v30  ;;  %v683_v33 = vadd.f32 %v1281_v34, %v682_v31 }
 0x111   : > { %845 = vst.msk [vmem:[%s1290_s27 + $0x7c] sm:$0xf] %vm813_vm1, %v780_v29 }
 0x112   : > { %v732_v35 = vmax.f32 %v643_v32, 0.0  ;;  %v748_v36 = vmax.f32 %v683_v33, 0.0 }
 0x114   : > { %v796_v37 = vpack.c.bf16 %v732_v35, %v732_v35  ;;  %v812_v38 = vpack.c.bf16 %v748_v36, %v748_v36 }
 0x116   : > { %861 = vst.msk [vmem:[%s1290_s27 + $0xbc] sm:$0xf] %vm813_vm1, %v796_v37 }
 0x117   : > { %877 = vst.msk [vmem:[%s1290_s27 + $0xfc] sm:$0xf] %vm813_vm1, %v812_v38 }
 0x118 PF: > { %s13_s12 = sadd.s32 1, %s1168_s12  }
 0x119   : > { %p10_p4 = scmp.ge.s32.totalorder %s13_s12, 10  }
 0x11b   :  { %12 = sbr.rel (!%p10_p4) target bundleno = 1 (0x1), region = 62 }

// kernel: bottleneck_forward.5
= control target key start
LH: loop header
LB: loop body
LE: loop exit
PB: predicated region body
PF: predicated region fallthrough
CT: control target
= control target key end

     0   :  { %s1959_s12 = smov 0   ;;  %s1961_s13 = smov 0   ;;  %s2333_s0 = inlined_call_operand.vmem [shape: bf16[80,9,9,16], index: 0, kind: input, shape index: {}]   ;;  %s2334_s1 = inlined_call_operand.vmem [shape: bf16[3,144,16], index: 1, kind: input, shape index: {}]   ;;  %s2335_s2 = inlined_call_operand.vmem [shape: f32[1,16], index: 2, kind: input, shape index: {}]   ;;  %s2336_s3 = inlined_call_operand.vmem [shape: bf16[8,64,16], index: 3, kind: output, shape index: {}]  }
   0x1   :  { %s1963_s14 = smov 0   ;;  %s1965_s15 = smov 0  }
   0x2   :  { %s1967_s16 = smov 0   ;;  %s1969_s17 = smov 0  }
   0x3   :  { %s1971_s18 = smov 0  }
   0x4 LB: > { %s25_s19 = sadd.s32 1, %s1924_s15  ;;  %s28_s20 = sadd.s32 1, %s1928_s16  ;;  %s1936_s18 = sphi %s1971_s18, %s13_s18   ;;  %s1932_s17 = sphi %s1969_s17, %s2344_s17   ;;  %s1928_s16 = sphi %s1967_s16, %s2343_s16   ;;  %s1924_s15 = sphi %s1965_s15, %s2342_s15   ;;  %s1920_s14 = sphi %s1963_s14, %s2341_s14   ;;  %s1916_s13 = sphi %s1961_s13, %s2340_s13   ;;  %s1912_s12 = sphi %s1959_s12, %s2339_s12  }
   0x5   : > { %p26_p0 = scmp.ge.s32.totalorder %s25_s19, 3  ;;  %p1533_p1 = scmp.ge.s32.totalorder %s1936_s18, 1 }
   0x6   : > { %p188_p2 = scmp.lt.s32.totalorder %s1936_s18, 25  ;;  %s32_s21 = sadd.s32 1, %s1932_s17 }
   0x7   : > { %s2346_s19 = smov (%p26_p0, %s25_s19), 0  ;;  %s2348_s20 = smov (!%p26_p0, %s28_s20), %s1928_s16 }
   0x8   : > { %p189_p3 = pnand %p1533_p1, %p188_p2  ;;  %p30_p4 = scmp.ge.s32.totalorder %s2348_s20, 4 }
   0x9   : > { %s224_s22 = smul.u32 (!%p189_p3), 10, %s1920_s14  ;;  %s1534_s23 = sshll.u32 (!%p189_p3), %s1916_s13, 1 }
   0xa   : > { %s2350_s20 = smov (%p30_p4, %s2348_s20), 0  ;;  %s2352_s21 = smov (!%p30_p4, %s32_s21), %s1932_s17 }
   0xb   : > { %p34_p5 = scmp.ge.s32.totalorder %s2352_s21, 2  ;;  %192 = sbr.rel (%p189_p3) target bundleno = 332 (0x14c), region = 32 }
   0xc   : > { %p239_p6 = scmp.lt.s32.totalorder (!%p189_p3), %s1912_s12, 2  ;;  %s226_s24 = sadd.s32 (!%p189_p3), %s1534_s23, %s224_s22 }
   0xd   : > { %s2354_s21 = smov (%p34_p5, %s2352_s21), 0  ;;  %s1538_s25 = sshll.u32 (!%p189_p3), %s1920_s14, 2 }
   0xe   : > { %s227_s26 = sadd.s32 (!%p189_p3), %s1912_s12, %s226_s24  ;;  %s245_s28 = sadd.s32 (!%p189_p3), %s1916_s13, %s1538_s25 }
   0xf   : > { %s1535_s27 = sshll.u32 (!%p189_p3), %s227_s26, 2  ;;  %p246_p8 = scmp.lt.s32.totalorder (!%p189_p3), %s245_s28, 7 }
  0x10   : > { %p229_p7 = scmp.lt.s32.totalorder %s1535_s27, 79  ;;  %p1541_p9 = scmp.ne.s32.totalorder %s1912_s12, 0 }
  0x11   : > { %s240_s29 = scalar_select %p239_p6, %s1912_s12, 2 }
  0x12   : > { %s2356_s27 = smov (!%p229_p7, %s1535_s27), 79  ;;  %s2358_s28 = smov (!%p246_p8, %s245_s28), 7 }
  0x13   : > { %s1823_s30 = smul.u32 72, %s240_s29  ;;  %s1785_s11 = sshll.u32 %s2358_s28, 5 }
  0x14   : > { %s1822_s4 = smul.u32 72, %s2356_s27  ;;  %s2027_s13 = scalar_lea.vmem %s2336_s3, %s1785_s11 }
  0x15   : > { %s2017_s7 = scalar_lea.vmem %s2334_s1, %s1823_s30  ;;  %257 = sbr.rel (%p1541_p9) target bundleno = 35 (0x23), region = 36 }
  0x16   : > { %s2022_s10 = scalar_lea.vmem %s2333_s0, %s1822_s4 }
  0x1a   : > { %vm258_vm0 = vcmask 130048   ;;  %v1938_v0 = vmov 0.0  }
  0x1b   : > { %259 = vst.msk [vmem:[#allocation2] sm:$0xff] %vm258_vm0, %v1938_v0 }
  0x1c   : > { %260 = vst.msk [vmem:[#allocation2 + $0x8] sm:$0xff] %vm258_vm0, %v1938_v0 }
  0x1d   : > { %261 = vst.msk [vmem:[#allocation2 + $0x10] sm:$0xff] %vm258_vm0, %v1938_v0 }
  0x1e   : > { %262 = vst.msk [vmem:[#allocation2 + $0x18] sm:$0xff] %vm258_vm0, %v1938_v0 }
  0x1f   : > { %263 = vst.msk [vmem:[#allocation2 + $0x20] sm:$0xff] %vm258_vm0, %v1938_v0 }
  0x20   : > { %264 = vst.msk [vmem:[#allocation2 + $0x28] sm:$0xff] %vm258_vm0, %v1938_v0 }
  0x21   : > { %265 = vst.msk [vmem:[#allocation2 + $0x30] sm:$0xff] %vm258_vm0, %v1938_v0 }
  0x22   : > { %266 = vst.msk [vmem:[#allocation2 + $0x38] sm:$0xff] %vm258_vm0, %v1938_v0 }
  0x23 PF: > { %v1795_v1 = vld [vmem:[%s2017_s7 + $0x8] sm:$0xff]  ;;  %v1556_v2 = vld [vmem:[%s2022_s10 + $0x58] sm:$0xf]  ;;  %v1792_v3 = vld [vmem:[%s2022_s10 + $0x5c] sm:$0xf0]  ;;  %vm314_vm1 = vcmask 130048  }
  0x24   : > { %v1557_v4 = vor.u32 %v1792_v3, %v1556_v2  ;;  %v1560_v5 = vld [vmem:[%s2022_s10 + $0x68] sm:$0xf]  ;;  %v1793_v6 = vld [vmem:[%s2022_s10 + $0x6c] sm:$0xf0]  ;;  %v1564_v7 = vld [vmem:[%s2022_s10 + $0x78] sm:$0xf]  ;;  %1819 = vmatpush.bf16.msra.mxu1 %v1795_v1  ;;  %1820 = vmatpush.bf16.msra.mxu2 %v1795_v1 }
  0x25   : > { %v1561_v8 = vor.u32 %v1793_v6, %v1560_v5  ;;  %v1794_v9 = vld [vmem:[%s2022_s10 + $0x7c] sm:$0xf0]  ;;  %v1796_v10 = vld [vmem:[%s2017_s7 + $0x10] sm:$0xff]  ;;  %v1552_v11 = vld [vmem:[%s2022_s10 + $0x48] sm:$0xf]  ;;  %1821 = vmatpush.bf16.msra.mxu3 %v1795_v1  ;;  %334 = vmatpush.bf16.msra.mxu0 %v1795_v1  ;;  %p1782_p10 = scmp.ne.s32.totalorder %s1912_s12, 2 }
  0x26   : > { %v1565_v12 = vor.u32 %v1794_v9, %v1564_v7  ;;  %v1791_v13 = vld [vmem:[%s2022_s10 + $0x4c] sm:$0xf0]  ;;  %v1801_v14 = vld [vmem:[%s2017_s7 + $0x18] sm:$0xff]  ;;  %v1790_v15 = vld [vmem:[%s2017_s7] sm:$0xff]  ;;  %vm439_vm2 = vsmask.f32 3328 }
  0x27   : > { %v1553_v16 = vor.u32 %v1791_v13, %v1552_v11  ;;  %v1806_v17 = vld [vmem:[%s2017_s7 + $0x20] sm:$0xff]  ;;  %1571 = vmatmul.msk.bf16.vlgmr.msra.gmra.mxu1 %vm314_vm1, %v1557_v4  ;;  %1572 = vmatmul.msk.bf16.vlgmr.msra.gmra.mxu2 %vm314_vm1, %v1561_v8  ;;  %v425_v20 = vld [vmem:[%s2022_s10 + $0x8] sm:$0xf]  ;;  %v426_v21 = vld [vmem:[%s2022_s10 + $0xc] sm:$0x1] }
  0x28   : > { %593 = vmatpush.bf16.msrb.mxu2 %v1796_v10  ;;  %v423_v18 = vld [vmem:[%s2022_s10] sm:$0xf]  ;;  %v424_v19 = vld [vmem:[%s2022_s10 + $0x4] sm:$0x1]  ;;  %1573 = vmatmul.msk.bf16.vlgmr.msra.gmra.mxu3 %vm314_vm1, %v1565_v12  ;;  %v457_v25 = vshrl.u32 %v425_v20, 16  ;;  %v460_v26 = vshll.u32 %v425_v20, 16 }
  0x29   : > { %1570 = vmatmul.msk.bf16.vlgmr.msra.gmra.mxu0 %vm314_vm1, %v1553_v16  ;;  %v443_v22 = vshrl.u32 %v423_v18, 16  ;;  %v446_v23 = vshll.u32 %v423_v18, 16  ;;  %679 = vmatpush.bf16.msrb.mxu3 %v1801_v14  ;;  %v452_v24 = vshll.u32 %v424_v19, 16  ;;  %v466_v27 = vshll.u32 %v426_v21, 16  ;;  %v1812_v30 = vld [vmem:[%s2017_s7 + $0x30] sm:$0xff]  ;;  %v1817_v31 = vld [vmem:[%s2017_s7 + $0x38] sm:$0xff] }
  0x2a   : > { %401 = vmatpush.bf16.msrb.mxu1 %v1790_v15  ;;  %765 = vmatpush.bf16.msrb.mxu0 %v1806_v17  ;;  %vm440_vm3 = vsmask.f32 7440  ;;  %v459_v32 = vrot.slane %v457_v25, 4  ;;  %v462_v33 = vrot.slane %v460_v26, 5  ;;  %v1807_v36 = vld [vmem:[%s2017_s7 + $0x28] sm:$0xff]  ;;  %v1818_v37 = vld [vmem:[%s2017_s7 + $0x40] sm:$0xff] }
  0x2b   : > { %v445_v28 = vrot.slane %v443_v22, 4  ;;  %v448_v29 = vrot.slane %v446_v23, 5  ;;  %v454_v35 = vrot.slane %v452_v24, 5  ;;  %vm2056_vm4 = vmor %vm439_vm2, %vm440_vm3  ;;  %v468_v40 = vrot.slane %v466_v27, 5  ;;  %v427_v41 = vld [vmem:[%s2022_s10 + $0x10] sm:$0xf] }
  0x2c   : > { %1048 = vmatpush.bf16.msra.mxu2 %v1812_v30  ;;  %v463_v39 = vor.u32 %v462_v33, %v459_v32  ;;  %v1576_v42 = vld [vmem:[%s2022_s10] sm:$0xf]  ;;  %v1786_v43 = vld [vmem:[%s2022_s10 + $0x4] sm:$0xf0]  ;;  %v1616_v45 = vld [vmem:[%s2022_s10 + $0x90] sm:$0xf] }
  0x2d   : > { %v449_v34 = vor.u32 %v448_v29, %v445_v28  ;;  %1134 = vmatpush.bf16.msra.mxu3 %v1817_v31  ;;  %v1797_v46 = vld [vmem:[%s2022_s10 + $0x94] sm:$0xf0]  ;;  %v471_v48 = vshrl.u32 %v427_v41, 16  ;;  %v474_v51 = vshll.u32 %v427_v41, 16  ;;  %v1802_v54 = vld [vmem:[%s2022_s10 + $0xdc] sm:$0xf0]  ;;  %v1577_v1 = vor.u32 %v1786_v43, %v1576_v42 }
  0x2e   : > { %962 = vmatpush.bf16.msra.mxu1 %v1807_v36  ;;  %1331 = vmatpush.bf16.msra.mxu0 %v1818_v37  ;;  %v429_v47 = vld [vmem:[%s2022_s10 + $0x18] sm:$0xf]  ;;  %v464_v49 = vrot.slane %v463_v39, 4  ;;  %v428_v55 = vld [vmem:[%s2022_s10 + $0x14] sm:$0x1]  ;;  %v1617_v2 = vor.u32 %v1797_v46, %v1616_v45 }
  0x2f   : > { %v450_v44 = vrot.slane %v449_v34, 4  ;;  %v1648_v50 = vld [vmem:[%s2022_s10 + $0xd8] sm:$0xf]  ;;  %v485_v52 = vshrl.u32 %v429_v47, 16  ;;  %v473_v56 = vrot.slane %v471_v48, 4  ;;  %v488_v57 = vshll.u32 %v429_v47, 16 }
  0x30   : > { %v469_v58 = vsel %vm2056_vm4, %v464_v49, %v468_v40  ;;  %v430_v60 = vld [vmem:[%s2022_s10 + $0x1c] sm:$0x1]  ;;  %v476_v61 = vrot.slane %v474_v51, 5  ;;  %v1649_v3 = vor.u32 %v1802_v54, %v1648_v50  ;;  %v480_v4 = vshll.u32 %v428_v55, 16  ;;  %v431_v13 = vld [vmem:[%s2022_s10 + $0x20] sm:$0xf] }
  0x31   : > { %v455_v53 = vsel %vm2056_vm4, %v450_v44, %v454_v35  ;;  %v557_v62 = vunpack.c.l.b16 %v469_v58  ;;  %v487_v63 = vrot.slane %v485_v52, 4  ;;  %v490_v0 = vrot.slane %v488_v57, 5  ;;  %v433_v14 = vld [vmem:[%s2022_s10 + $0x28] sm:$0xf]  ;;  %v1580_v21 = vld [vmem:[%s2022_s10 + $0x10] sm:$0xf] }
  0x32   : > { %v556_v59 = vunpack.c.l.b16 %v455_v53  ;;  %v477_v6 = vor.u32 %v476_v61, %v473_v56  ;;  %v494_v8 = vshll.u32 %v430_v60, 16  ;;  %v482_v10 = vrot.slane %v480_v4, 5  ;;  %v1787_v22 = vld [vmem:[%s2022_s10 + $0x14] sm:$0xf0]  ;;  %v1620_v25 = vld [vmem:[%s2022_s10 + $0xa0] sm:$0xf] }
  0x33   : > { %v491_v7 = vor.u32 %v490_v0, %v487_v63  ;;  %v499_v15 = vshrl.u32 %v431_v13, 16  ;;  %v502_v16 = vshll.u32 %v431_v13, 16  ;;  %v513_v19 = vshrl.u32 %v433_v14, 16  ;;  %v1798_v26 = vld [vmem:[%s2022_s10 + $0xa4] sm:$0xf0] }
  0x34   : > { %v564_v5 = vpack.c.b16 %v557_v62, %v556_v59  ;;  %v478_v9 = vrot.slane %v477_v6, 4  ;;  %v496_v12 = vrot.slane %v494_v8, 5  ;;  %v516_v20 = vshll.u32 %v433_v14, 16  ;;  %v1652_v27 = vld [vmem:[%s2022_s10 + $0xe8] sm:$0xf] }
  0x35   : > { %v492_v11 = vrot.slane %v491_v7, 4  ;;  %v1803_v28 = vld [vmem:[%s2022_s10 + $0xec] sm:$0xf0]  ;;  %v501_v29 = vrot.slane %v499_v15, 4  ;;  %v504_v30 = vrot.slane %v502_v16, 5  ;;  %v515_v31 = vrot.slane %v513_v19, 4 }
  0x36   : > { %v483_v17 = vsel %vm2056_vm4, %v478_v9, %v482_v10  ;;  %v518_v32 = vrot.slane %v516_v20, 5  ;;  %v432_v33 = vld [vmem:[%s2022_s10 + $0x24] sm:$0x1]  ;;  %v434_v34 = vld [vmem:[%s2022_s10 + $0x2c] sm:$0x1]  ;;  %v1581_v35 = vor.u32 %v1787_v22, %v1580_v21  ;;  %v1621_v37 = vor.u32 %v1798_v26, %v1620_v25 }
  0x37   : > { %1594 = vmatmul.msk.bf16.vlgmr.msrb.gmra.mxu1 %vm314_vm1, %v1577_v1  ;;  %1602 = vmatmul.msk.bf16.vlgmr.msrb.gmra.mxu2 %vm314_vm1, %v564_v5  ;;  %v497_v18 = vsel %vm2056_vm4, %v492_v11, %v496_v12  ;;  %v558_v23 = vunpack.c.l.b16 %v483_v17  ;;  %v1653_v39 = vor.u32 %v1803_v28, %v1652_v27  ;;  %v505_v40 = vor.u32 %v504_v30, %v501_v29  ;;  %v435_v44 = vld [vmem:[%s2022_s10 + $0x30] sm:$0xf]  ;;  %v437_v45 = vld [vmem:[%s2022_s10 + $0x38] sm:$0xf]  ;;  %v436_v60 = vld [vmem:[%s2022_s10 + $0x34] sm:$0x1] }
  0x38   : > { %1634 = vmatmul.msk.bf16.vlgmr.msrb.gmra.mxu3 %vm314_vm1, %v1617_v2  ;;  %v559_v24 = vunpack.c.l.b16 %v497_v18  ;;  %v508_v41 = vshll.u32 %v432_v33, 16  ;;  %v519_v42 = vor.u32 %v518_v32, %v515_v31  ;;  %v522_v43 = vshll.u32 %v434_v34, 16  ;;  %v438_v61 = vld [vmem:[%s2022_s10 + $0x3c] sm:$0x1]  ;;  %v1584_v62 = vld [vmem:[%s2022_s10 + $0x20] sm:$0xf] }
  0x39   : > { %1666 = vmatmul.msk.bf16.vlgmr.msrb.gmra.mxu0 %vm314_vm1, %v1649_v3  ;;  %v506_v46 = vrot.slane %v505_v40, 4  ;;  %v527_v50 = vshrl.u32 %v435_v44, 16  ;;  %v530_v51 = vshll.u32 %v435_v44, 16  ;;  %v541_v52 = vshrl.u32 %v437_v45, 16  ;;  %v1788_v1 = vld [vmem:[%s2022_s10 + $0x24] sm:$0xf0] }
  0x3a   : > { %v565_v36 = vpack.c.b16 %v559_v24, %v558_v23  ;;  %v510_v47 = vrot.slane %v508_v41, 5  ;;  %v520_v48 = vrot.slane %v519_v42, 4  ;;  %v524_v49 = vrot.slane %v522_v43, 5  ;;  %v1624_v2 = vld [vmem:[%s2022_s10 + $0xb0] sm:$0xf] }
  0x3b   : > { %v544_v53 = vshll.u32 %v437_v45, 16  ;;  %v529_v56 = vrot.slane %v527_v50, 4  ;;  %v532_v57 = vrot.slane %v530_v51, 5  ;;  %v543_v58 = vrot.slane %v541_v52, 4  ;;  %v1799_v3 = vld [vmem:[%s2022_s10 + $0xb4] sm:$0xf0] }
  0x3c   : > { %v511_v54 = vsel %vm2056_vm4, %v506_v46, %v510_v47  ;;  %v525_v55 = vsel %vm2056_vm4, %v520_v48, %v524_v49  ;;  %v1656_v4 = vld [vmem:[%s2022_s10 + $0xf8] sm:$0xf]  ;;  %v1804_v5 = vld [vmem:[%s2022_s10 + $0xfc] sm:$0xf0]  ;;  %v536_v7 = vshll.u32 %v436_v60, 16  ;;  %v550_v9 = vshll.u32 %v438_v61, 16 }
  0x3d   : > { %v546_v59 = vrot.slane %v544_v53, 5  ;;  %v560_v63 = vunpack.c.l.b16 %v511_v54  ;;  %v561_v0 = vunpack.c.l.b16 %v525_v55  ;;  %v533_v6 = vor.u32 %v532_v57, %v529_v56  ;;  %v1670_v18 = vld [vmem:[%s2022_s10 + $0x90] sm:$0xf]  ;;  %v1672_v19 = vld [vmem:[%s2022_s10 + $0x98] sm:$0xf] }
  0x3e   : > { %v1585_v10 = vor.u32 %v1788_v1, %v1584_v62  ;;  %v1625_v12 = vor.u32 %v1799_v3, %v1624_v2  ;;  %v1657_v13 = vor.u32 %v1804_v5, %v1656_v4  ;;  %v538_v15 = vrot.slane %v536_v7, 5  ;;  %v1758_v20 = vld [vmem:[%s2022_s10 + $0x8] sm:$0xf]  ;;  %v1760_v21 = vld [vmem:[%s2022_s10 + $0x10] sm:$0xf] }
  0x3f   : > { %v547_v8 = vor.u32 %v546_v59, %v543_v58  ;;  %v566_v11 = vpack.c.b16 %v561_v0, %v560_v63  ;;  %v534_v14 = vrot.slane %v533_v6, 4  ;;  %v552_v17 = vrot.slane %v550_v9, 5  ;;  %v1588_v32 = vld [vmem:[%s2022_s10 + $0x30] sm:$0xf]  ;;  %v1789_v33 = vld [vmem:[%s2022_s10 + $0x34] sm:$0xf0] }
  0x40   : > { %v812_v24 = vshrl.u32 %v1670_v18, 16  ;;  %v815_v25 = vshll.u32 %v1670_v18, 16  ;;  %v826_v26 = vshrl.u32 %v1672_v19, 16  ;;  %v829_v27 = vshll.u32 %v1672_v19, 16  ;;  %v1673_v42 = vld [vmem:[%s2022_s10 + $0x9c] sm:$0x1] }
  0x41   : > { %v548_v16 = vrot.slane %v547_v8, 4  ;;  %v539_v22 = vsel %vm2056_vm4, %v534_v14, %v538_v15  ;;  %v1181_v28 = vshrl.u32 %v1758_v20, 16  ;;  %v1184_v29 = vshll.u32 %v1758_v20, 16  ;;  %v1628_v47 = vld [vmem:[%s2022_s10 + $0xc0] sm:$0xf] }
  0x42   : > { %v1195_v30 = vshrl.u32 %v1760_v21, 16  ;;  %v1198_v31 = vshll.u32 %v1760_v21, 16  ;;  %v562_v34 = vunpack.c.l.b16 %v539_v22  ;;  %v828_v40 = vrot.slane %v826_v26, 4  ;;  %v1759_v48 = vld [vmem:[%s2022_s10 + $0xc] sm:$0x1] }
  0x43   : > { %v553_v23 = vsel %vm2056_vm4, %v548_v16, %v552_v17  ;;  %v831_v41 = vrot.slane %v829_v27, 5  ;;  %v1183_v43 = vrot.slane %v1181_v28, 4  ;;  %v1186_v44 = vrot.slane %v1184_v29, 5  ;;  %v1761_v49 = vld [vmem:[%s2022_s10 + $0x14] sm:$0x1] }
  0x44   : > { %v1197_v45 = vrot.slane %v1195_v30, 4  ;;  %v1200_v46 = vrot.slane %v1198_v31, 5  ;;  %v1589_v50 = vor.u32 %v1789_v33, %v1588_v32  ;;  %v1800_v52 = vld [vmem:[%s2022_s10 + $0xc4] sm:$0xf0]  ;;  %v1805_v54 = vld [vmem:[%s2022_s10 + $0x10c] sm:$0xf0] }
  0x45   : > { %v1660_v53 = vld [vmem:[%s2022_s10 + $0x108] sm:$0xf]  ;;  %v832_v57 = vor.u32 %v831_v41, %v828_v40  ;;  %v835_v58 = vshll.u32 %v1673_v42, 16  ;;  %v1187_v59 = vor.u32 %v1186_v44, %v1183_v43  ;;  %v1190_v60 = vshll.u32 %v1759_v48, 16  ;;  %v1674_v1 = vld [vmem:[%s2022_s10 + $0xa0] sm:$0xf] }
  0x46   : > { %v1201_v61 = vor.u32 %v1200_v46, %v1197_v45  ;;  %v1204_v62 = vshll.u32 %v1761_v49, 16  ;;  %v1629_v63 = vor.u32 %v1800_v52, %v1628_v47  ;;  %v1661_v0 = vor.u32 %v1805_v54, %v1660_v53  ;;  %v1676_v2 = vld [vmem:[%s2022_s10 + $0xa8] sm:$0xf]  ;;  %v1762_v15 = vld [vmem:[%s2022_s10 + $0x18] sm:$0xf] }
  0x47   : > { %1595 = vmatmul.msk.bf16.gmra.mxu1 %vm314_vm1, %v1581_v35  ;;  %1603 = vmatmul.msk.bf16.gmra.mxu2 %vm314_vm1, %v565_v36  ;;  %v563_v35 = vunpack.c.l.b16 %v553_v23  ;;  %v1671_v36 = vld [vmem:[%s2022_s10 + $0x94] sm:$0x1]  ;;  %v833_v5 = vrot.slane %v832_v57, 4  ;;  %v837_v6 = vrot.slane %v835_v58, 5  ;;  %v1188_v7 = vrot.slane %v1187_v59, 4 }
  0x48   : > { %1635 = vmatmul.msk.bf16.gmra.mxu3 %vm314_vm1, %v1621_v37  ;;  %v814_v37 = vrot.slane %v812_v24, 4  ;;  %v821_v56 = vshll.u32 %v1671_v36, 16  ;;  %v1192_v8 = vrot.slane %v1190_v60, 5  ;;  %v1202_v9 = vrot.slane %v1201_v61, 4  ;;  %v1764_v16 = vld [vmem:[%s2022_s10 + $0x20] sm:$0xf] }
  0x49   : > { %1667 = vmatmul.msk.bf16.gmra.mxu0 %vm314_vm1, %v1653_v39  ;;  %v817_v39 = vrot.slane %v815_v25, 5  ;;  %v567_v51 = vpack.c.b16 %v563_v35, %v562_v34  ;;  %v857_v14 = vshll.u32 %v1676_v2, 16  ;;  %v838_v18 = vsel %vm2056_vm4, %v833_v5, %v837_v6  ;;  %v1675_v21 = vld [vmem:[%s2022_s10 + $0xa4] sm:$0x1]  ;;  %v1677_v26 = vld [vmem:[%s2022_s10 + $0xac] sm:$0x1] }
  0x4a   : > { %v823_v4 = vrot.slane %v821_v56, 5  ;;  %v1193_v19 = vsel %vm2056_vm4, %v1188_v7, %v1192_v8  ;;  %v1209_v27 = vshrl.u32 %v1762_v15, 16  ;;  %v1212_v28 = vshll.u32 %v1762_v15, 16  ;;  %v1704_v33 = vld [vmem:[%s2022_s10 + $0x8] sm:$0xf] }
  0x4b   : > { %v818_v55 = vor.u32 %v817_v39, %v814_v37  ;;  %v859_v25 = vrot.slane %v857_v14, 5  ;;  %v1223_v29 = vshrl.u32 %v1764_v16, 16  ;;  %v1226_v30 = vshll.u32 %v1764_v16, 16  ;;  %v1808_v34 = vld [vmem:[%s2022_s10 + $0xc] sm:$0xf0] }
  0x4c   : > { %v926_v32 = vunpack.c.l.b16 %v838_v18  ;;  %v1294_v35 = vunpack.c.l.b16 %v1193_v19  ;;  %v1736_v37 = vld [vmem:[%s2022_s10 + $0x50] sm:$0xf]  ;;  %v1813_v39 = vld [vmem:[%s2022_s10 + $0x54] sm:$0xf0]  ;;  %v849_v41 = vshll.u32 %v1675_v21, 16  ;;  %v863_v43 = vshll.u32 %v1677_v26, 16 }
  0x4d   : > { %v819_v3 = vrot.slane %v818_v55, 4  ;;  %v1211_v44 = vrot.slane %v1209_v27, 4  ;;  %v1214_v45 = vrot.slane %v1212_v28, 5  ;;  %v1225_v46 = vrot.slane %v1223_v29, 4  ;;  %v1763_v48 = vld [vmem:[%s2022_s10 + $0x1c] sm:$0x1] }
  0x4e   : > { %v1228_v47 = vrot.slane %v1226_v30, 5  ;;  %v1765_v49 = vld [vmem:[%s2022_s10 + $0x24] sm:$0x1]  ;;  %v1737_v52 = vor.u32 %v1813_v39, %v1736_v37  ;;  %v851_v55 = vrot.slane %v849_v41, 5  ;;  %v865_v57 = vrot.slane %v863_v43, 5 }
  0x4f   : > { %v824_v17 = vsel %vm2056_vm4, %v819_v3, %v823_v4  ;;  %v1215_v58 = vor.u32 %v1214_v45, %v1211_v44  ;;  %v1218_v59 = vshll.u32 %v1763_v48, 16  ;;  %v1232_v61 = vshll.u32 %v1765_v49, 16  ;;  %v1768_v3 = vld [vmem:[%s2022_s10 + $0x30] sm:$0xf]  ;;  %v1708_v18 = vld [vmem:[%s2022_s10 + $0x18] sm:$0xf] }
  0x50   : > { %v925_v31 = vunpack.c.l.b16 %v824_v17  ;;  %v1229_v60 = vor.u32 %v1228_v47, %v1225_v46  ;;  %v1251_v14 = vshrl.u32 %v1768_v3, 16  ;;  %v1254_v15 = vshll.u32 %v1768_v3, 16  ;;  %v1809_v19 = vld [vmem:[%s2022_s10 + $0x1c] sm:$0xf0]  ;;  %v1681_v27 = vld [vmem:[%s2022_s10 + $0xbc] sm:$0x1] }
  0x51   : > { %v1216_v4 = vrot.slane %v1215_v58, 4  ;;  %v1220_v5 = vrot.slane %v1218_v59, 5  ;;  %v1234_v7 = vrot.slane %v1232_v61, 5  ;;  %v1709_v37 = vor.u32 %v1809_v19, %v1708_v18  ;;  %v1740_v39 = vld [vmem:[%s2022_s10 + $0x60] sm:$0xf] }
  0x52   : > { %v1230_v6 = vrot.slane %v1229_v60, 4  ;;  %v1253_v30 = vrot.slane %v1251_v14, 4  ;;  %v891_v44 = vshll.u32 %v1681_v27, 16  ;;  %v1682_v59 = vld [vmem:[%s2022_s10 + $0xc0] sm:$0xf] }
  0x53   : > { %v1684_v60 = vld [vmem:[%s2022_s10 + $0xc8] sm:$0xf]  ;;  %v1770_v61 = vld [vmem:[%s2022_s10 + $0x38] sm:$0xf]  ;;  %v896_v3 = vshrl.u32 %v1682_v59, 16 }
  0x54   : > { %v1235_v21 = vsel %vm2056_vm4, %v1230_v6, %v1234_v7  ;;  %v913_v6 = vshll.u32 %v1684_v60, 16  ;;  %v1265_v7 = vshrl.u32 %v1770_v61, 16  ;;  %v1810_v14 = vld [vmem:[%s2022_s10 + $0x2c] sm:$0xf0]  ;;  %v1683_v19 = vld [vmem:[%s2022_s10 + $0xc4] sm:$0x1] }
  0x57   : > { %1596 = vmatmul.msk.bf16.gmra.mxu1 %vm314_vm1, %v1585_v10  ;;  %1604 = vmatmul.msk.bf16.gmra.mxu2 %vm314_vm1, %v566_v11  ;;  %v1206_v10 = vrot.slane %v1204_v62, 5  ;;  %v840_v11 = vshrl.u32 %v1674_v1, 16  ;;  %v1678_v62 = vld [vmem:[%s2022_s10 + $0xb0] sm:$0xf] }
  0x58   : > { %1636 = vmatmul.msk.bf16.gmra.mxu3 %vm314_vm1, %v1625_v12  ;;  %v843_v12 = vshll.u32 %v1674_v1, 16  ;;  %v868_v8 = vshrl.u32 %v1678_v62, 16 }
  0x59   : > { %1668 = vmatmul.msk.bf16.gmra.mxu0 %vm314_vm1, %v1657_v13  ;;  %v854_v13 = vshrl.u32 %v1676_v2, 16  ;;  %v1207_v20 = vsel %vm2056_vm4, %v1202_v9, %v1206_v10  ;;  %v842_v22 = vrot.slane %v840_v11, 4  ;;  %v1766_v2 = vld [vmem:[%s2022_s10 + $0x28] sm:$0xf]  ;;  %v871_v9 = vshll.u32 %v1678_v62, 16 }
  0x5a   : > { %v845_v23 = vrot.slane %v843_v12, 5  ;;  %v1295_v36 = vunpack.c.l.b16 %v1207_v20  ;;  %v1237_v12 = vshrl.u32 %v1766_v2, 16  ;;  %v1221_v20 = vsel %vm2056_vm4, %v1216_v4, %v1220_v5  ;;  %v1772_v62 = vld [vmem:[%s2022_s10 + $0x40] sm:$0xf] }
  0x5b   : > { %v856_v24 = vrot.slane %v854_v13, 4  ;;  %v1240_v13 = vshll.u32 %v1766_v2, 16  ;;  %v899_v4 = vshll.u32 %v1682_v59, 16  ;;  %v910_v5 = vshrl.u32 %v1684_v60, 16  ;;  %v1811_v59 = vld [vmem:[%s2022_s10 + $0x3c] sm:$0xf0] }
  0x5c   : > { %v846_v40 = vor.u32 %v845_v23, %v842_v22  ;;  %v1302_v53 = vpack.c.b16 %v1295_v36, %v1294_v35  ;;  %v1679_v22 = vld [vmem:[%s2022_s10 + $0xb4] sm:$0x1]  ;;  %v870_v23 = vrot.slane %v868_v8, 4  ;;  %v1239_v28 = vrot.slane %v1237_v12, 4 }
  0x5d   : > { %v860_v42 = vor.u32 %v859_v25, %v856_v24  ;;  %v873_v24 = vrot.slane %v871_v9, 5  ;;  %v1242_v29 = vrot.slane %v1240_v13, 5  ;;  %v1769_v35 = vld [vmem:[%s2022_s10 + $0x34] sm:$0x1]  ;;  %v1268_v8 = vshll.u32 %v1770_v61, 16 }
  0x5e   : > { %v847_v54 = vrot.slane %v846_v40, 4  ;;  %v1814_v40 = vld [vmem:[%s2022_s10 + $0x64] sm:$0xf0]  ;;  %v1260_v48 = vshll.u32 %v1769_v35, 16  ;;  %v1279_v9 = vshrl.u32 %v1772_v62, 16 }
  0x5f   : > { %v861_v56 = vrot.slane %v860_v42, 4  ;;  %v874_v41 = vor.u32 %v873_v24, %v870_v23  ;;  %v877_v42 = vshll.u32 %v1679_v22, 16  ;;  %v1243_v45 = vor.u32 %v1242_v29, %v1239_v28  ;;  %v1685_v24 = vld [vmem:[%s2022_s10 + $0xcc] sm:$0x1]  ;;  %v1771_v29 = vld [vmem:[%s2022_s10 + $0x3c] sm:$0x1] }
  0x60   : > { %v1741_v49 = vor.u32 %v1814_v40, %v1740_v39  ;;  %v1262_v58 = vrot.slane %v1260_v48, 5  ;;  %v912_v22 = vrot.slane %v910_v5, 4  ;;  %v915_v23 = vrot.slane %v913_v6, 5 }
  0x61   : > { %v866_v1 = vsel %vm2056_vm4, %v861_v56, %v865_v57  ;;  %v1281_v27 = vrot.slane %v1279_v9, 4  ;;  %v919_v39 = vshll.u32 %v1685_v24, 16 }
  0x62   : > { %v928_v17 = vunpack.c.l.b16 %v866_v1 }
  0x67   : > { %1597 = vmatmul.msk.bf16.gmra.mxu1 %vm314_vm1, %v1589_v50  ;;  %1605 = vmatmul.msk.bf16.gmra.mxu2 %vm314_vm1, %v567_v51  ;;  %v933_v50 = vpack.c.b16 %v926_v32, %v925_v31  ;;  %v1705_v51 = vor.u32 %v1808_v34, %v1704_v33  ;;  %v1256_v31 = vrot.slane %v1254_v15, 5  ;;  %v1296_v32 = vunpack.c.l.b16 %v1221_v20  ;;  %v1767_v34 = vld [vmem:[%s2022_s10 + $0x2c] sm:$0x1]  ;;  %v1744_v15 = vld [vmem:[%s2022_s10 + $0x70] sm:$0xf] }
  0x68   : > { %1637 = vmatmul.msk.bf16.gmra.mxu3 %vm314_vm1, %v1629_v63  ;;  %v1680_v63 = vld [vmem:[%s2022_s10 + $0xb8] sm:$0xf]  ;;  %v1297_v33 = vunpack.c.l.b16 %v1235_v21  ;;  %v1246_v46 = vshll.u32 %v1767_v34, 16  ;;  %v898_v20 = vrot.slane %v896_v3, 4  ;;  %v901_v21 = vrot.slane %v899_v4, 5 }
  0x69   : > { %1669 = vmatmul.msk.bf16.gmra.mxu0 %vm314_vm1, %v1661_v0  ;;  %v852_v0 = vsel %vm2056_vm4, %v847_v54, %v851_v55  ;;  %v882_v10 = vshrl.u32 %v1680_v63, 16  ;;  %v885_v11 = vshll.u32 %v1680_v63, 16  ;;  %v1257_v47 = vor.u32 %v1256_v31, %v1253_v30  ;;  %v1773_v30 = vld [vmem:[%s2022_s10 + $0x44] sm:$0x1] }
  0x6a   : > { %v927_v16 = vunpack.c.l.b16 %v852_v0  ;;  %v893_v54 = vrot.slane %v891_v44, 5  ;;  %v1244_v55 = vrot.slane %v1243_v45, 4  ;;  %v1248_v56 = vrot.slane %v1246_v46, 5 }
  0x6b   : > { %v884_v25 = vrot.slane %v882_v10, 4  ;;  %v887_v26 = vrot.slane %v885_v11, 5  ;;  %v1258_v57 = vrot.slane %v1257_v47, 4  ;;  %v1282_v10 = vshll.u32 %v1772_v62, 16  ;;  %v1712_v11 = vld [vmem:[%s2022_s10 + $0x28] sm:$0xf] }
  0x6c   : > { %v934_v36 = vpack.c.b16 %v928_v17, %v927_v16  ;;  %v1249_v1 = vsel %vm2056_vm4, %v1244_v55, %v1248_v56  ;;  %v1815_v16 = vld [vmem:[%s2022_s10 + $0x74] sm:$0xf0]  ;;  %v902_v35 = vor.u32 %v901_v21, %v898_v20  ;;  %v921_v47 = vrot.slane %v919_v39, 5  ;;  %v1748_v62 = vld [vmem:[%s2022_s10 + $0x80] sm:$0xf] }
  0x6d   : > { %v888_v43 = vor.u32 %v887_v26, %v884_v25  ;;  %v1263_v2 = vsel %vm2056_vm4, %v1258_v57, %v1262_v58  ;;  %v1298_v17 = vunpack.c.l.b16 %v1249_v1  ;;  %v1267_v25 = vrot.slane %v1265_v7, 4  ;;  %v1716_v58 = vld [vmem:[%s2022_s10 + $0x38] sm:$0xf] }
  0x6e   : > { %v1299_v18 = vunpack.c.l.b16 %v1263_v2  ;;  %v1270_v26 = vrot.slane %v1268_v8, 5  ;;  %v1284_v28 = vrot.slane %v1282_v10, 5  ;;  %v903_v44 = vrot.slane %v902_v35, 4 }
  0x6f   : > { %v1717_v1 = vor.u32 %v1811_v59, %v1716_v58 }
  0x70   : > { %v1304_v34 = vpack.c.b16 %v1299_v18, %v1298_v17  ;;  %v1271_v40 = vor.u32 %v1270_v26, %v1267_v25 }
  0x72   : > { %v1272_v48 = vrot.slane %v1271_v40, 4 }
  0x77   : > { %1690 = vmatmul.msk.bf16.vlgmr.msra.gmra.mxu1 %vm314_vm1, %v933_v50  ;;  %1722 = vmatmul.msk.bf16.vlgmr.msra.gmra.mxu2 %vm314_vm1, %v1705_v51  ;;  %v1303_v50 = vpack.c.b16 %v1297_v33, %v1296_v32  ;;  %v875_v51 = vrot.slane %v874_v41, 4  ;;  %v1713_v32 = vor.u32 %v1810_v14, %v1712_v11  ;;  %v1745_v33 = vor.u32 %v1815_v16, %v1744_v15 }
  0x78   : > { %1754 = vmatmul.msk.bf16.vlgmr.msra.gmra.mxu3 %vm314_vm1, %v1737_v52  ;;  %v879_v52 = vrot.slane %v877_v42, 5  ;;  %v1274_v41 = vshll.u32 %v1771_v29, 16  ;;  %v1285_v42 = vor.u32 %v1284_v28, %v1281_v27 }
  0x79   : > { %1778 = vmatmul.msk.bf16.vlgmr.msra.gmra.mxu0 %vm314_vm1, %v1302_v53  ;;  %v889_v53 = vrot.slane %v888_v43, 4  ;;  %v1288_v43 = vshll.u32 %v1773_v30, 16 }
  0x7a   : > { %v880_v63 = vsel %vm2056_vm4, %v875_v51, %v879_v52 }
  0x7b   : > { %v894_v0 = vsel %vm2056_vm4, %v889_v53, %v893_v54  ;;  %v929_v12 = vunpack.c.l.b16 %v880_v63  ;;  %v1290_v51 = vrot.slane %v1288_v43, 5  ;;  %v1816_v63 = vld [vmem:[%s2022_s10 + $0x84] sm:$0xf0] }
  0x7c   : > { %v930_v13 = vunpack.c.l.b16 %v894_v0  ;;  %v1749_v3 = vor.u32 %v1816_v63, %v1748_v62 }
  0x7e   : > { %v935_v31 = vpack.c.b16 %v930_v13, %v929_v12 }
  0x87   : > { %1691 = vmatmul.msk.bf16.gmra.mxu1 %vm314_vm1, %v934_v36  ;;  %1723 = vmatmul.msk.bf16.gmra.mxu2 %vm314_vm1, %v1709_v37  ;;  %v905_v36 = vshll.u32 %v1683_v19, 16  ;;  %v916_v37 = vor.u32 %v915_v23, %v912_v22 }
  0x88   : > { %1755 = vmatmul.msk.bf16.gmra.mxu3 %vm314_vm1, %v1741_v49  ;;  %v1276_v49 = vrot.slane %v1274_v41, 5 }
  0x89   : > { %1779 = vmatmul.msk.bf16.gmra.mxu0 %vm314_vm1, %v1303_v50  ;;  %v907_v45 = vrot.slane %v905_v36, 5  ;;  %v917_v46 = vrot.slane %v916_v37, 4  ;;  %v1286_v50 = vrot.slane %v1285_v42, 4 }
  0x8a   : > { %v1277_v54 = vsel %vm2056_vm4, %v1272_v48, %v1276_v49 }
  0x8b   : > { %v908_v52 = vsel %vm2056_vm4, %v903_v44, %v907_v45  ;;  %v922_v53 = vsel %vm2056_vm4, %v917_v46, %v921_v47  ;;  %v1291_v55 = vsel %vm2056_vm4, %v1286_v50, %v1290_v51  ;;  %v1300_v60 = vunpack.c.l.b16 %v1277_v54 }
  0x8c   : > { %v931_v56 = vunpack.c.l.b16 %v908_v52  ;;  %v932_v57 = vunpack.c.l.b16 %v922_v53  ;;  %v1301_v61 = vunpack.c.l.b16 %v1291_v55 }
  0x8e   : > { %v936_v0 = vpack.c.b16 %v932_v57, %v931_v56  ;;  %v1305_v4 = vpack.c.b16 %v1301_v61, %v1300_v60  ;;  %v1361_v61 = vld [vmem:[#allocation2] sm:$0xff] }
  0x97   : > { %1692 = vmatmul.msk.bf16.gmra.mxu1 %vm314_vm1, %v935_v31  ;;  %1724 = vmatmul.msk.bf16.gmra.mxu2 %vm314_vm1, %v1713_v32 }
  0x98   : > { %1756 = vmatmul.msk.bf16.gmra.mxu3 %vm314_vm1, %v1745_v33 }
  0x99   : > { %1780 = vmatmul.msk.bf16.gmra.mxu0 %vm314_vm1, %v1304_v34 }
  0xa4   : > { %v341_v2 = vpop.f32.mrf.mxu1 }
  0xa6   : > { %v336_v5 = vpop.f32.mrf.mxu0 }
  0xa7   : > { %1693 = vmatmul.msk.bf16.gmra.mxu1 %vm314_vm1, %v936_v0  ;;  %1725 = vmatmul.msk.bf16.gmra.mxu2 %vm314_vm1, %v1717_v1 }
  0xa8   : > { %1757 = vmatmul.msk.bf16.gmra.mxu3 %vm314_vm1, %v1749_v3 }
  0xa9   : > { %1781 = vmatmul.msk.bf16.gmra.mxu0 %vm314_vm1, %v1305_v4 }
  0xaa   : > { %v2224_v38 = vpop.f32.mrf.mxu2 }
  0xab   : > { %v2226_v6 = vpop.f32.mrf.mxu3 }
  0xac   : > { %v2228_v7 = vpop.f32.mrf.mxu1 }
  0xae   : > { %v338_v8 = vpop.f32.mrf.mxu0 }
  0xb2   : > { %v2230_v9 = vpop.f32.mrf.mxu2 }
  0xb3   : > { %v2232_v10 = vpop.f32.mrf.mxu3 }
  0xb4   : > { %v403_v11 = vpop.f32.mrf.mxu1 }
  0xb5   : > { %v404_v41 = vadd.f32 %v403_v11, %v336_v5 }
  0xb6   : > { %v767_v12 = vpop.f32.mrf.mxu0 }
  0xba   : > { %v595_v13 = vpop.f32.mrf.mxu2 }
  0xbb   : > { %v681_v14 = vpop.f32.mrf.mxu3  ;;  %v615_v43 = vadd.f32 %v595_v13, %v404_v41 }
  0xbc   : > { %v405_v15 = vpop.f32.mrf.mxu1 }
  0xbd   : > { %v701_v45 = vadd.f32 %v681_v14, %v615_v43  ;;  %v406_v48 = vadd.f32 %v405_v15, %v338_v8 }
  0xbe   : > { %v769_v16 = vpop.f32.mrf.mxu0 }
  0xbf   : > { %v787_v51 = vadd.f32 %v767_v12, %v701_v45 }
  0xc2   : > { %v597_v17 = vpop.f32.mrf.mxu2 }
  0xc3   : > { %v683_v18 = vpop.f32.mrf.mxu3  ;;  %v616_v50 = vadd.f32 %v597_v17, %v406_v48 }
  0xc4   : > { %v408_v19 = vpop.f32.mrf.mxu1 }
  0xc5   : > { %v702_v54 = vadd.f32 %v683_v18, %v616_v50  ;;  %v409_v58 = vadd.f32 %v408_v19, %v341_v2  ;;  %v1362_v2 = vld [vmem:[#allocation2 + $0x8] sm:$0xff]  ;;  %v1363_v50 = vld [vmem:[#allocation2 + $0x10] sm:$0xff] }
  0xc6   : > { %v772_v20 = vpop.f32.mrf.mxu0 }
  0xc7   : > { %v788_v0 = vadd.f32 %v769_v16, %v702_v54 }
  0xca   : > { %v600_v21 = vpop.f32.mrf.mxu2 }
  0xcb   : > { %v686_v22 = vpop.f32.mrf.mxu3  ;;  %v617_v62 = vadd.f32 %v600_v21, %v409_v58 }
  0xcc   : > { %v410_v23 = vpop.f32.mrf.mxu1 }
  0xcd   : > { %v703_v5 = vadd.f32 %v686_v22, %v617_v62  ;;  %v411_v13 = vadd.f32 %v410_v23, %v2228_v7 }
  0xce   : > { %v2234_v24 = vpop.f32.mrf.mxu0 }
  0xcf   : > { %v789_v19 = vadd.f32 %v772_v20, %v703_v5 }
  0xd2   : > { %v602_v25 = vpop.f32.mrf.mxu2 }
  0xd3   : > { %v688_v26 = vpop.f32.mrf.mxu3  ;;  %v618_v17 = vadd.f32 %v602_v25, %v411_v13 }
  0xd4   : > { %v413_v27 = vpop.f32.mrf.mxu1 }
  0xd5   : > { %v704_v43 = vadd.f32 %v688_v26, %v618_v17  ;;  %v414_v48 = vadd.f32 %v413_v27, %v2224_v38 }
  0xd6   : > { %v2236_v28 = vpop.f32.mrf.mxu0 }
  0xd7   : > { %v790_v25 = vadd.f32 %v2234_v24, %v704_v43 }
  0xda   : > { %v605_v29 = vpop.f32.mrf.mxu2 }
  0xdb   : > { %v2238_v30 = vpop.f32.mrf.mxu3  ;;  %v619_v23 = vadd.f32 %v605_v29, %v414_v48 }
  0xdc   : > { %v2240_v31 = vpop.f32.mrf.mxu1 }
  0xdd   : > { %v705_v54 = vadd.f32 %v2238_v30, %v619_v23  ;;  %v416_v38 = vadd.f32 %v2240_v31, %v2230_v9  ;;  %v1368_v23 = vld [vmem:[#allocation2 + $0x38] sm:$0xff] }
  0xde   : > { %v2242_v32 = vpop.f32.mrf.mxu0 }
  0xdf   : > { %v791_v24 = vadd.f32 %v2236_v28, %v705_v54 }
  0xe2   : > { %v2244_v33 = vpop.f32.mrf.mxu2 }
  0xe3   : > { %v2246_v34 = vpop.f32.mrf.mxu3  ;;  %v620_v29 = vadd.f32 %v2244_v33, %v416_v38 }
  0xe4   : > { %v2248_v35 = vpop.f32.mrf.mxu1 }
  0xe5   : > { %v706_v30 = vadd.f32 %v2246_v34, %v620_v29  ;;  %v419_v9 = vadd.f32 %v2248_v35, %v2226_v6 }
  0xe6   : > { %v2250_v36 = vpop.f32.mrf.mxu0 }
  0xe7   : > { %v792_v28 = vadd.f32 %v2242_v32, %v706_v30 }
  0xea   : > { %v2252_v37 = vpop.f32.mrf.mxu2 }
  0xeb   : > { %v2254_v39 = vpop.f32.mrf.mxu3  ;;  %v621_v33 = vadd.f32 %v2252_v37, %v419_v9 }
  0xec   : > { %v2256_v40 = vpop.f32.mrf.mxu1 }
  0xed   : > { %v707_v34 = vadd.f32 %v2254_v39, %v621_v33  ;;  %v421_v6 = vadd.f32 %v2256_v40, %v2232_v10 }
  0xee   : > { %v2258_v42 = vpop.f32.mrf.mxu0 }
  0xef   : > { %v793_v32 = vadd.f32 %v2250_v36, %v707_v34 }
  0xf2   : > { %v2260_v44 = vpop.f32.mrf.mxu2 }
  0xf3   : > { %v2262_v46 = vpop.f32.mrf.mxu3  ;;  %v622_v37 = vadd.f32 %v2260_v44, %v421_v6 }
  0xf4   : > { %v964_v47 = vpop.f32.mrf.mxu1 }
  0xf5   : > { %v984_v52 = vadd.f32 %v964_v47, %v787_v51  ;;  %v708_v39 = vadd.f32 %v2262_v46, %v622_v37 }
  0xf6   : > { %v1333_v49 = vpop.f32.mrf.mxu0 }
  0xfa   : > { %v1050_v53 = vpop.f32.mrf.mxu2 }
  0xfb   : > { %v1070_v55 = vadd.f32 %v1050_v53, %v984_v52  ;;  %v1136_v56 = vpop.f32.mrf.mxu3 }
  0xfc   : > { %v966_v57 = vpop.f32.mrf.mxu1 }
  0xfd   : > { %v1156_v59 = vadd.f32 %v1136_v56, %v1070_v55  ;;  %v985_v3 = vadd.f32 %v966_v57, %v788_v0  ;;  %v1364_v57 = vld [vmem:[#allocation2 + $0x18] sm:$0xff] }
  0xfe   : > { %v1335_v60 = vpop.f32.mrf.mxu0 }
  0xff   : > { %v1353_v63 = vadd.f32 %v1333_v49, %v1156_v59 }
 0x101   : > { %v1369_v1 = vadd.f32 %v1361_v61, %v1353_v63 }
 0x102   : > { %v1052_v4 = vpop.f32.mrf.mxu2 }
 0x103   : > { %1377 = vst.msk [vmem:[#allocation2] sm:$0xff] %vm314_vm1, %v1369_v1  ;;  %v1071_v8 = vadd.f32 %v1052_v4, %v985_v3  ;;  %v1138_v11 = vpop.f32.mrf.mxu3  ;;  %v1365_v3 = vld [vmem:[#allocation2 + $0x20] sm:$0xff] }
 0x104   : > { %v969_v12 = vpop.f32.mrf.mxu1 }
 0x105   : > { %v1157_v14 = vadd.f32 %v1138_v11, %v1071_v8  ;;  %v986_v41 = vadd.f32 %v969_v12, %v789_v19 }
 0x106   : > { %v1338_v15 = vpop.f32.mrf.mxu0 }
 0x107   : > { %v1354_v18 = vadd.f32 %v1335_v60, %v1157_v14 }
 0x109   : > { %v1370_v21 = vadd.f32 %v1362_v2, %v1354_v18  ;;  %v1366_v2 = vld [vmem:[#allocation2 + $0x28] sm:$0xff] }
 0x10a   : > { %v1055_v16 = vpop.f32.mrf.mxu2 }
 0x10b   : > { %1378 = vst.msk [vmem:[#allocation2 + $0x8] sm:$0xff] %vm314_vm1, %v1370_v21  ;;  %v1072_v22 = vadd.f32 %v1055_v16, %v986_v41  ;;  %v1141_v45 = vpop.f32.mrf.mxu3 }
 0x10c   : > { %v971_v47 = vpop.f32.mrf.mxu1 }
 0x10d   : > { %v1158_v49 = vadd.f32 %v1141_v45, %v1072_v22  ;;  %v987_v20 = vadd.f32 %v971_v47, %v790_v25  ;;  %v1367_v45 = vld [vmem:[#allocation2 + $0x30] sm:$0xff]  ;;  %v794_v47 = vadd.f32 %v2258_v42, %v708_v39 }
 0x10e   : > { %v1340_v7 = vpop.f32.mrf.mxu0 }
 0x10f   : > { %v1355_v51 = vadd.f32 %v1338_v15, %v1158_v49 }
 0x111   : > { %v1371_v52 = vadd.f32 %v1363_v50, %v1355_v51 }
 0x112   : > { %v1057_v53 = vpop.f32.mrf.mxu2 }
 0x113   : > { %1379 = vst.msk [vmem:[#allocation2 + $0x10] sm:$0xff] %vm314_vm1, %v1371_v52  ;;  %v1073_v26 = vadd.f32 %v1057_v53, %v987_v20  ;;  %v1143_v55 = vpop.f32.mrf.mxu3 }
 0x114   : > { %v974_v56 = vpop.f32.mrf.mxu1 }
 0x115   : > { %v1159_v27 = vadd.f32 %v1143_v55, %v1073_v26  ;;  %v988_v61 = vadd.f32 %v974_v56, %v791_v24 }
 0x116   : > { %v1343_v59 = vpop.f32.mrf.mxu0 }
 0x117   : > { %v1356_v58 = vadd.f32 %v1340_v7, %v1159_v27 }
 0x119   : > { %v1372_v60 = vadd.f32 %v1364_v57, %v1356_v58 }
 0x11a   : > { %v1060_v62 = vpop.f32.mrf.mxu2 }
 0x11b   : > { %1380 = vst.msk [vmem:[#allocation2 + $0x18] sm:$0xff] %vm314_vm1, %v1372_v60  ;;  %v1074_v63 = vadd.f32 %v1060_v62, %v988_v61  ;;  %v1146_v0 = vpop.f32.mrf.mxu3 }
 0x11c   : > { %v976_v1 = vpop.f32.mrf.mxu1 }
 0x11d   : > { %v1160_v31 = vadd.f32 %v1146_v0, %v1074_v63  ;;  %v989_v8 = vadd.f32 %v976_v1, %v792_v28 }
 0x11e   : > { %v1345_v11 = vpop.f32.mrf.mxu0 }
 0x11f   : > { %v1357_v4 = vadd.f32 %v1343_v59, %v1160_v31 }
 0x121   : > { %v1373_v5 = vadd.f32 %v1365_v3, %v1357_v4 }
 0x122   : > { %v1062_v12 = vpop.f32.mrf.mxu2 }
 0x123   : > { %1381 = vst.msk [vmem:[#allocation2 + $0x20] sm:$0xff] %vm314_vm1, %v1373_v5  ;;  %v1075_v13 = vadd.f32 %v1062_v12, %v989_v8  ;;  %v1148_v14 = vpop.f32.mrf.mxu3 }
 0x124   : > { %v979_v15 = vpop.f32.mrf.mxu1 }
 0x125   : > { %v1161_v35 = vadd.f32 %v1148_v14, %v1075_v13  ;;  %v990_v19 = vadd.f32 %v979_v15, %v793_v32 }
 0x126   : > { %v1348_v43 = vpop.f32.mrf.mxu0 }
 0x127   : > { %v1358_v17 = vadd.f32 %v1345_v11, %v1161_v35 }
 0x129   : > { %v1374_v18 = vadd.f32 %v1366_v2, %v1358_v17 }
 0x12a   : > { %v1065_v21 = vpop.f32.mrf.mxu2 }
 0x12b   : > { %1382 = vst.msk [vmem:[#allocation2 + $0x28] sm:$0xff] %vm314_vm1, %v1374_v18  ;;  %v1076_v41 = vadd.f32 %v1065_v21, %v990_v19  ;;  %v1151_v16 = vpop.f32.mrf.mxu3 }
 0x12c   : > { %v981_v10 = vpop.f32.mrf.mxu1 }
 0x12d   : > { %v1162_v22 = vadd.f32 %v1151_v16, %v1076_v41  ;;  %v991_v48 = vadd.f32 %v981_v10, %v794_v47 }
 0x12e   : > { %v1350_v46 = vpop.f32.mrf.mxu0 }
 0x12f   : > { %v1359_v40 = vadd.f32 %v1348_v43, %v1162_v22 }
 0x131   : > { %v1375_v44 = vadd.f32 %v1367_v45, %v1359_v40 }
 0x132   : > { %v1067_v49 = vpop.f32.mrf.mxu2 }
 0x133   : > { %1383 = vst.msk [vmem:[#allocation2 + $0x30] sm:$0xff] %vm314_vm1, %v1375_v44  ;;  %v1077_v36 = vadd.f32 %v1067_v49, %v991_v48  ;;  %v1153_v50 = vpop.f32.mrf.mxu3 }
 0x135   : > { %v1163_v7 = vadd.f32 %v1153_v50, %v1077_v36 }
 0x137   : > { %v1360_v51 = vadd.f32 %v1350_v46, %v1163_v7  ;;  %1388 = sbr.rel (%p1782_p10) target bundleno = 332 (0x14c), region = 40 }
 0x139   : > { %v1376_v25 = vadd.f32 %v1368_v23, %v1360_v51 }
 0x13b   : > { %1384 = vst.msk [vmem:[#allocation2 + $0x38] sm:$0xff] %vm314_vm1, %v1376_v25 }
 0x13c   : > { %v1389_v52 = vld [vmem:[#allocation2] sm:$0xff]  ;;  %v1390_v20 = vld [vmem:[#allocation2 + $0x8] sm:$0xff]  ;;  %v1391_v53 = vld [vmem:[#allocation2 + $0x10] sm:$0xff]  ;;  %vm1425_vm5 = vcmask 125952  }
 0x13d   : > { %v1881_v42 = vld [vmem:[%s2335_s2] ss:$0 sm:$0xff]  ;;  %v1392_v54 = vld [vmem:[#allocation2 + $0x18] sm:$0xff]  ;;  %v1394_v57 = vld [vmem:[#allocation2 + $0x28] sm:$0xff] }
 0x13e   : > { %v1401_v26 = vadd.f32 %v1881_v42, %v1389_v52  ;;  %v1402_v55 = vadd.f32 %v1881_v42, %v1390_v20  ;;  %v1403_v56 = vadd.f32 %v1881_v42, %v1391_v53  ;;  %v1404_v38 = vadd.f32 %v1881_v42, %v1392_v54  ;;  %v1393_v27 = vld [vmem:[#allocation2 + $0x20] sm:$0xff]  ;;  %v1395_v29 = vld [vmem:[#allocation2 + $0x30] sm:$0xff] }
 0x13f   : > { %v1405_v58 = vadd.f32 %v1881_v42, %v1393_v27  ;;  %v1406_v24 = vadd.f32 %v1881_v42, %v1394_v57  ;;  %v1407_v59 = vadd.f32 %v1881_v42, %v1395_v29 }
 0x140   : > { %v1409_v61 = vmax.f32 %v1401_v26, 0.0  ;;  %v1410_v62 = vmax.f32 %v1402_v55, 0.0  ;;  %v1411_v30 = vmax.f32 %v1403_v56, 0.0  ;;  %v1412_v63 = vmax.f32 %v1404_v38, 0.0 }
 0x141   : > { %v1413_v0 = vmax.f32 %v1405_v58, 0.0  ;;  %v1414_v1 = vmax.f32 %v1406_v24, 0.0  ;;  %v1415_v4 = vmax.f32 %v1407_v59, 0.0 }
 0x142   : > { %v1396_v60 = vld [vmem:[#allocation2 + $0x38] sm:$0xff]  ;;  %v1417_v31 = vpack.c.bf16 %v1409_v61, %v1409_v61  ;;  %v1418_v3 = vpack.c.bf16 %v1410_v62, %v1410_v62  ;;  %v1419_v33 = vpack.c.bf16 %v1411_v30, %v1411_v30  ;;  %v1420_v28 = vpack.c.bf16 %v1412_v63, %v1412_v63 }
 0x143   : > { %v1408_v9 = vadd.f32 %v1881_v42, %v1396_v60  ;;  %v1421_v8 = vpack.c.bf16 %v1413_v0, %v1413_v0  ;;  %v1422_v11 = vpack.c.bf16 %v1414_v1, %v1414_v1  ;;  %v1423_v12 = vpack.c.bf16 %v1415_v4, %v1415_v4 }
 0x144   : > { %1426 = vst.msk [vmem:[%s2027_s13] sm:$0xf] %vm1425_vm5, %v1417_v31 }
 0x145   : > { %v1416_v5 = vmax.f32 %v1408_v9, 0.0  ;;  %1427 = vst.msk [vmem:[%s2027_s13 + $0x4] sm:$0xf] %vm1425_vm5, %v1418_v3 }
 0x146   : > { %1428 = vst.msk [vmem:[%s2027_s13 + $0x8] sm:$0xf] %vm1425_vm5, %v1419_v33 }
 0x147   : > { %1429 = vst.msk [vmem:[%s2027_s13 + $0xc] sm:$0xf] %vm1425_vm5, %v1420_v28  ;;  %v1424_v34 = vpack.c.bf16 %v1416_v5, %v1416_v5 }
 0x148   : > { %1430 = vst.msk [vmem:[%s2027_s13 + $0x10] sm:$0xf] %vm1425_vm5, %v1421_v8 }
 0x149   : > { %1431 = vst.msk [vmem:[%s2027_s13 + $0x14] sm:$0xf] %vm1425_vm5, %v1422_v11 }
 0x14a   : > { %1432 = vst.msk [vmem:[%s2027_s13 + $0x18] sm:$0xf] %vm1425_vm5, %v1423_v12 }
 0x14b   : > { %1433 = vst.msk [vmem:[%s2027_s13 + $0x1c] sm:$0xf] %vm1425_vm5, %v1424_v34 }
 0x14c PF: > { %s13_s18 = sadd.s32 1, %s1936_s18   ;;  %s2339_s12 = smov %s1924_s15 }
 0x14d   : > { %p10_p11 = scmp.ge.s32.totalorder %s13_s18, 26   ;;  %s2340_s13 = smov %s1928_s16 }
 0x14e   : > { %s2341_s14 = smov %s1932_s17  ;;  %s2342_s15 = smov %s2346_s19 }
 0x14f   : > { %s2343_s16 = smov %s2350_s20  ;;  %s2344_s17 = smov %s2354_s21 }
 0x150   :  { %12 = sbr.rel (!%p10_p11) target bundleno = 4 (0x4), region = 78 }

// kernel: bottleneck_forward.6
= control target key start
LH: loop header
LB: loop body
LE: loop exit
PB: predicated region body
PF: predicated region fallthrough
CT: control target
= control target key end

     0   :  { %vm259_vm0 = vcmask 261120   ;;  %vm589_vm1 = vcmask 519168   ;;  %s1346_s1 = inlined_call_operand.vmem [shape: bf16[32,64], index: 1, kind: input, shape index: {}]   ;;  %s1347_s0 = inlined_call_operand.vmem [shape: bf16[512,32], index: 0, kind: input, shape index: {}]   ;;  %s1348_s2 = inlined_call_operand.vmem [shape: f32[1,64], index: 2, kind: input, shape index: {}]   ;;  %s1349_s3 = inlined_call_operand.vmem [shape: bf16[512,64], index: 3, kind: output, shape index: {}]  }
   0x1   :  { %v859_v0 = vld [vmem:[%s1346_s1 + $0x8] sm:$0xff]  ;;  %v858_v1 = vld [vmem:[%s1346_s1] sm:$0xff]  ;;  %v828_v10 = vld [vmem:[%s1347_s0 + $0x10] sm:$0xff] }
   0x2   :  { %362 = vmatpush.bf16.msra.mxu0 %v859_v0  ;;  %860 = vmatpush.bf16.msra.mxu1 %v859_v0  ;;  %v826_v2 = vld [vmem:[%s1347_s0] sm:$0xff]  ;;  %v827_v6 = vld [vmem:[%s1347_s0 + $0x8] sm:$0xff]  ;;  %v836_v11 = vld [vmem:[%s1347_s0 + $0x50] sm:$0xff] }
   0x3   :  { %861 = vmatpush.bf16.msra.mxu2 %v859_v0  ;;  %862 = vmatpush.bf16.msra.mxu3 %v859_v0  ;;  %v834_v3 = vld [vmem:[%s1347_s0 + $0x40] sm:$0xff]  ;;  %v835_v7 = vld [vmem:[%s1347_s0 + $0x48] sm:$0xff]  ;;  %v844_v12 = vld [vmem:[%s1347_s0 + $0x90] sm:$0xff] }
   0x4   :  { %v842_v4 = vld [vmem:[%s1347_s0 + $0x80] sm:$0xff]  ;;  %v843_v8 = vld [vmem:[%s1347_s0 + $0x88] sm:$0xff]  ;;  %v852_v13 = vld [vmem:[%s1347_s0 + $0xd0] sm:$0xff] }
   0x5   :  { %v850_v5 = vld [vmem:[%s1347_s0 + $0xc0] sm:$0xff]  ;;  %v851_v9 = vld [vmem:[%s1347_s0 + $0xc8] sm:$0xff]  ;;  %v829_v14 = vld [vmem:[%s1347_s0 + $0x18] sm:$0xff] }
   0x6   :  { %363 = vmatpush.bf16.msra.mxu0 %v858_v1  ;;  %863 = vmatpush.bf16.msra.mxu1 %v858_v1  ;;  %v837_v15 = vld [vmem:[%s1347_s0 + $0x58] sm:$0xff]  ;;  %v830_v18 = vld [vmem:[%s1347_s0 + $0x20] sm:$0xff]  ;;  %v831_v22 = vld [vmem:[%s1347_s0 + $0x28] sm:$0xff] }
   0x7   :  { %864 = vmatpush.bf16.msra.mxu2 %v858_v1  ;;  %865 = vmatpush.bf16.msra.mxu3 %v858_v1  ;;  %v845_v16 = vld [vmem:[%s1347_s0 + $0x98] sm:$0xff]  ;;  %v838_v19 = vld [vmem:[%s1347_s0 + $0x60] sm:$0xff]  ;;  %v839_v23 = vld [vmem:[%s1347_s0 + $0x68] sm:$0xff] }
   0x8   :  { %v853_v17 = vld [vmem:[%s1347_s0 + $0xd8] sm:$0xff]  ;;  %v846_v20 = vld [vmem:[%s1347_s0 + $0xa0] sm:$0xff]  ;;  %v847_v24 = vld [vmem:[%s1347_s0 + $0xa8] sm:$0xff] }
   0x9   :  { %794 = vmatmul.msk.bf16.vlgmr.msra.gmra.mxu0 %vm259_vm0, %v826_v2  ;;  %802 = vmatmul.msk.bf16.vlgmr.msra.gmra.mxu1 %vm259_vm0, %v834_v3  ;;  %v854_v21 = vld [vmem:[%s1347_s0 + $0xe0] sm:$0xff]  ;;  %v855_v25 = vld [vmem:[%s1347_s0 + $0xe8] sm:$0xff]  ;;  %v832_v26 = vld [vmem:[%s1347_s0 + $0x30] sm:$0xff] }
   0xa   :  { %810 = vmatmul.msk.bf16.vlgmr.msra.gmra.mxu2 %vm259_vm0, %v842_v4  ;;  %818 = vmatmul.msk.bf16.vlgmr.msra.gmra.mxu3 %vm259_vm0, %v850_v5  ;;  %v840_v27 = vld [vmem:[%s1347_s0 + $0x70] sm:$0xff]  ;;  %v833_v30 = vld [vmem:[%s1347_s0 + $0x38] sm:$0xff]  ;;  %v1024_v34 = vld [vmem:[%s1348_s2] ss:$0 sm:$0xff] }
   0xb   :  { %v848_v28 = vld [vmem:[%s1347_s0 + $0xb0] sm:$0xff]  ;;  %v841_v31 = vld [vmem:[%s1347_s0 + $0x78] sm:$0xff] }
   0xc   :  { %v856_v29 = vld [vmem:[%s1347_s0 + $0xf0] sm:$0xff]  ;;  %v849_v32 = vld [vmem:[%s1347_s0 + $0xb8] sm:$0xff] }
   0xd   :  { %v857_v33 = vld [vmem:[%s1347_s0 + $0xf8] sm:$0xff] }
  0x19   :  { %795 = vmatmul.msk.bf16.gmra.mxu0 %vm259_vm0, %v827_v6  ;;  %803 = vmatmul.msk.bf16.gmra.mxu1 %vm259_vm0, %v835_v7 }
  0x1a   :  { %811 = vmatmul.msk.bf16.gmra.mxu2 %vm259_vm0, %v843_v8  ;;  %819 = vmatmul.msk.bf16.gmra.mxu3 %vm259_vm0, %v851_v9 }
  0x29   :  { %796 = vmatmul.msk.bf16.gmra.mxu0 %vm259_vm0, %v828_v10  ;;  %804 = vmatmul.msk.bf16.gmra.mxu1 %vm259_vm0, %v836_v11 }
  0x2a   :  { %812 = vmatmul.msk.bf16.gmra.mxu2 %vm259_vm0, %v844_v12  ;;  %820 = vmatmul.msk.bf16.gmra.mxu3 %vm259_vm0, %v852_v13 }
  0x39   :  { %797 = vmatmul.msk.bf16.gmra.mxu0 %vm259_vm0, %v829_v14  ;;  %805 = vmatmul.msk.bf16.gmra.mxu1 %vm259_vm0, %v837_v15 }
  0x3a   :  { %813 = vmatmul.msk.bf16.gmra.mxu2 %vm259_vm0, %v845_v16  ;;  %821 = vmatmul.msk.bf16.gmra.mxu3 %vm259_vm0, %v853_v17 }
  0x49   :  { %798 = vmatmul.msk.bf16.gmra.mxu0 %vm259_vm0, %v830_v18  ;;  %806 = vmatmul.msk.bf16.gmra.mxu1 %vm259_vm0, %v838_v19 }
  0x4a   :  { %814 = vmatmul.msk.bf16.gmra.mxu2 %vm259_vm0, %v846_v20  ;;  %822 = vmatmul.msk.bf16.gmra.mxu3 %vm259_vm0, %v854_v21 }
  0x59   :  { %799 = vmatmul.msk.bf16.gmra.mxu0 %vm259_vm0, %v831_v22  ;;  %807 = vmatmul.msk.bf16.gmra.mxu1 %vm259_vm0, %v839_v23 }
  0x5a   :  { %815 = vmatmul.msk.bf16.gmra.mxu2 %vm259_vm0, %v847_v24  ;;  %823 = vmatmul.msk.bf16.gmra.mxu3 %vm259_vm0, %v855_v25 }
  0x69   :  { %800 = vmatmul.msk.bf16.gmra.mxu0 %vm259_vm0, %v832_v26  ;;  %808 = vmatmul.msk.bf16.gmra.mxu1 %vm259_vm0, %v840_v27 }
  0x6a   :  { %816 = vmatmul.msk.bf16.gmra.mxu2 %vm259_vm0, %v848_v28  ;;  %824 = vmatmul.msk.bf16.gmra.mxu3 %vm259_vm0, %v856_v29 }
  0x79   :  { %801 = vmatmul.msk.bf16.gmra.mxu0 %vm259_vm0, %v833_v30  ;;  %809 = vmatmul.msk.bf16.gmra.mxu1 %vm259_vm0, %v841_v31 }
  0x7a   :  { %817 = vmatmul.msk.bf16.gmra.mxu2 %vm259_vm0, %v849_v32  ;;  %825 = vmatmul.msk.bf16.gmra.mxu3 %vm259_vm0, %v857_v33 }
  0x86   :  { %v365_v35 = vpop.f32.mrf.mxu0  ;;  %v405_v36 = vpop.f32.mrf.mxu1 }
  0x87   :  { %v366_v37 = vadd.f32 %v1024_v34, %v365_v35  ;;  %v406_v38 = vadd.f32 %v1024_v34, %v405_v36 }
  0x89   :  { %v525_v39 = vpack.c.bf16 %v366_v37, %v366_v37  ;;  %v541_v40 = vpack.c.bf16 %v406_v38, %v406_v38 }
  0x8b   :  { %590 = vst.msk [vmem:[%s1349_s3] sm:$0xf] %vm589_vm1, %v525_v39 }
  0x8c   :  { %606 = vst.msk [vmem:[%s1349_s3 + $0x40] sm:$0xf] %vm589_vm1, %v541_v40 }
  0x8d   :  { %v445_v41 = vpop.f32.mrf.mxu2  ;;  %v485_v42 = vpop.f32.mrf.mxu3 }
  0x8e   :  { %v446_v43 = vadd.f32 %v1024_v34, %v445_v41  ;;  %v486_v44 = vadd.f32 %v1024_v34, %v485_v42  ;;  %v367_v45 = vpop.f32.mrf.mxu0  ;;  %v407_v46 = vpop.f32.mrf.mxu1 }
  0x8f   :  { %v368_v47 = vadd.f32 %v1024_v34, %v367_v45  ;;  %v408_v48 = vadd.f32 %v1024_v34, %v407_v46 }
  0x90   :  { %v557_v49 = vpack.c.bf16 %v446_v43, %v446_v43  ;;  %v573_v50 = vpack.c.bf16 %v486_v44, %v486_v44 }
  0x91   :  { %v526_v51 = vpack.c.bf16 %v368_v47, %v368_v47  ;;  %v542_v52 = vpack.c.bf16 %v408_v48, %v408_v48 }
  0x92   :  { %622 = vst.msk [vmem:[%s1349_s3 + $0x80] sm:$0xf] %vm589_vm1, %v557_v49 }
  0x93   :  { %638 = vst.msk [vmem:[%s1349_s3 + $0xc0] sm:$0xf] %vm589_vm1, %v573_v50 }
  0x94   :  { %591 = vst.msk [vmem:[%s1349_s3 + $0x4] sm:$0xf] %vm589_vm1, %v526_v51 }
  0x95   :  { %607 = vst.msk [vmem:[%s1349_s3 + $0x44] sm:$0xf] %vm589_vm1, %v542_v52  ;;  %v447_v53 = vpop.f32.mrf.mxu2  ;;  %v487_v54 = vpop.f32.mrf.mxu3 }
  0x96   :  { %v448_v55 = vadd.f32 %v1024_v34, %v447_v53  ;;  %v488_v56 = vadd.f32 %v1024_v34, %v487_v54  ;;  %v370_v57 = vpop.f32.mrf.mxu0  ;;  %v410_v58 = vpop.f32.mrf.mxu1 }
  0x97   :  { %v371_v59 = vadd.f32 %v1024_v34, %v370_v57  ;;  %v411_v60 = vadd.f32 %v1024_v34, %v410_v58 }
  0x98   :  { %v558_v61 = vpack.c.bf16 %v448_v55, %v448_v55  ;;  %v574_v62 = vpack.c.bf16 %v488_v56, %v488_v56 }
  0x99   :  { %v527_v63 = vpack.c.bf16 %v371_v59, %v371_v59  ;;  %v543_v0 = vpack.c.bf16 %v411_v60, %v411_v60 }
  0x9a   :  { %623 = vst.msk [vmem:[%s1349_s3 + $0x84] sm:$0xf] %vm589_vm1, %v558_v61 }
  0x9b   :  { %639 = vst.msk [vmem:[%s1349_s3 + $0xc4] sm:$0xf] %vm589_vm1, %v574_v62 }
  0x9c   :  { %592 = vst.msk [vmem:[%s1349_s3 + $0x8] sm:$0xf] %vm589_vm1, %v527_v63 }
  0x9d   :  { %608 = vst.msk [vmem:[%s1349_s3 + $0x48] sm:$0xf] %vm589_vm1, %v543_v0  ;;  %v450_v1 = vpop.f32.mrf.mxu2  ;;  %v490_v2 = vpop.f32.mrf.mxu3 }
  0x9e   :  { %v451_v3 = vadd.f32 %v1024_v34, %v450_v1  ;;  %v491_v4 = vadd.f32 %v1024_v34, %v490_v2  ;;  %v372_v5 = vpop.f32.mrf.mxu0  ;;  %v412_v6 = vpop.f32.mrf.mxu1 }
  0x9f   :  { %v373_v7 = vadd.f32 %v1024_v34, %v372_v5  ;;  %v413_v8 = vadd.f32 %v1024_v34, %v412_v6 }
  0xa0   :  { %v559_v9 = vpack.c.bf16 %v451_v3, %v451_v3  ;;  %v575_v10 = vpack.c.bf16 %v491_v4, %v491_v4 }
  0xa1   :  { %v528_v11 = vpack.c.bf16 %v373_v7, %v373_v7  ;;  %v544_v12 = vpack.c.bf16 %v413_v8, %v413_v8 }
  0xa2   :  { %624 = vst.msk [vmem:[%s1349_s3 + $0x88] sm:$0xf] %vm589_vm1, %v559_v9 }
  0xa3   :  { %640 = vst.msk [vmem:[%s1349_s3 + $0xc8] sm:$0xf] %vm589_vm1, %v575_v10 }
  0xa4   :  { %593 = vst.msk [vmem:[%s1349_s3 + $0xc] sm:$0xf] %vm589_vm1, %v528_v11 }
  0xa5   :  { %609 = vst.msk [vmem:[%s1349_s3 + $0x4c] sm:$0xf] %vm589_vm1, %v544_v12  ;;  %v452_v13 = vpop.f32.mrf.mxu2  ;;  %v492_v14 = vpop.f32.mrf.mxu3 }
  0xa6   :  { %v453_v15 = vadd.f32 %v1024_v34, %v452_v13  ;;  %v493_v16 = vadd.f32 %v1024_v34, %v492_v14  ;;  %v375_v17 = vpop.f32.mrf.mxu0  ;;  %v415_v18 = vpop.f32.mrf.mxu1 }
  0xa7   :  { %v376_v19 = vadd.f32 %v1024_v34, %v375_v17  ;;  %v416_v20 = vadd.f32 %v1024_v34, %v415_v18 }
  0xa8   :  { %v560_v21 = vpack.c.bf16 %v453_v15, %v453_v15  ;;  %v576_v22 = vpack.c.bf16 %v493_v16, %v493_v16 }
  0xa9   :  { %v529_v23 = vpack.c.bf16 %v376_v19, %v376_v19  ;;  %v545_v24 = vpack.c.bf16 %v416_v20, %v416_v20 }
  0xaa   :  { %625 = vst.msk [vmem:[%s1349_s3 + $0x8c] sm:$0xf] %vm589_vm1, %v560_v21 }
  0xab   :  { %641 = vst.msk [vmem:[%s1349_s3 + $0xcc] sm:$0xf] %vm589_vm1, %v576_v22 }
  0xac   :  { %594 = vst.msk [vmem:[%s1349_s3 + $0x10] sm:$0xf] %vm589_vm1, %v529_v23 }
  0xad   :  { %610 = vst.msk [vmem:[%s1349_s3 + $0x50] sm:$0xf] %vm589_vm1, %v545_v24  ;;  %v455_v25 = vpop.f32.mrf.mxu2  ;;  %v495_v26 = vpop.f32.mrf.mxu3 }
  0xae   :  { %v456_v27 = vadd.f32 %v1024_v34, %v455_v25  ;;  %v496_v28 = vadd.f32 %v1024_v34, %v495_v26  ;;  %v377_v29 = vpop.f32.mrf.mxu0  ;;  %v417_v30 = vpop.f32.mrf.mxu1 }
  0xaf   :  { %v378_v31 = vadd.f32 %v1024_v34, %v377_v29  ;;  %v418_v32 = vadd.f32 %v1024_v34, %v417_v30 }
  0xb0   :  { %v561_v33 = vpack.c.bf16 %v456_v27, %v456_v27  ;;  %v577_v35 = vpack.c.bf16 %v496_v28, %v496_v28 }
  0xb1   :  { %v530_v36 = vpack.c.bf16 %v378_v31, %v378_v31  ;;  %v546_v37 = vpack.c.bf16 %v418_v32, %v418_v32 }
  0xb2   :  { %626 = vst.msk [vmem:[%s1349_s3 + $0x90] sm:$0xf] %vm589_vm1, %v561_v33 }
  0xb3   :  { %642 = vst.msk [vmem:[%s1349_s3 + $0xd0] sm:$0xf] %vm589_vm1, %v577_v35 }
  0xb4   :  { %595 = vst.msk [vmem:[%s1349_s3 + $0x14] sm:$0xf] %vm589_vm1, %v530_v36 }
  0xb5   :  { %611 = vst.msk [vmem:[%s1349_s3 + $0x54] sm:$0xf] %vm589_vm1, %v546_v37  ;;  %v457_v38 = vpop.f32.mrf.mxu2  ;;  %v497_v39 = vpop.f32.mrf.mxu3 }
  0xb6   :  { %v458_v40 = vadd.f32 %v1024_v34, %v457_v38  ;;  %v498_v41 = vadd.f32 %v1024_v34, %v497_v39  ;;  %v380_v42 = vpop.f32.mrf.mxu0  ;;  %v420_v43 = vpop.f32.mrf.mxu1 }
  0xb7   :  { %v381_v44 = vadd.f32 %v1024_v34, %v380_v42  ;;  %v421_v45 = vadd.f32 %v1024_v34, %v420_v43 }
  0xb8   :  { %v562_v46 = vpack.c.bf16 %v458_v40, %v458_v40  ;;  %v578_v47 = vpack.c.bf16 %v498_v41, %v498_v41 }
  0xb9   :  { %v531_v48 = vpack.c.bf16 %v381_v44, %v381_v44  ;;  %v547_v49 = vpack.c.bf16 %v421_v45, %v421_v45 }
  0xba   :  { %627 = vst.msk [vmem:[%s1349_s3 + $0x94] sm:$0xf] %vm589_vm1, %v562_v46 }
  0xbb   :  { %643 = vst.msk [vmem:[%s1349_s3 + $0xd4] sm:$0xf] %vm589_vm1, %v578_v47 }
  0xbc   :  { %596 = vst.msk [vmem:[%s1349_s3 + $0x18] sm:$0xf] %vm589_vm1, %v531_v48 }
  0xbd   :  { %612 = vst.msk [vmem:[%s1349_s3 + $0x58] sm:$0xf] %vm589_vm1, %v547_v49  ;;  %v460_v50 = vpop.f32.mrf.mxu2  ;;  %v500_v51 = vpop.f32.mrf.mxu3 }
  0xbe   :  { %v461_v52 = vadd.f32 %v1024_v34, %v460_v50  ;;  %v501_v53 = vadd.f32 %v1024_v34, %v500_v51  ;;  %v382_v54 = vpop.f32.mrf.mxu0  ;;  %v422_v55 = vpop.f32.mrf.mxu1 }
  0xbf   :  { %v383_v56 = vadd.f32 %v1024_v34, %v382_v54  ;;  %v423_v57 = vadd.f32 %v1024_v34, %v422_v55 }
  0xc0   :  { %v563_v58 = vpack.c.bf16 %v461_v52, %v461_v52  ;;  %v579_v59 = vpack.c.bf16 %v501_v53, %v501_v53 }
  0xc1   :  { %v532_v60 = vpack.c.bf16 %v383_v56, %v383_v56  ;;  %v548_v61 = vpack.c.bf16 %v423_v57, %v423_v57 }
  0xc2   :  { %628 = vst.msk [vmem:[%s1349_s3 + $0x98] sm:$0xf] %vm589_vm1, %v563_v58 }
  0xc3   :  { %644 = vst.msk [vmem:[%s1349_s3 + $0xd8] sm:$0xf] %vm589_vm1, %v579_v59 }
  0xc4   :  { %597 = vst.msk [vmem:[%s1349_s3 + $0x1c] sm:$0xf] %vm589_vm1, %v532_v60 }
  0xc5   :  { %613 = vst.msk [vmem:[%s1349_s3 + $0x5c] sm:$0xf] %vm589_vm1, %v548_v61  ;;  %v462_v62 = vpop.f32.mrf.mxu2  ;;  %v502_v63 = vpop.f32.mrf.mxu3 }
  0xc6   :  { %v463_v0 = vadd.f32 %v1024_v34, %v462_v62  ;;  %v503_v1 = vadd.f32 %v1024_v34, %v502_v63  ;;  %v385_v2 = vpop.f32.mrf.mxu0  ;;  %v425_v3 = vpop.f32.mrf.mxu1 }
  0xc7   :  { %v386_v4 = vadd.f32 %v1024_v34, %v385_v2  ;;  %v426_v5 = vadd.f32 %v1024_v34, %v425_v3 }
  0xc8   :  { %v564_v6 = vpack.c.bf16 %v463_v0, %v463_v0  ;;  %v580_v7 = vpack.c.bf16 %v503_v1, %v503_v1 }
  0xc9   :  { %v533_v8 = vpack.c.bf16 %v386_v4, %v386_v4  ;;  %v549_v9 = vpack.c.bf16 %v426_v5, %v426_v5 }
  0xca   :  { %629 = vst.msk [vmem:[%s1349_s3 + $0x9c] sm:$0xf] %vm589_vm1, %v564_v6 }
  0xcb   :  { %645 = vst.msk [vmem:[%s1349_s3 + $0xdc] sm:$0xf] %vm589_vm1, %v580_v7 }
  0xcc   :  { %598 = vst.msk [vmem:[%s1349_s3 + $0x20] sm:$0xf] %vm589_vm1, %v533_v8 }
  0xcd   :  { %614 = vst.msk [vmem:[%s1349_s3 + $0x60] sm:$0xf] %vm589_vm1, %v549_v9  ;;  %v465_v10 = vpop.f32.mrf.mxu2  ;;  %v505_v11 = vpop.f32.mrf.mxu3 }
  0xce   :  { %v466_v12 = vadd.f32 %v1024_v34, %v465_v10  ;;  %v506_v13 = vadd.f32 %v1024_v34, %v505_v11  ;;  %v387_v14 = vpop.f32.mrf.mxu0  ;;  %v427_v15 = vpop.f32.mrf.mxu1 }
  0xcf   :  { %v388_v16 = vadd.f32 %v1024_v34, %v387_v14  ;;  %v428_v17 = vadd.f32 %v1024_v34, %v427_v15 }
  0xd0   :  { %v565_v18 = vpack.c.bf16 %v466_v12, %v466_v12  ;;  %v581_v19 = vpack.c.bf16 %v506_v13, %v506_v13 }
  0xd1   :  { %v534_v20 = vpack.c.bf16 %v388_v16, %v388_v16  ;;  %v550_v21 = vpack.c.bf16 %v428_v17, %v428_v17 }
  0xd2   :  { %630 = vst.msk [vmem:[%s1349_s3 + $0xa0] sm:$0xf] %vm589_vm1, %v565_v18 }
  0xd3   :  { %646 = vst.msk [vmem:[%s1349_s3 + $0xe0] sm:$0xf] %vm589_vm1, %v581_v19 }
  0xd4   :  { %599 = vst.msk [vmem:[%s1349_s3 + $0x24] sm:$0xf] %vm589_vm1, %v534_v20 }
  0xd5   :  { %615 = vst.msk [vmem:[%s1349_s3 + $0x64] sm:$0xf] %vm589_vm1, %v550_v21  ;;  %v467_v22 = vpop.f32.mrf.mxu2  ;;  %v507_v23 = vpop.f32.mrf.mxu3 }
  0xd6   :  { %v468_v24 = vadd.f32 %v1024_v34, %v467_v22  ;;  %v508_v25 = vadd.f32 %v1024_v34, %v507_v23  ;;  %v390_v26 = vpop.f32.mrf.mxu0  ;;  %v430_v27 = vpop.f32.mrf.mxu1 }
  0xd7   :  { %v391_v28 = vadd.f32 %v1024_v34, %v390_v26  ;;  %v431_v29 = vadd.f32 %v1024_v34, %v430_v27 }
  0xd8   :  { %v566_v30 = vpack.c.bf16 %v468_v24, %v468_v24  ;;  %v582_v31 = vpack.c.bf16 %v508_v25, %v508_v25 }
  0xd9   :  { %v535_v32 = vpack.c.bf16 %v391_v28, %v391_v28  ;;  %v551_v33 = vpack.c.bf16 %v431_v29, %v431_v29 }
  0xda   :  { %631 = vst.msk [vmem:[%s1349_s3 + $0xa4] sm:$0xf] %vm589_vm1, %v566_v30 }
  0xdb   :  { %647 = vst.msk [vmem:[%s1349_s3 + $0xe4] sm:$0xf] %vm589_vm1, %v582_v31 }
  0xdc   :  { %600 = vst.msk [vmem:[%s1349_s3 + $0x28] sm:$0xf] %vm589_vm1, %v535_v32 }
  0xdd   :  { %616 = vst.msk [vmem:[%s1349_s3 + $0x68] sm:$0xf] %vm589_vm1, %v551_v33  ;;  %v470_v35 = vpop.f32.mrf.mxu2  ;;  %v510_v36 = vpop.f32.mrf.mxu3 }
  0xde   :  { %v471_v37 = vadd.f32 %v1024_v34, %v470_v35  ;;  %v511_v38 = vadd.f32 %v1024_v34, %v510_v36  ;;  %v392_v39 = vpop.f32.mrf.mxu0  ;;  %v432_v40 = vpop.f32.mrf.mxu1 }
  0xdf   :  { %v393_v41 = vadd.f32 %v1024_v34, %v392_v39  ;;  %v433_v42 = vadd.f32 %v1024_v34, %v432_v40 }
  0xe0   :  { %v567_v43 = vpack.c.bf16 %v471_v37, %v471_v37  ;;  %v583_v44 = vpack.c.bf16 %v511_v38, %v511_v38 }
  0xe1   :  { %v536_v45 = vpack.c.bf16 %v393_v41, %v393_v41  ;;  %v552_v46 = vpack.c.bf16 %v433_v42, %v433_v42 }
  0xe2   :  { %632 = vst.msk [vmem:[%s1349_s3 + $0xa8] sm:$0xf] %vm589_vm1, %v567_v43 }
  0xe3   :  { %648 = vst.msk [vmem:[%s1349_s3 + $0xe8] sm:$0xf] %vm589_vm1, %v583_v44 }
  0xe4   :  { %601 = vst.msk [vmem:[%s1349_s3 + $0x2c] sm:$0xf] %vm589_vm1, %v536_v45 }
  0xe5   :  { %617 = vst.msk [vmem:[%s1349_s3 + $0x6c] sm:$0xf] %vm589_vm1, %v552_v46  ;;  %v472_v47 = vpop.f32.mrf.mxu2  ;;  %v512_v48 = vpop.f32.mrf.mxu3 }
  0xe6   :  { %v473_v49 = vadd.f32 %v1024_v34, %v472_v47  ;;  %v513_v50 = vadd.f32 %v1024_v34, %v512_v48  ;;  %v395_v51 = vpop.f32.mrf.mxu0  ;;  %v435_v52 = vpop.f32.mrf.mxu1 }
  0xe7   :  { %v396_v53 = vadd.f32 %v1024_v34, %v395_v51  ;;  %v436_v54 = vadd.f32 %v1024_v34, %v435_v52 }
  0xe8   :  { %v568_v55 = vpack.c.bf16 %v473_v49, %v473_v49  ;;  %v584_v56 = vpack.c.bf16 %v513_v50, %v513_v50 }
  0xe9   :  { %v537_v57 = vpack.c.bf16 %v396_v53, %v396_v53  ;;  %v553_v58 = vpack.c.bf16 %v436_v54, %v436_v54 }
  0xea   :  { %633 = vst.msk [vmem:[%s1349_s3 + $0xac] sm:$0xf] %vm589_vm1, %v568_v55 }
  0xeb   :  { %649 = vst.msk [vmem:[%s1349_s3 + $0xec] sm:$0xf] %vm589_vm1, %v584_v56 }
  0xec   :  { %602 = vst.msk [vmem:[%s1349_s3 + $0x30] sm:$0xf] %vm589_vm1, %v537_v57 }
  0xed   :  { %618 = vst.msk [vmem:[%s1349_s3 + $0x70] sm:$0xf] %vm589_vm1, %v553_v58  ;;  %v475_v59 = vpop.f32.mrf.mxu2  ;;  %v515_v60 = vpop.f32.mrf.mxu3 }
  0xee   :  { %v476_v61 = vadd.f32 %v1024_v34, %v475_v59  ;;  %v516_v62 = vadd.f32 %v1024_v34, %v515_v60  ;;  %v397_v63 = vpop.f32.mrf.mxu0  ;;  %v437_v0 = vpop.f32.mrf.mxu1 }
  0xef   :  { %v398_v1 = vadd.f32 %v1024_v34, %v397_v63  ;;  %v438_v2 = vadd.f32 %v1024_v34, %v437_v0 }
  0xf0   :  { %v569_v3 = vpack.c.bf16 %v476_v61, %v476_v61  ;;  %v585_v4 = vpack.c.bf16 %v516_v62, %v516_v62 }
  0xf1   :  { %v538_v5 = vpack.c.bf16 %v398_v1, %v398_v1  ;;  %v554_v6 = vpack.c.bf16 %v438_v2, %v438_v2 }
  0xf2   :  { %634 = vst.msk [vmem:[%s1349_s3 + $0xb0] sm:$0xf] %vm589_vm1, %v569_v3 }
  0xf3   :  { %650 = vst.msk [vmem:[%s1349_s3 + $0xf0] sm:$0xf] %vm589_vm1, %v585_v4 }
  0xf4   :  { %603 = vst.msk [vmem:[%s1349_s3 + $0x34] sm:$0xf] %vm589_vm1, %v538_v5 }
  0xf5   :  { %619 = vst.msk [vmem:[%s1349_s3 + $0x74] sm:$0xf] %vm589_vm1, %v554_v6  ;;  %v477_v7 = vpop.f32.mrf.mxu2  ;;  %v517_v8 = vpop.f32.mrf.mxu3 }
  0xf6   :  { %v478_v9 = vadd.f32 %v1024_v34, %v477_v7  ;;  %v518_v10 = vadd.f32 %v1024_v34, %v517_v8  ;;  %v400_v11 = vpop.f32.mrf.mxu0  ;;  %v440_v12 = vpop.f32.mrf.mxu1 }
  0xf7   :  { %v401_v13 = vadd.f32 %v1024_v34, %v400_v11  ;;  %v441_v14 = vadd.f32 %v1024_v34, %v440_v12 }
  0xf8   :  { %v570_v15 = vpack.c.bf16 %v478_v9, %v478_v9  ;;  %v586_v16 = vpack.c.bf16 %v518_v10, %v518_v10 }
  0xf9   :  { %v539_v17 = vpack.c.bf16 %v401_v13, %v401_v13  ;;  %v555_v18 = vpack.c.bf16 %v441_v14, %v441_v14 }
  0xfa   :  { %635 = vst.msk [vmem:[%s1349_s3 + $0xb4] sm:$0xf] %vm589_vm1, %v570_v15 }
  0xfb   :  { %651 = vst.msk [vmem:[%s1349_s3 + $0xf4] sm:$0xf] %vm589_vm1, %v586_v16 }
  0xfc   :  { %604 = vst.msk [vmem:[%s1349_s3 + $0x38] sm:$0xf] %vm589_vm1, %v539_v17 }
  0xfd   :  { %620 = vst.msk [vmem:[%s1349_s3 + $0x78] sm:$0xf] %vm589_vm1, %v555_v18  ;;  %v480_v19 = vpop.f32.mrf.mxu2  ;;  %v520_v20 = vpop.f32.mrf.mxu3 }
  0xfe   :  { %v481_v21 = vadd.f32 %v1024_v34, %v480_v19  ;;  %v521_v22 = vadd.f32 %v1024_v34, %v520_v20  ;;  %v402_v23 = vpop.f32.mrf.mxu0  ;;  %v442_v24 = vpop.f32.mrf.mxu1 }
  0xff   :  { %v403_v25 = vadd.f32 %v1024_v34, %v402_v23  ;;  %v443_v26 = vadd.f32 %v1024_v34, %v442_v24 }
 0x100   :  { %v571_v27 = vpack.c.bf16 %v481_v21, %v481_v21  ;;  %v587_v28 = vpack.c.bf16 %v521_v22, %v521_v22 }
 0x101   :  { %v540_v29 = vpack.c.bf16 %v403_v25, %v403_v25  ;;  %v556_v30 = vpack.c.bf16 %v443_v26, %v443_v26 }
 0x102   :  { %636 = vst.msk [vmem:[%s1349_s3 + $0xb8] sm:$0xf] %vm589_vm1, %v571_v27 }
 0x103   :  { %652 = vst.msk [vmem:[%s1349_s3 + $0xf8] sm:$0xf] %vm589_vm1, %v587_v28 }
 0x104   :  { %605 = vst.msk [vmem:[%s1349_s3 + $0x3c] sm:$0xf] %vm589_vm1, %v540_v29 }
 0x105   :  { %621 = vst.msk [vmem:[%s1349_s3 + $0x7c] sm:$0xf] %vm589_vm1, %v556_v30  ;;  %v482_v31 = vpop.f32.mrf.mxu2  ;;  %v522_v32 = vpop.f32.mrf.mxu3 }
 0x106   :  { %v483_v33 = vadd.f32 %v1024_v34, %v482_v31  ;;  %v523_v35 = vadd.f32 %v1024_v34, %v522_v32 }
 0x108   :  { %v572_v36 = vpack.c.bf16 %v483_v33, %v483_v33  ;;  %v588_v37 = vpack.c.bf16 %v523_v35, %v523_v35 }
 0x10a   :  { %637 = vst.msk [vmem:[%s1349_s3 + $0xbc] sm:$0xf] %vm589_vm1, %v572_v36 }
 0x10b   :  { %653 = vst.msk [vmem:[%s1349_s3 + $0xfc] sm:$0xf] %vm589_vm1, %v588_v37 }

// kernel: bottleneck_forward.7
= control target key start
LH: loop header
LB: loop body
LE: loop exit
PB: predicated region body
PF: predicated region fallthrough
CT: control target
= control target key end

     0   :  { %vm255_vm0 = vcmask 130048   ;;  %s1640_s0 = inlined_call_operand.vmem [shape: bf16[512,16], index: 0, kind: input, shape index: {}]   ;;  %s1641_s1 = inlined_call_operand.vmem [shape: bf16[16,64], index: 1, kind: input, shape index: {}]   ;;  %s1642_s2 = inlined_call_operand.vmem [shape: f32[1,64], index: 2, kind: input, shape index: {}]   ;;  %s1643_s3 = inlined_call_operand.vmem [shape: bf16[512,64], index: 3, kind: input, shape index: {}]   ;;  %s1644_s4 = inlined_call_operand.hbm [shape: f32[512,64], index: 4, kind: output, shape index: {}]  }
   0x1   :  { %v1056_v0 = vld [vmem:[%s1641_s1] sm:$0xff] }
   0x2   :  { %v1024_v1 = vld [vmem:[%s1640_s0] sm:$0xff]  ;;  %359 = vmatpush.bf16.msra.mxu0 %v1056_v0  ;;  %1216 = vmatpush.bf16.msra.mxu1 %v1056_v0 }
   0x3   :  { %v1032_v2 = vld [vmem:[%s1640_s0 + $0x40] sm:$0xff]  ;;  %1217 = vmatpush.bf16.msra.mxu2 %v1056_v0  ;;  %1218 = vmatpush.bf16.msra.mxu3 %v1056_v0 }
   0x4   :  { %v1040_v3 = vld [vmem:[%s1640_s0 + $0x80] sm:$0xff] }
   0x5   :  { %v1048_v4 = vld [vmem:[%s1640_s0 + $0xc0] sm:$0xff] }
   0x6   :  { %9 = vsyncpa [#allocation3], 0  ;;  %992 = vmatmul.msk.bf16.vlgmr.msra.gmra.mxu0 %vm255_vm0, %v1024_v1  ;;  %1000 = vmatmul.msk.bf16.vlgmr.msra.gmra.mxu1 %vm255_vm0, %v1032_v2  ;;  %v1025_v5 = vld [vmem:[%s1640_s0 + $0x8] sm:$0xff]  ;;  %v1026_v9 = vld [vmem:[%s1640_s0 + $0x10] sm:$0xff]  ;;  %vm777_vm1 = vcmask 523264   ;;  %s848_s9 = sshll.u32 %s1644_s4, 4  ;;  %s849_s9 = int_to_ptr.hbm [resolvable:$true] %s848_s9 }
   0x7   :  { %1008 = vmatmul.msk.bf16.vlgmr.msra.gmra.mxu2 %vm255_vm0, %v1040_v3  ;;  %1016 = vmatmul.msk.bf16.vlgmr.msra.gmra.mxu3 %vm255_vm0, %v1048_v4  ;;  %v1033_v6 = vld [vmem:[%s1640_s0 + $0x48] sm:$0xff]  ;;  %v1034_v10 = vld [vmem:[%s1640_s0 + $0x50] sm:$0xff]  ;;  %v1027_v13 = vld [vmem:[%s1640_s0 + $0x18] sm:$0xff]  ;;  %s1250_s10 = smov 128   ;;  %s1251_s11 = smov 8  }
   0x8   :  { %v1041_v7 = vld [vmem:[%s1640_s0 + $0x88] sm:$0xff]  ;;  %v1042_v11 = vld [vmem:[%s1640_s0 + $0x90] sm:$0xff]  ;;  %v1035_v14 = vld [vmem:[%s1640_s0 + $0x58] sm:$0xff] }
   0x9   :  { %v1049_v8 = vld [vmem:[%s1640_s0 + $0xc8] sm:$0xff]  ;;  %v1050_v12 = vld [vmem:[%s1640_s0 + $0xd0] sm:$0xff]  ;;  %v1043_v15 = vld [vmem:[%s1640_s0 + $0x98] sm:$0xff] }
   0xa   :  { %v1051_v16 = vld [vmem:[%s1640_s0 + $0xd8] sm:$0xff]  ;;  %v1028_v17 = vld [vmem:[%s1640_s0 + $0x20] sm:$0xff]  ;;  %v1029_v21 = vld [vmem:[%s1640_s0 + $0x28] sm:$0xff] }
   0xb   :  { %v1036_v18 = vld [vmem:[%s1640_s0 + $0x60] sm:$0xff]  ;;  %v1037_v22 = vld [vmem:[%s1640_s0 + $0x68] sm:$0xff]  ;;  %v1030_v25 = vld [vmem:[%s1640_s0 + $0x30] sm:$0xff] }
   0xc   :  { %v1044_v19 = vld [vmem:[%s1640_s0 + $0xa0] sm:$0xff]  ;;  %v1045_v23 = vld [vmem:[%s1640_s0 + $0xa8] sm:$0xff]  ;;  %v1038_v26 = vld [vmem:[%s1640_s0 + $0x70] sm:$0xff] }
   0xd   :  { %v1052_v20 = vld [vmem:[%s1640_s0 + $0xe0] sm:$0xff]  ;;  %v1053_v24 = vld [vmem:[%s1640_s0 + $0xe8] sm:$0xff]  ;;  %v1046_v27 = vld [vmem:[%s1640_s0 + $0xb0] sm:$0xff] }
   0xe   :  { %v1054_v28 = vld [vmem:[%s1640_s0 + $0xf0] sm:$0xff]  ;;  %v1031_v29 = vld [vmem:[%s1640_s0 + $0x38] sm:$0xff]  ;;  %v1058_v33 = vld [vmem:[%s1643_s3] sm:$0xff]  }
   0xf   :  { %v1039_v30 = vld [vmem:[%s1640_s0 + $0x78] sm:$0xff]  ;;  %v1192_v34 = vld [vmem:[%s1643_s3 + $0x40] sm:$0xff]   ;;  %v1059_v36 = vunpack.c.l.bf16 %v1058_v33  ;;  %v1060_v52 = vunpack.c.h.bf16 %v1058_v33  ;;  %v1185_v2 = vld [vmem:[%s1643_s3 + $0x8] sm:$0xff]  }
  0x10   :  { %v1047_v31 = vld [vmem:[%s1640_s0 + $0xb8] sm:$0xff]  ;;  %v1417_v35 = vld [vmem:[%s1642_s2] ss:$0 sm:$0xff]  ;;  %v1091_v37 = vunpack.c.l.bf16 %v1192_v34  ;;  %v1092_v53 = vunpack.c.h.bf16 %v1192_v34  ;;  %v1193_v3 = vld [vmem:[%s1643_s3 + $0x48] sm:$0xff]  }
  0x11   :  { %v1055_v32 = vld [vmem:[%s1640_s0 + $0xf8] sm:$0xff]  ;;  %v1200_v44 = vld [vmem:[%s1643_s3 + $0x80] sm:$0xff]   ;;  %v1096_v33 = vunpack.c.h.bf16 %v1193_v3 }
  0x12   :  { %v1208_v45 = vld [vmem:[%s1643_s3 + $0xc0] sm:$0xff]   ;;  %v1123_v48 = vunpack.c.l.bf16 %v1200_v44 }
  0x13   :  { %v1155_v49 = vunpack.c.l.bf16 %v1208_v45 }
  0x16   :  { %993 = vmatmul.msk.bf16.gmra.mxu0 %vm255_vm0, %v1025_v5  ;;  %1001 = vmatmul.msk.bf16.gmra.mxu1 %vm255_vm0, %v1033_v6  ;;  %v1124_v6 = vunpack.c.h.bf16 %v1200_v44 }
  0x17   :  { %1009 = vmatmul.msk.bf16.gmra.mxu2 %vm255_vm0, %v1041_v7  ;;  %1017 = vmatmul.msk.bf16.gmra.mxu3 %vm255_vm0, %v1049_v8  ;;  %v1156_v7 = vunpack.c.h.bf16 %v1208_v45 }
  0x26   :  { %994 = vmatmul.msk.bf16.gmra.mxu0 %vm255_vm0, %v1026_v9  ;;  %1002 = vmatmul.msk.bf16.gmra.mxu1 %vm255_vm0, %v1034_v10  ;;  %v1063_v10 = vunpack.c.l.bf16 %v1185_v2 }
  0x27   :  { %1010 = vmatmul.msk.bf16.gmra.mxu2 %vm255_vm0, %v1042_v11  ;;  %1018 = vmatmul.msk.bf16.gmra.mxu3 %vm255_vm0, %v1050_v12  ;;  %v1095_v11 = vunpack.c.l.bf16 %v1193_v3  ;;  %v1202_v3 = vld [vmem:[%s1643_s3 + $0x90] sm:$0xff]  }
  0x36   :  { %995 = vmatmul.msk.bf16.gmra.mxu0 %vm255_vm0, %v1027_v13  ;;  %1003 = vmatmul.msk.bf16.gmra.mxu1 %vm255_vm0, %v1035_v14 }
  0x37   :  { %1011 = vmatmul.msk.bf16.gmra.mxu2 %vm255_vm0, %v1043_v15  ;;  %1019 = vmatmul.msk.bf16.gmra.mxu3 %vm255_vm0, %v1051_v16 }
  0x46   :  { %996 = vmatmul.msk.bf16.gmra.mxu0 %vm255_vm0, %v1028_v17  ;;  %1004 = vmatmul.msk.bf16.gmra.mxu1 %vm255_vm0, %v1036_v18 }
  0x47   :  { %1012 = vmatmul.msk.bf16.gmra.mxu2 %vm255_vm0, %v1044_v19  ;;  %1020 = vmatmul.msk.bf16.gmra.mxu3 %vm255_vm0, %v1052_v20 }
  0x56   :  { %997 = vmatmul.msk.bf16.gmra.mxu0 %vm255_vm0, %v1029_v21  ;;  %1005 = vmatmul.msk.bf16.gmra.mxu1 %vm255_vm0, %v1037_v22  ;;  %v1201_v22 = vld [vmem:[%s1643_s3 + $0x88] sm:$0xff]  }
  0x57   :  { %1013 = vmatmul.msk.bf16.gmra.mxu2 %vm255_vm0, %v1045_v23  ;;  %1021 = vmatmul.msk.bf16.gmra.mxu3 %vm255_vm0, %v1053_v24  ;;  %v1209_v23 = vld [vmem:[%s1643_s3 + $0xc8] sm:$0xff]  }
  0x66   :  { %998 = vmatmul.msk.bf16.gmra.mxu0 %vm255_vm0, %v1030_v25  ;;  %1006 = vmatmul.msk.bf16.gmra.mxu1 %vm255_vm0, %v1038_v26 }
  0x67   :  { %1014 = vmatmul.msk.bf16.gmra.mxu2 %vm255_vm0, %v1046_v27  ;;  %1022 = vmatmul.msk.bf16.gmra.mxu3 %vm255_vm0, %v1054_v28  ;;  %v1127_v28 = vunpack.c.l.bf16 %v1201_v22 }
  0x76   :  { %999 = vmatmul.msk.bf16.gmra.mxu0 %vm255_vm0, %v1031_v29  ;;  %1007 = vmatmul.msk.bf16.gmra.mxu1 %vm255_vm0, %v1039_v30  ;;  %v1159_v29 = vunpack.c.l.bf16 %v1209_v23 }
  0x77   :  { %1015 = vmatmul.msk.bf16.gmra.mxu2 %vm255_vm0, %v1047_v31  ;;  %1023 = vmatmul.msk.bf16.gmra.mxu3 %vm255_vm0, %v1055_v32  ;;  %v1064_v32 = vunpack.c.h.bf16 %v1185_v2 }
  0x83   :  { %v361_v38 = vpop.f32.mrf.mxu0  ;;  %v401_v39 = vpop.f32.mrf.mxu1 }
  0x84   :  { %v362_v40 = vadd.f32 %v1417_v35, %v361_v38  ;;  %v402_v41 = vadd.f32 %v1417_v35, %v401_v39 }
  0x86   :  { %v649_v42 = vadd.f32 %v1059_v36, %v362_v40  ;;  %v665_v43 = vadd.f32 %v1091_v37, %v402_v41 }
  0x88   :  { %v713_v46 = vmax.f32 %v649_v42, 0.0  ;;  %v729_v47 = vmax.f32 %v665_v43, 0.0 }
  0x8a   :  { %778 = vst.msk [vmem:[#allocation2] sm:$0xff] %vm777_vm1, %v713_v46  ;;  %v441_v50 = vpop.f32.mrf.mxu2  ;;  %v481_v51 = vpop.f32.mrf.mxu3 }
  0x8b   :  { %794 = vst.msk [vmem:[#allocation2 + $0x80] sm:$0xff] %vm777_vm1, %v729_v47  ;;  %v442_v54 = vadd.f32 %v1417_v35, %v441_v50  ;;  %v482_v55 = vadd.f32 %v1417_v35, %v481_v51  ;;  %v363_v56 = vpop.f32.mrf.mxu0  ;;  %v403_v57 = vpop.f32.mrf.mxu1  ;;  %v1186_v47 = vld [vmem:[%s1643_s3 + $0x10] sm:$0xff]   ;;  %v1128_v51 = vunpack.c.h.bf16 %v1201_v22 }
  0x8c   :  { %v364_v58 = vadd.f32 %v1417_v35, %v363_v56  ;;  %v404_v59 = vadd.f32 %v1417_v35, %v403_v57 }
  0x8d   :  { %v681_v60 = vadd.f32 %v1123_v48, %v442_v54  ;;  %v697_v61 = vadd.f32 %v1155_v49, %v482_v55  ;;  %v1194_v48 = vld [vmem:[%s1643_s3 + $0x50] sm:$0xff]   ;;  %v1067_v55 = vunpack.c.l.bf16 %v1186_v47 }
  0x8e   :  { %v650_v62 = vadd.f32 %v1060_v52, %v364_v58  ;;  %v666_v63 = vadd.f32 %v1092_v53, %v404_v59  ;;  %v1160_v52 = vunpack.c.h.bf16 %v1209_v23  ;;  %v1099_v56 = vunpack.c.l.bf16 %v1194_v48 }
  0x8f   :  { %v745_v0 = vmax.f32 %v681_v60, 0.0  ;;  %v761_v1 = vmax.f32 %v697_v61, 0.0 }
  0x90   :  { %v714_v4 = vmax.f32 %v650_v62, 0.0  ;;  %v730_v5 = vmax.f32 %v666_v63, 0.0 }
  0x91   :  { %810 = vst.msk [vmem:[#allocation2 + $0x100] sm:$0xff] %vm777_vm1, %v745_v0 }
  0x92   :  { %826 = vst.msk [vmem:[#allocation2 + $0x180] sm:$0xff] %vm777_vm1, %v761_v1  ;;  %v443_v8 = vpop.f32.mrf.mxu2  ;;  %v483_v9 = vpop.f32.mrf.mxu3 }
  0x93   :  { %779 = vst.msk [vmem:[#allocation2 + $0x8] sm:$0xff] %vm777_vm1, %v714_v4  ;;  %v444_v12 = vadd.f32 %v1417_v35, %v443_v8  ;;  %v484_v13 = vadd.f32 %v1417_v35, %v483_v9  ;;  %v366_v14 = vpop.f32.mrf.mxu0  ;;  %v406_v15 = vpop.f32.mrf.mxu1  ;;  %v1210_v4 = vld [vmem:[%s1643_s3 + $0xd0] sm:$0xff]   ;;  %v1131_v9 = vunpack.c.l.bf16 %v1202_v3 }
  0x94   :  { %795 = vst.msk [vmem:[#allocation2 + $0x88] sm:$0xff] %vm777_vm1, %v730_v5  ;;  %v367_v16 = vadd.f32 %v1417_v35, %v366_v14  ;;  %v407_v17 = vadd.f32 %v1417_v35, %v406_v15  ;;  %v1100_v14 = vunpack.c.h.bf16 %v1194_v48  ;;  %v1203_v48 = vld [vmem:[%s1643_s3 + $0x98] sm:$0xff]  }
  0x95   :  { %v682_v18 = vadd.f32 %v1124_v6, %v444_v12  ;;  %v698_v19 = vadd.f32 %v1156_v7, %v484_v13  ;;  %v1068_v13 = vunpack.c.h.bf16 %v1186_v47 }
  0x96   :  { %v651_v20 = vadd.f32 %v1063_v10, %v367_v16  ;;  %v667_v21 = vadd.f32 %v1095_v11, %v407_v17  ;;  %v1163_v10 = vunpack.c.l.bf16 %v1210_v4 }
  0x97   :  { %v746_v24 = vmax.f32 %v682_v18, 0.0  ;;  %v762_v25 = vmax.f32 %v698_v19, 0.0 }
  0x98   :  { %v715_v26 = vmax.f32 %v651_v20, 0.0  ;;  %v731_v27 = vmax.f32 %v667_v21, 0.0 }
  0x99   :  { %811 = vst.msk [vmem:[#allocation2 + $0x108] sm:$0xff] %vm777_vm1, %v746_v24 }
  0x9a   :  { %827 = vst.msk [vmem:[#allocation2 + $0x188] sm:$0xff] %vm777_vm1, %v762_v25  ;;  %v446_v30 = vpop.f32.mrf.mxu2  ;;  %v486_v31 = vpop.f32.mrf.mxu3 }
  0x9b   :  { %780 = vst.msk [vmem:[#allocation2 + $0x10] sm:$0xff] %vm777_vm1, %v715_v26  ;;  %v447_v34 = vadd.f32 %v1417_v35, %v446_v30  ;;  %v487_v36 = vadd.f32 %v1417_v35, %v486_v31  ;;  %v368_v37 = vpop.f32.mrf.mxu0  ;;  %v408_v38 = vpop.f32.mrf.mxu1  ;;  %v1132_v31 = vunpack.c.h.bf16 %v1202_v3 }
  0x9c   :  { %796 = vst.msk [vmem:[#allocation2 + $0x90] sm:$0xff] %vm777_vm1, %v731_v27  ;;  %v369_v39 = vadd.f32 %v1417_v35, %v368_v37  ;;  %v409_v40 = vadd.f32 %v1417_v35, %v408_v38  ;;  %v1187_v27 = vld [vmem:[%s1643_s3 + $0x18] sm:$0xff]  }
  0x9d   :  { %v683_v41 = vadd.f32 %v1127_v28, %v447_v34  ;;  %v699_v42 = vadd.f32 %v1159_v29, %v487_v36  ;;  %v1195_v28 = vld [vmem:[%s1643_s3 + $0x58] sm:$0xff]   ;;  %v1071_v36 = vunpack.c.l.bf16 %v1187_v27 }
  0x9e   :  { %v652_v43 = vadd.f32 %v1064_v32, %v369_v39  ;;  %v668_v44 = vadd.f32 %v1096_v33, %v409_v40  ;;  %v1164_v32 = vunpack.c.h.bf16 %v1210_v4  ;;  %v1103_v37 = vunpack.c.l.bf16 %v1195_v28 }
  0x9f   :  { %v747_v45 = vmax.f32 %v683_v41, 0.0  ;;  %v763_v46 = vmax.f32 %v699_v42, 0.0 }
  0xa0   :  { %v716_v49 = vmax.f32 %v652_v43, 0.0  ;;  %v732_v50 = vmax.f32 %v668_v44, 0.0 }
  0xa1   :  { %812 = vst.msk [vmem:[#allocation2 + $0x110] sm:$0xff] %vm777_vm1, %v747_v45 }
  0xa2   :  { %828 = vst.msk [vmem:[#allocation2 + $0x190] sm:$0xff] %vm777_vm1, %v763_v46  ;;  %v448_v53 = vpop.f32.mrf.mxu2  ;;  %v488_v54 = vpop.f32.mrf.mxu3 }
  0xa3   :  { %781 = vst.msk [vmem:[#allocation2 + $0x18] sm:$0xff] %vm777_vm1, %v716_v49  ;;  %v449_v57 = vadd.f32 %v1417_v35, %v448_v53  ;;  %v489_v58 = vadd.f32 %v1417_v35, %v488_v54  ;;  %v371_v59 = vpop.f32.mrf.mxu0  ;;  %v411_v60 = vpop.f32.mrf.mxu1  ;;  %v1211_v49 = vld [vmem:[%s1643_s3 + $0xd8] sm:$0xff]   ;;  %v1135_v54 = vunpack.c.l.bf16 %v1203_v48 }
  0xa4   :  { %797 = vst.msk [vmem:[#allocation2 + $0x98] sm:$0xff] %vm777_vm1, %v732_v50  ;;  %v372_v61 = vadd.f32 %v1417_v35, %v371_v59  ;;  %v412_v62 = vadd.f32 %v1417_v35, %v411_v60  ;;  %v1104_v59 = vunpack.c.h.bf16 %v1195_v28  ;;  %v1204_v28 = vld [vmem:[%s1643_s3 + $0xa0] sm:$0xff]  }
  0xa5   :  { %v684_v63 = vadd.f32 %v1128_v51, %v449_v57  ;;  %v700_v0 = vadd.f32 %v1160_v52, %v489_v58  ;;  %v1072_v58 = vunpack.c.h.bf16 %v1187_v27 }
  0xa6   :  { %v653_v1 = vadd.f32 %v1067_v55, %v372_v61  ;;  %v669_v2 = vadd.f32 %v1099_v56, %v412_v62  ;;  %v1167_v55 = vunpack.c.l.bf16 %v1211_v49 }
  0xa7   :  { %v748_v5 = vmax.f32 %v684_v63, 0.0  ;;  %v764_v6 = vmax.f32 %v700_v0, 0.0 }
  0xa8   :  { %v717_v7 = vmax.f32 %v653_v1, 0.0  ;;  %v733_v8 = vmax.f32 %v669_v2, 0.0 }
  0xa9   :  { %813 = vst.msk [vmem:[#allocation2 + $0x118] sm:$0xff] %vm777_vm1, %v748_v5 }
  0xaa   :  { %829 = vst.msk [vmem:[#allocation2 + $0x198] sm:$0xff] %vm777_vm1, %v764_v6  ;;  %v451_v11 = vpop.f32.mrf.mxu2  ;;  %v491_v12 = vpop.f32.mrf.mxu3 }
  0xab   :  { %782 = vst.msk [vmem:[#allocation2 + $0x20] sm:$0xff] %vm777_vm1, %v717_v7  ;;  %v452_v15 = vadd.f32 %v1417_v35, %v451_v11  ;;  %v492_v16 = vadd.f32 %v1417_v35, %v491_v12  ;;  %v373_v17 = vpop.f32.mrf.mxu0  ;;  %v413_v18 = vpop.f32.mrf.mxu1  ;;  %v1136_v12 = vunpack.c.h.bf16 %v1203_v48 }
  0xac   :  { %798 = vst.msk [vmem:[#allocation2 + $0xa0] sm:$0xff] %vm777_vm1, %v733_v8  ;;  %v374_v19 = vadd.f32 %v1417_v35, %v373_v17  ;;  %v414_v20 = vadd.f32 %v1417_v35, %v413_v18  ;;  %v1188_v8 = vld [vmem:[%s1643_s3 + $0x20] sm:$0xff]  }
  0xad   :  { %v685_v21 = vadd.f32 %v1131_v9, %v452_v15  ;;  %v701_v22 = vadd.f32 %v1163_v10, %v492_v16  ;;  %v1196_v9 = vld [vmem:[%s1643_s3 + $0x60] sm:$0xff]   ;;  %v1075_v16 = vunpack.c.l.bf16 %v1188_v8 }
  0xae   :  { %v654_v23 = vadd.f32 %v1068_v13, %v374_v19  ;;  %v670_v24 = vadd.f32 %v1100_v14, %v414_v20  ;;  %v1168_v13 = vunpack.c.h.bf16 %v1211_v49  ;;  %v1107_v17 = vunpack.c.l.bf16 %v1196_v9 }
  0xaf   :  { %v749_v25 = vmax.f32 %v685_v21, 0.0  ;;  %v765_v26 = vmax.f32 %v701_v22, 0.0 }
  0xb0   :  { %v718_v29 = vmax.f32 %v654_v23, 0.0  ;;  %v734_v30 = vmax.f32 %v670_v24, 0.0 }
  0xb1   :  { %814 = vst.msk [vmem:[#allocation2 + $0x120] sm:$0xff] %vm777_vm1, %v749_v25 }
  0xb2   :  { %830 = vst.msk [vmem:[#allocation2 + $0x1a0] sm:$0xff] %vm777_vm1, %v765_v26  ;;  %v453_v33 = vpop.f32.mrf.mxu2  ;;  %v493_v34 = vpop.f32.mrf.mxu3 }
  0xb3   :  { %783 = vst.msk [vmem:[#allocation2 + $0x28] sm:$0xff] %vm777_vm1, %v718_v29  ;;  %v454_v38 = vadd.f32 %v1417_v35, %v453_v33  ;;  %v494_v39 = vadd.f32 %v1417_v35, %v493_v34  ;;  %v376_v40 = vpop.f32.mrf.mxu0  ;;  %v416_v41 = vpop.f32.mrf.mxu1  ;;  %v1212_v29 = vld [vmem:[%s1643_s3 + $0xe0] sm:$0xff]   ;;  %v1139_v34 = vunpack.c.l.bf16 %v1204_v28 }
  0xb4   :  { %799 = vst.msk [vmem:[#allocation2 + $0xa8] sm:$0xff] %vm777_vm1, %v734_v30  ;;  %v377_v42 = vadd.f32 %v1417_v35, %v376_v40  ;;  %v417_v43 = vadd.f32 %v1417_v35, %v416_v41  ;;  %v1108_v40 = vunpack.c.h.bf16 %v1196_v9  ;;  %v1205_v9 = vld [vmem:[%s1643_s3 + $0xa8] sm:$0xff]  }
  0xb5   :  { %v686_v44 = vadd.f32 %v1132_v31, %v454_v38  ;;  %v702_v45 = vadd.f32 %v1164_v32, %v494_v39  ;;  %v1076_v39 = vunpack.c.h.bf16 %v1188_v8 }
  0xb6   :  { %v655_v46 = vadd.f32 %v1071_v36, %v377_v42  ;;  %v671_v47 = vadd.f32 %v1103_v37, %v417_v43  ;;  %v1171_v36 = vunpack.c.l.bf16 %v1212_v29 }
  0xb7   :  { %v750_v50 = vmax.f32 %v686_v44, 0.0  ;;  %v766_v51 = vmax.f32 %v702_v45, 0.0 }
  0xb8   :  { %v719_v52 = vmax.f32 %v655_v46, 0.0  ;;  %v735_v53 = vmax.f32 %v671_v47, 0.0 }
  0xb9   :  { %815 = vst.msk [vmem:[#allocation2 + $0x128] sm:$0xff] %vm777_vm1, %v750_v50 }
  0xba   :  { %831 = vst.msk [vmem:[#allocation2 + $0x1a8] sm:$0xff] %vm777_vm1, %v766_v51  ;;  %v456_v56 = vpop.f32.mrf.mxu2  ;;  %v496_v57 = vpop.f32.mrf.mxu3 }
  0xbb   :  { %784 = vst.msk [vmem:[#allocation2 + $0x30] sm:$0xff] %vm777_vm1, %v719_v52  ;;  %v457_v60 = vadd.f32 %v1417_v35, %v456_v56  ;;  %v497_v61 = vadd.f32 %v1417_v35, %v496_v57  ;;  %v378_v62 = vpop.f32.mrf.mxu0  ;;  %v418_v63 = vpop.f32.mrf.mxu1  ;;  %v1140_v57 = vunpack.c.h.bf16 %v1204_v28 }
  0xbc   :  { %800 = vst.msk [vmem:[#allocation2 + $0xb0] sm:$0xff] %vm777_vm1, %v735_v53  ;;  %v379_v0 = vadd.f32 %v1417_v35, %v378_v62  ;;  %v419_v1 = vadd.f32 %v1417_v35, %v418_v63  ;;  %v1189_v53 = vld [vmem:[%s1643_s3 + $0x28] sm:$0xff]  }
  0xbd   :  { %v687_v2 = vadd.f32 %v1135_v54, %v457_v60  ;;  %v703_v3 = vadd.f32 %v1167_v55, %v497_v61  ;;  %v1197_v54 = vld [vmem:[%s1643_s3 + $0x68] sm:$0xff]   ;;  %v1079_v61 = vunpack.c.l.bf16 %v1189_v53 }
  0xbe   :  { %v656_v4 = vadd.f32 %v1072_v58, %v379_v0  ;;  %v672_v5 = vadd.f32 %v1104_v59, %v419_v1  ;;  %v1172_v58 = vunpack.c.h.bf16 %v1212_v29  ;;  %v1111_v62 = vunpack.c.l.bf16 %v1197_v54 }
  0xbf   :  { %v751_v6 = vmax.f32 %v687_v2, 0.0  ;;  %v767_v7 = vmax.f32 %v703_v3, 0.0 }
  0xc0   :  { %v720_v10 = vmax.f32 %v656_v4, 0.0  ;;  %v736_v11 = vmax.f32 %v672_v5, 0.0 }
  0xc1   :  { %816 = vst.msk [vmem:[#allocation2 + $0x130] sm:$0xff] %vm777_vm1, %v751_v6 }
  0xc2   :  { %832 = vst.msk [vmem:[#allocation2 + $0x1b0] sm:$0xff] %vm777_vm1, %v767_v7  ;;  %v458_v14 = vpop.f32.mrf.mxu2  ;;  %v498_v15 = vpop.f32.mrf.mxu3 }
  0xc3   :  { %785 = vst.msk [vmem:[#allocation2 + $0x38] sm:$0xff] %vm777_vm1, %v720_v10  ;;  %v459_v18 = vadd.f32 %v1417_v35, %v458_v14  ;;  %v499_v19 = vadd.f32 %v1417_v35, %v498_v15  ;;  %v381_v20 = vpop.f32.mrf.mxu0  ;;  %v421_v21 = vpop.f32.mrf.mxu1  ;;  %v1213_v10 = vld [vmem:[%s1643_s3 + $0xe8] sm:$0xff]   ;;  %v1143_v15 = vunpack.c.l.bf16 %v1205_v9 }
  0xc4   :  { %801 = vst.msk [vmem:[#allocation2 + $0xb8] sm:$0xff] %vm777_vm1, %v736_v11  ;;  %v382_v22 = vadd.f32 %v1417_v35, %v381_v20  ;;  %v422_v23 = vadd.f32 %v1417_v35, %v421_v21  ;;  %v1112_v20 = vunpack.c.h.bf16 %v1197_v54  ;;  %v1206_v54 = vld [vmem:[%s1643_s3 + $0xb0] sm:$0xff]  }
  0xc5   :  { %v688_v24 = vadd.f32 %v1136_v12, %v459_v18  ;;  %v704_v25 = vadd.f32 %v1168_v13, %v499_v19  ;;  %v1080_v19 = vunpack.c.h.bf16 %v1189_v53 }
  0xc6   :  { %v657_v26 = vadd.f32 %v1075_v16, %v382_v22  ;;  %v673_v27 = vadd.f32 %v1107_v17, %v422_v23  ;;  %v1175_v16 = vunpack.c.l.bf16 %v1213_v10 }
  0xc7   :  { %v752_v30 = vmax.f32 %v688_v24, 0.0  ;;  %v768_v31 = vmax.f32 %v704_v25, 0.0 }
  0xc8   :  { %v721_v32 = vmax.f32 %v657_v26, 0.0  ;;  %v737_v33 = vmax.f32 %v673_v27, 0.0 }
  0xc9   :  { %817 = vst.msk [vmem:[#allocation2 + $0x138] sm:$0xff] %vm777_vm1, %v752_v30 }
  0xca   :  { %833 = vst.msk [vmem:[#allocation2 + $0x1b8] sm:$0xff] %vm777_vm1, %v768_v31  ;;  %v461_v37 = vpop.f32.mrf.mxu2  ;;  %v501_v38 = vpop.f32.mrf.mxu3 }
  0xcb   :  { %786 = vst.msk [vmem:[#allocation2 + $0x40] sm:$0xff] %vm777_vm1, %v721_v32  ;;  %v462_v41 = vadd.f32 %v1417_v35, %v461_v37  ;;  %v502_v42 = vadd.f32 %v1417_v35, %v501_v38  ;;  %v383_v43 = vpop.f32.mrf.mxu0  ;;  %v423_v44 = vpop.f32.mrf.mxu1  ;;  %v1144_v38 = vunpack.c.h.bf16 %v1205_v9 }
  0xcc   :  { %802 = vst.msk [vmem:[#allocation2 + $0xc0] sm:$0xff] %vm777_vm1, %v737_v33  ;;  %v384_v45 = vadd.f32 %v1417_v35, %v383_v43  ;;  %v424_v46 = vadd.f32 %v1417_v35, %v423_v44  ;;  %v1190_v33 = vld [vmem:[%s1643_s3 + $0x30] sm:$0xff]  }
  0xcd   :  { %v689_v47 = vadd.f32 %v1139_v34, %v462_v41  ;;  %v705_v48 = vadd.f32 %v1171_v36, %v502_v42  ;;  %v1198_v34 = vld [vmem:[%s1643_s3 + $0x70] sm:$0xff]   ;;  %v1083_v42 = vunpack.c.l.bf16 %v1190_v33 }
  0xce   :  { %v658_v49 = vadd.f32 %v1076_v39, %v384_v45  ;;  %v674_v50 = vadd.f32 %v1108_v40, %v424_v46  ;;  %v1176_v39 = vunpack.c.h.bf16 %v1213_v10  ;;  %v1115_v43 = vunpack.c.l.bf16 %v1198_v34 }
  0xcf   :  { %v753_v51 = vmax.f32 %v689_v47, 0.0  ;;  %v769_v52 = vmax.f32 %v705_v48, 0.0 }
  0xd0   :  { %v722_v55 = vmax.f32 %v658_v49, 0.0  ;;  %v738_v56 = vmax.f32 %v674_v50, 0.0 }
  0xd1   :  { %818 = vst.msk [vmem:[#allocation2 + $0x140] sm:$0xff] %vm777_vm1, %v753_v51 }
  0xd2   :  { %834 = vst.msk [vmem:[#allocation2 + $0x1c0] sm:$0xff] %vm777_vm1, %v769_v52  ;;  %v463_v59 = vpop.f32.mrf.mxu2  ;;  %v503_v60 = vpop.f32.mrf.mxu3 }
  0xd3   :  { %787 = vst.msk [vmem:[#allocation2 + $0x48] sm:$0xff] %vm777_vm1, %v722_v55  ;;  %v464_v63 = vadd.f32 %v1417_v35, %v463_v59  ;;  %v504_v0 = vadd.f32 %v1417_v35, %v503_v60  ;;  %v386_v1 = vpop.f32.mrf.mxu0  ;;  %v426_v2 = vpop.f32.mrf.mxu1  ;;  %v1214_v55 = vld [vmem:[%s1643_s3 + $0xf0] sm:$0xff]   ;;  %v1147_v60 = vunpack.c.l.bf16 %v1206_v54 }
  0xd4   :  { %803 = vst.msk [vmem:[#allocation2 + $0xc8] sm:$0xff] %vm777_vm1, %v738_v56  ;;  %v387_v3 = vadd.f32 %v1417_v35, %v386_v1  ;;  %v427_v4 = vadd.f32 %v1417_v35, %v426_v2  ;;  %v1116_v1 = vunpack.c.h.bf16 %v1198_v34  ;;  %v1207_v34 = vld [vmem:[%s1643_s3 + $0xb8] sm:$0xff]  }
  0xd5   :  { %v690_v5 = vadd.f32 %v1140_v57, %v464_v63  ;;  %v706_v6 = vadd.f32 %v1172_v58, %v504_v0  ;;  %v1084_v0 = vunpack.c.h.bf16 %v1190_v33 }
  0xd6   :  { %v659_v7 = vadd.f32 %v1079_v61, %v387_v3  ;;  %v675_v8 = vadd.f32 %v1111_v62, %v427_v4  ;;  %v1179_v61 = vunpack.c.l.bf16 %v1214_v55 }
  0xd7   :  { %v754_v11 = vmax.f32 %v690_v5, 0.0  ;;  %v770_v12 = vmax.f32 %v706_v6, 0.0 }
  0xd8   :  { %v723_v13 = vmax.f32 %v659_v7, 0.0  ;;  %v739_v14 = vmax.f32 %v675_v8, 0.0 }
  0xd9   :  { %819 = vst.msk [vmem:[#allocation2 + $0x148] sm:$0xff] %vm777_vm1, %v754_v11 }
  0xda   :  { %835 = vst.msk [vmem:[#allocation2 + $0x1c8] sm:$0xff] %vm777_vm1, %v770_v12  ;;  %v466_v17 = vpop.f32.mrf.mxu2  ;;  %v506_v18 = vpop.f32.mrf.mxu3 }
  0xdb   :  { %788 = vst.msk [vmem:[#allocation2 + $0x50] sm:$0xff] %vm777_vm1, %v723_v13  ;;  %v467_v21 = vadd.f32 %v1417_v35, %v466_v17  ;;  %v507_v22 = vadd.f32 %v1417_v35, %v506_v18  ;;  %v388_v23 = vpop.f32.mrf.mxu0  ;;  %v428_v24 = vpop.f32.mrf.mxu1  ;;  %v1148_v18 = vunpack.c.h.bf16 %v1206_v54 }
  0xdc   :  { %804 = vst.msk [vmem:[#allocation2 + $0xd0] sm:$0xff] %vm777_vm1, %v739_v14  ;;  %v389_v25 = vadd.f32 %v1417_v35, %v388_v23  ;;  %v429_v26 = vadd.f32 %v1417_v35, %v428_v24  ;;  %v1191_v14 = vld [vmem:[%s1643_s3 + $0x38] sm:$0xff]  }
  0xdd   :  { %v691_v27 = vadd.f32 %v1143_v15, %v467_v21  ;;  %v707_v28 = vadd.f32 %v1175_v16, %v507_v22  ;;  %v1199_v15 = vld [vmem:[%s1643_s3 + $0x78] sm:$0xff]   ;;  %v1087_v22 = vunpack.c.l.bf16 %v1191_v14 }
  0xde   :  { %v660_v29 = vadd.f32 %v1080_v19, %v389_v25  ;;  %v676_v30 = vadd.f32 %v1112_v20, %v429_v26  ;;  %v1180_v19 = vunpack.c.h.bf16 %v1214_v55  ;;  %v1119_v23 = vunpack.c.l.bf16 %v1199_v15 }
  0xdf   :  { %v755_v31 = vmax.f32 %v691_v27, 0.0  ;;  %v771_v32 = vmax.f32 %v707_v28, 0.0 }
  0xe0   :  { %v724_v36 = vmax.f32 %v660_v29, 0.0  ;;  %v740_v37 = vmax.f32 %v676_v30, 0.0 }
  0xe1   :  { %820 = vst.msk [vmem:[#allocation2 + $0x150] sm:$0xff] %vm777_vm1, %v755_v31 }
  0xe2   :  { %836 = vst.msk [vmem:[#allocation2 + $0x1d0] sm:$0xff] %vm777_vm1, %v771_v32  ;;  %v468_v40 = vpop.f32.mrf.mxu2  ;;  %v508_v41 = vpop.f32.mrf.mxu3 }
  0xe3   :  { %789 = vst.msk [vmem:[#allocation2 + $0x58] sm:$0xff] %vm777_vm1, %v724_v36  ;;  %v469_v44 = vadd.f32 %v1417_v35, %v468_v40  ;;  %v509_v45 = vadd.f32 %v1417_v35, %v508_v41  ;;  %v391_v46 = vpop.f32.mrf.mxu0  ;;  %v431_v47 = vpop.f32.mrf.mxu1  ;;  %v1215_v36 = vld [vmem:[%s1643_s3 + $0xf8] sm:$0xff]   ;;  %v1151_v41 = vunpack.c.l.bf16 %v1207_v34  ;;  %s1249_s3 = smov [#allocation2]  }
  0xe4   :  { %805 = vst.msk [vmem:[#allocation2 + $0xd8] sm:$0xff] %vm777_vm1, %v740_v37  ;;  %v392_v48 = vadd.f32 %v1417_v35, %v391_v46  ;;  %v432_v49 = vadd.f32 %v1417_v35, %v431_v47  ;;  %v1120_v46 = vunpack.c.h.bf16 %v1199_v15  ;;  %s846_s7 = sshll.u32 %s1249_s3, 4  ;;  %s847_s7 = int_to_ptr.vmem [resolvable:$true] %s846_s7 }
  0xe5   :  { %v692_v50 = vadd.f32 %v1144_v38, %v469_v44  ;;  %v708_v51 = vadd.f32 %v1176_v39, %v509_v45  ;;  %v1088_v45 = vunpack.c.h.bf16 %v1191_v14 }
  0xe6   :  { %v661_v52 = vadd.f32 %v1083_v42, %v392_v48  ;;  %v677_v53 = vadd.f32 %v1115_v43, %v432_v49  ;;  %v1183_v42 = vunpack.c.l.bf16 %v1215_v36 }
  0xe7   :  { %v756_v56 = vmax.f32 %v692_v50, 0.0  ;;  %v772_v57 = vmax.f32 %v708_v51, 0.0 }
  0xe8   :  { %v725_v58 = vmax.f32 %v661_v52, 0.0  ;;  %v741_v59 = vmax.f32 %v677_v53, 0.0 }
  0xe9   :  { %821 = vst.msk [vmem:[#allocation2 + $0x158] sm:$0xff] %vm777_vm1, %v756_v56 }
  0xea   :  { %837 = vst.msk [vmem:[#allocation2 + $0x1d8] sm:$0xff] %vm777_vm1, %v772_v57  ;;  %v471_v62 = vpop.f32.mrf.mxu2  ;;  %v511_v63 = vpop.f32.mrf.mxu3 }
  0xeb   :  { %790 = vst.msk [vmem:[#allocation2 + $0x60] sm:$0xff] %vm777_vm1, %v725_v58  ;;  %v472_v2 = vadd.f32 %v1417_v35, %v471_v62  ;;  %v512_v3 = vadd.f32 %v1417_v35, %v511_v63  ;;  %v393_v4 = vpop.f32.mrf.mxu0  ;;  %v433_v5 = vpop.f32.mrf.mxu1  ;;  %v1184_v62 = vunpack.c.h.bf16 %v1215_v36 }
  0xec   :  { %806 = vst.msk [vmem:[#allocation2 + $0xe0] sm:$0xff] %vm777_vm1, %v741_v59  ;;  %v394_v6 = vadd.f32 %v1417_v35, %v393_v4  ;;  %v434_v7 = vadd.f32 %v1417_v35, %v433_v5 }
  0xed   :  { %v693_v8 = vadd.f32 %v1147_v60, %v472_v2  ;;  %v709_v9 = vadd.f32 %v1179_v61, %v512_v3  ;;  %v1152_v61 = vunpack.c.h.bf16 %v1207_v34 }
  0xee   :  { %v662_v10 = vadd.f32 %v1084_v0, %v394_v6  ;;  %v678_v11 = vadd.f32 %v1116_v1, %v434_v7 }
  0xef   :  { %v757_v12 = vmax.f32 %v693_v8, 0.0  ;;  %v773_v13 = vmax.f32 %v709_v9, 0.0 }
  0xf0   :  { %v726_v16 = vmax.f32 %v662_v10, 0.0  ;;  %v742_v17 = vmax.f32 %v678_v11, 0.0 }
  0xf1   :  { %822 = vst.msk [vmem:[#allocation2 + $0x160] sm:$0xff] %vm777_vm1, %v757_v12 }
  0xf2   :  { %838 = vst.msk [vmem:[#allocation2 + $0x1e0] sm:$0xff] %vm777_vm1, %v773_v13  ;;  %v473_v20 = vpop.f32.mrf.mxu2  ;;  %v513_v21 = vpop.f32.mrf.mxu3 }
  0xf3   :  { %791 = vst.msk [vmem:[#allocation2 + $0x68] sm:$0xff] %vm777_vm1, %v726_v16  ;;  %v474_v24 = vadd.f32 %v1417_v35, %v473_v20  ;;  %v514_v25 = vadd.f32 %v1417_v35, %v513_v21  ;;  %v396_v26 = vpop.f32.mrf.mxu0  ;;  %v436_v27 = vpop.f32.mrf.mxu1 }
  0xf4   :  { %807 = vst.msk [vmem:[#allocation2 + $0xe8] sm:$0xff] %vm777_vm1, %v742_v17  ;;  %v397_v28 = vadd.f32 %v1417_v35, %v396_v26  ;;  %v437_v29 = vadd.f32 %v1417_v35, %v436_v27 }
  0xf5   :  { %v694_v30 = vadd.f32 %v1148_v18, %v474_v24  ;;  %v710_v31 = vadd.f32 %v1180_v19, %v514_v25 }
  0xf6   :  { %v663_v32 = vadd.f32 %v1087_v22, %v397_v28  ;;  %v679_v33 = vadd.f32 %v1119_v23, %v437_v29 }
  0xf7   :  { %v758_v37 = vmax.f32 %v694_v30, 0.0  ;;  %v774_v38 = vmax.f32 %v710_v31, 0.0 }
  0xf8   :  { %v727_v39 = vmax.f32 %v663_v32, 0.0  ;;  %v743_v40 = vmax.f32 %v679_v33, 0.0 }
  0xf9   :  { %823 = vst.msk [vmem:[#allocation2 + $0x168] sm:$0xff] %vm777_vm1, %v758_v37 }
  0xfa   :  { %839 = vst.msk [vmem:[#allocation2 + $0x1e8] sm:$0xff] %vm777_vm1, %v774_v38  ;;  %v476_v43 = vpop.f32.mrf.mxu2  ;;  %v516_v44 = vpop.f32.mrf.mxu3 }
  0xfb   :  { %792 = vst.msk [vmem:[#allocation2 + $0x70] sm:$0xff] %vm777_vm1, %v727_v39  ;;  %v477_v47 = vadd.f32 %v1417_v35, %v476_v43  ;;  %v517_v48 = vadd.f32 %v1417_v35, %v516_v44  ;;  %v398_v49 = vpop.f32.mrf.mxu0  ;;  %v438_v50 = vpop.f32.mrf.mxu1 }
  0xfc   :  { %808 = vst.msk [vmem:[#allocation2 + $0xf0] sm:$0xff] %vm777_vm1, %v743_v40  ;;  %v399_v51 = vadd.f32 %v1417_v35, %v398_v49  ;;  %v439_v52 = vadd.f32 %v1417_v35, %v438_v50 }
  0xfd   :  { %v695_v53 = vadd.f32 %v1151_v41, %v477_v47  ;;  %v711_v54 = vadd.f32 %v1183_v42, %v517_v48 }
  0xfe   :  { %v664_v55 = vadd.f32 %v1088_v45, %v399_v51  ;;  %v680_v56 = vadd.f32 %v1120_v46, %v439_v52 }
  0xff   :  { %v759_v57 = vmax.f32 %v695_v53, 0.0  ;;  %v775_v58 = vmax.f32 %v711_v54, 0.0 }
 0x100   :  { %v728_v59 = vmax.f32 %v664_v55, 0.0  ;;  %v744_v60 = vmax.f32 %v680_v56, 0.0 }
 0x101   :  { %824 = vst.msk [vmem:[#allocation2 + $0x170] sm:$0xff] %vm777_vm1, %v759_v57 }
 0x102   :  { %840 = vst.msk [vmem:[#allocation2 + $0x1f0] sm:$0xff] %vm777_vm1, %v775_v58  ;;  %v478_v63 = vpop.f32.mrf.mxu2  ;;  %v518_v0 = vpop.f32.mrf.mxu3 }
 0x103   :  { %793 = vst.msk [vmem:[#allocation2 + $0x78] sm:$0xff] %vm777_vm1, %v728_v59  ;;  %v479_v1 = vadd.f32 %v1417_v35, %v478_v63  ;;  %v519_v2 = vadd.f32 %v1417_v35, %v518_v0 }
 0x104   :  { %809 = vst.msk [vmem:[#allocation2 + $0xf8] sm:$0xff] %vm777_vm1, %v744_v60 }
 0x105   :  { %v696_v3 = vadd.f32 %v1152_v61, %v479_v1  ;;  %v712_v4 = vadd.f32 %v1184_v62, %v519_v2 }
 0x107   :  { %v760_v5 = vmax.f32 %v696_v3, 0.0  ;;  %v776_v6 = vmax.f32 %v712_v4, 0.0 }
 0x109   :  { %825 = vst.msk [vmem:[#allocation2 + $0x178] sm:$0xff] %vm777_vm1, %v760_v5 }
 0x10a   :  { %841 = vst.msk [vmem:[#allocation2 + $0x1f8] sm:$0xff] %vm777_vm1, %v776_v6 }
 0x10b   :  { %854 = dma.vmem_to_hbm [thread:$0]  %s847_s7, 8192, %s849_s9, [#allocation3], %s1250_s10, %s1250_s10, %s1251_s11  }
 0x10c   :  { %1247 = dma.done.wait [#allocation3], 8192  }
 0x10d   :  { %1248 = vsyncadd [#allocation3], 4294959104 }
 0x10e   :  { %859 = vsyncpa [#allocation3], 1 }

</bundles_post_ra>
